<compile_context>
chip_gen: v7x
topology: tpu7x:2x2x1
jax: 0.10.0
libtpu: 0.0.40
codegen_flags: <defaults>
</compile_context>

<pallas_src>
import math
from functools import partial

import jax
import jax.numpy as jnp
from jax.experimental import pallas as pl
from jax.experimental.pallas import tpu as pltpu

RESOLUTION = 5000  # FractionalEncoder resolution (as in the module)


# ----------------------------------------------------------------------------
# Fused CrabNet kernel (one grid step = one batch element)
# ----------------------------------------------------------------------------
def make_crabnet_kernel(n_layers, heads, d_model, block_has_proj, eps=1e-5):
    D = d_model
    hd = D // heads
    att_scale = 1.0 / math.sqrt(hd)

    def layernorm(x, g, b):
        mu = jnp.mean(x, axis=-1, keepdims=True)
        var = jnp.mean((x - mu) ** 2, axis=-1, keepdims=True)
        return (x - mu) * jax.lax.rsqrt(var + eps) * g + b

    def kernel(*refs):
        feat_ref, pe_ref, kpm_ref, hmask_ref, keep_ref = refs[:5]
        o_ref = refs[-1]
        params = iter(refs[5:-1])

        def nxt():
            return next(params)[...]

        feat = feat_ref[0]       # [T, F]  gathered element features
        pe = pe_ref[0]           # [T, D]  pe+ple (scalers pre-applied)
        kpm = kpm_ref[0]         # [1, T]  1.0 where key is padding
        hmask = hmask_ref[0]     # [T, 1]  1.0 for real tokens (frac-derived)
        keep = keep_ref[0]       # [T, 1]  1.0 for real tokens (src != 0)
        T = feat.shape[0]

        # ---- Embedder (2**emb_scaler folded into weights) + positional enc ----
        w_emb, b_emb = nxt(), nxt()
        h = jnp.dot(feat, w_emb, preferred_element_type=jnp.float32) + b_emb
        h = h + pe

        # ---- transformer encoder (post-norm, relu FFN, eval-mode dropout) ----
        for _ in range(n_layers):
            in_w, in_b = nxt(), nxt()
            out_w, out_b = nxt(), nxt()
            ff1_w, ff1_b = nxt(), nxt()
            ff2_w, ff2_b = nxt(), nxt()
            ln1_g, ln1_b = nxt(), nxt()
            ln2_g, ln2_b = nxt(), nxt()

            qkv = jnp.dot(h, in_w, preferred_element_type=jnp.float32) + in_b  # [T, 3D]
            attn = jnp.zeros((T, D), jnp.float32)
            for hh in range(heads):
                lo, hi = hh * hd, (hh + 1) * hd
                q = qkv[:, lo:hi]                     # [T, hd]
                k = qkv[:, D + lo:D + hi]             # [T, hd]
                v = qkv[:, 2 * D + lo:2 * D + hi]     # [T, hd]
                s = jax.lax.dot_general(q, k, (((1,), (1,)), ((), ())),
                                        preferred_element_type=jnp.float32) * att_scale
                s = s + kpm * (-1e9)                  # key_padding_mask
                s = s - jnp.max(s, axis=-1, keepdims=True)
                p = jnp.exp(s)
                p = p * pl.reciprocal(jnp.sum(p, axis=-1, keepdims=True), approx=True)
                o_h = jnp.dot(p, v, preferred_element_type=jnp.float32)         # [T, hd]
                # head-concat fused into the output projection:
                attn = attn + jnp.dot(o_h, out_w[lo:hi, :],
                                      preferred_element_type=jnp.float32)
            attn = attn + out_b
            y = layernorm(h + attn, ln1_g, ln1_b)
            ff = jnp.maximum(
                jnp.dot(y, ff1_w, preferred_element_type=jnp.float32) + ff1_b, 0.0)
            ff = jnp.dot(ff, ff2_w, preferred_element_type=jnp.float32) + ff2_b
            h = layernorm(y + ff, ln2_g, ln2_b)

        # ---- zero padded tokens (masked_fill with hmask == 0) ----
        fea = h * hmask

        # ---- ResidualNetwork head (proj blocks: single fused [W | W_res] matmul) ----
        for has_proj in block_has_proj:
            w, b = nxt(), nxt()
            n_out = b.shape[-1]
            y = jnp.dot(fea, w, preferred_element_type=jnp.float32)
            main = y[:, :n_out] + b
            main = jnp.where(main >= 0.0, main, 0.01 * main)     # LeakyReLU(0.01)
            fea = main + (y[:, n_out:] if has_proj else fea)
        w_out, b_out = nxt(), nxt()
        out = jnp.dot(fea, w_out, preferred_element_type=jnp.float32) + b_out   # [T, out_dims]

        # ---- masked mean over tokens (avg=True branch) ----
        s = jnp.sum(out * keep, axis=0, keepdims=True)                   # [1, out_dims]
        cnt = jnp.maximum(jnp.sum(keep, axis=0, keepdims=True), 1.0)     # [1, 1]
        o_ref[0] = s * pl.reciprocal(cnt, approx=True)

    return kernel


# ----------------------------------------------------------------------------
# FractionalEncoder (table built once; lookup is glue)
# ----------------------------------------------------------------------------
def build_pe_table(d_half, resolution):
    x = jnp.arange(resolution, dtype=jnp.float32)[:, None]
    fraction = jnp.tile(jnp.arange(d_half, dtype=jnp.float32)[None, :],
                        (resolution, 1))
    pe = jnp.zeros((resolution, d_half), dtype=jnp.float32)
    pe = pe.at[:, 0::2].set(
        jnp.sin(x / jnp.power(50.0, 2.0 * fraction[:, 0::2] / d_half)))
    pe = pe.at[:, 1::2].set(
        jnp.cos(x / jnp.power(50.0, 2.0 * fraction[:, 1::2] / d_half)))
    return pe


def fractional_encode(frac, table, resolution, log10):
    x = frac
    if log10:
        x = 0.0025 * jnp.log2(x) ** 2
        x = jnp.minimum(x, 1.0)
    x = jnp.maximum(x, 1.0 / resolution)
    idx = jnp.round(x * resolution).astype(jnp.int32) - 1
    return table[idx]


# ----------------------------------------------------------------------------
# Parameters (deterministic synthetic init)
# ----------------------------------------------------------------------------
def init_params(key, feat_size, d_model, n_layers, d_ff, out_hidden, out_dims):
    keys = iter(jax.random.split(key, 256))

    def nrm(shape, scale=0.1):
        return jax.random.normal(next(keys), shape, dtype=jnp.float32) * scale

    p = {}
    # Embedder: element-feature table (row 0 = padding zeros), feat -> d_model
    cbfv_body = jnp.abs(nrm((118, feat_size), 1.0))
    p["cbfv"] = jnp.concatenate(
        [jnp.zeros((1, feat_size), jnp.float32), cbfv_body], axis=0)
    p["fc_mat2vec_w"] = nrm((feat_size, d_model))
    p["fc_mat2vec_b"] = nrm((d_model,), 0.01)
    # Encoder scalars
    p["emb_scaler"] = jnp.float32(1.0)
    p["pos_scaler"] = jnp.float32(1.0)
    p["pos_scaler_log"] = jnp.float32(1.0)
    # Shared fractional-encoding table (pe and ple differ only in input transform)
    p["pe_table"] = build_pe_table(d_model // 2, RESOLUTION)
    # Transformer encoder layers (post-norm, relu FFN, eval-mode dropout)
    layers = []
    for _ in range(n_layers):
        layers.append(dict(
            in_w=nrm((d_model, 3 * d_model)), in_b=nrm((3 * d_model,), 0.01),
            out_w=nrm((d_model, d_model)), out_b=nrm((d_model,), 0.01),
            ff1_w=nrm((d_model, d_ff)), ff1_b=nrm((d_ff,), 0.01),
            ff2_w=nrm((d_ff, d_model)), ff2_b=nrm((d_model,), 0.01),
            ln1_g=jnp.ones((d_model,), jnp.float32),
            ln1_b=jnp.zeros((d_model,), jnp.float32),
            ln2_g=jnp.ones((d_model,), jnp.float32),
            ln2_b=jnp.zeros((d_model,), jnp.float32),
        ))
    p["layers"] = layers
    # ResidualNetwork head
    dims = [d_model] + list(out_hidden)
    blocks = []
    for i in range(len(dims) - 1):
        blk = dict(w=nrm((dims[i], dims[i + 1])), b=nrm((dims[i + 1],), 0.01))
        blk["wr"] = None if dims[i] == dims[i + 1] else nrm((dims[i], dims[i + 1]))
        blocks.append(blk)
    p["res_blocks"] = blocks
    p["fc_out_w"] = nrm((dims[-1], out_dims))
    p["fc_out_b"] = nrm((out_dims,), 0.01)
    return p


# ----------------------------------------------------------------------------
# Forward pass: plain-JAX glue (gathers, masks) + one fused Pallas kernel
# ----------------------------------------------------------------------------
def crabnet_forward(params, src, frac, *, heads, out_dims):
    B, T = src.shape
    D = params["fc_mat2vec_w"].shape[1]
    F = params["cbfv"].shape[1]

    # ---- glue: embedding gather, masks, fractional positional encodings ----
    feat = params["cbfv"][src]                              # [B, T, F]
    outer = frac[:, :, None] * frac[:, None, :]             # [B, T, T]
    mask = (outer != 0.0).astype(jnp.float32)
    kpm = (mask[:, 0, :] != 1.0).astype(jnp.float32).reshape(B, 1, T)  # padded key
    hmask = mask[:, :, 0:1]                                 # [B, T, 1]
    keep = (src != 0).astype(jnp.float32)[:, :, None]       # [B, T, 1]

    emb_scale = 2.0 ** params["emb_scaler"]
    pe_scaler = 2.0 ** ((1.0 - params["pos_scaler"]) ** 2)
    ple_scaler = 2.0 ** ((1.0 - params["pos_scaler_log"]) ** 2)
    pe_half = fractional_encode(frac, params["pe_table"], RESOLUTION, False) * pe_scaler
    ple_half = fractional_encode(frac, params["pe_table"], RESOLUTION, True) * ple_scaler
    pe_ple = jnp.concatenate([pe_half, ple_half], axis=-1)  # [B, T, D]

    # ---- flatten weights (all 2-D, resident in VMEM across the grid) ----
    flat = [params["fc_mat2vec_w"] * emb_scale,
            (params["fc_mat2vec_b"] * emb_scale).reshape(1, D)]
    for layer in params["layers"]:
        flat += [layer["in_w"], layer["in_b"].reshape(1, -1),
                 layer["out_w"], layer["out_b"].reshape(1, -1),
                 layer["ff1_w"], layer["ff1_b"].reshape(1, -1),
                 layer["ff2_w"], layer["ff2_b"].reshape(1, -1),
                 layer["ln1_g"].reshape(1, -1), layer["ln1_b"].reshape(1, -1),
                 layer["ln2_g"].reshape(1, -1), layer["ln2_b"].reshape(1, -1)]
    block_has_proj = []
    for blk in params["res_blocks"]:
        if blk["wr"] is None:                      # nn.Identity() residual branch
            flat += [blk["w"], blk["b"].reshape(1, -1)]
            block_has_proj.append(False)
        else:                                      # fused [W | W_res] matmul
            flat += [jnp.concatenate([blk["w"], blk["wr"]], axis=1),
                     blk["b"].reshape(1, -1)]
            block_has_proj.append(True)
    flat += [params["fc_out_w"], params["fc_out_b"].reshape(1, -1)]

    data_specs = [
        pl.BlockSpec((1, T, F), lambda b: (b, 0, 0)),   # feat
        pl.BlockSpec((1, T, D), lambda b: (b, 0, 0)),   # pe+ple
        pl.BlockSpec((1, 1, T), lambda b: (b, 0, 0)),   # key padding mask
        pl.BlockSpec((1, T, 1), lambda b: (b, 0, 0)),   # hmask
        pl.BlockSpec((1, T, 1), lambda b: (b, 0, 0)),   # keep
    ]
    param_specs = [pl.BlockSpec(p.shape, lambda b: (0, 0)) for p in flat]

    kernel = make_crabnet_kernel(len(params["layers"]), heads, D,
                                 tuple(block_has_proj))
    pooled = pl.pallas_call(
        kernel,
        grid=(B,),
        in_specs=data_specs + param_specs,
        out_specs=pl.BlockSpec((1, 1, out_dims), lambda b: (b, 0, 0)),
        out_shape=jax.ShapeDtypeStruct((B, 1, out_dims), jnp.float32),
        compiler_params=pltpu.CompilerParams(dimension_semantics=("parallel",)),
    )(feat, pe_ple, kpm, hmask, keep, *flat)
    pooled = pooled[:, 0, :]                                 # [B, out_dims]

    # ---- tiny sigmoid gating (torch.chunk(2) semantics) — plain-JAX glue ----
    n_out = (out_dims + 1) // 2
    o, logits = pooled[:, :n_out], pooled[:, n_out:]
    prob = jnp.ones_like(o)
    prob = prob.at[:, : logits.shape[-1]].set(jax.nn.sigmoid(logits))
    return o * prob


# ----------------------------------------------------------------------------
if __name__ == "__main__":
    B, T = 2, 8
    d_model, n_layers, heads, d_ff = 32, 2, 4, 64
    feat_size, out_dims = 24, 3
    out_hidden = [64, 32, 32]   # scaled-down 'roost' head (orig [1024,512,256,128])

    root = jax.random.PRNGKey(0)
    kp, ks, kf = jax.random.split(root, 3)
    params = init_params(kp, feat_size, d_model, n_layers, d_ff,
                         out_hidden, out_dims)

    # Deterministic example inputs: padded element-index / fraction sequences.
    lengths = jnp.array([5, 7])
    pos = jnp.arange(T)
    valid = pos[None, :] < lengths[:, None]
    src = jax.random.randint(ks, (B, T), 1, 119, dtype=jnp.int32)
    src = jnp.where(valid, src, 0)
    raw = jax.random.uniform(kf, (B, T), minval=0.1, maxval=1.0, dtype=jnp.float32)
    raw = jnp.where(valid, raw, 0.0)
    frac = raw / jnp.sum(raw, axis=1, keepdims=True)

    fwd = jax.jit(partial(crabnet_forward, params, heads=heads, out_dims=out_dims))
    out = fwd(src, frac)
    jax.block_until_ready(out)

    assert out.shape == (B, (out_dims + 1) // 2), out.shape
    assert bool(jnp.all(jnp.isfinite(out)))
    # TODO(synk): dropout (train-mode) and the optional GlobalRankedFeatureSelector
    # (Gumbel-noise soft mask, disabled by default) are omitted — inference semantics.
    print("KERNEL_OK")
</pallas_src>

<mosaic_0001>
module attributes {stable_mosaic.version = 11 : i64} {
  func.func @kernel(%arg0: i32, %arg1: memref<1x8x24xf32, #tpu.memory_space<vmem>>, %arg2: memref<1x8x32xf32, #tpu.memory_space<vmem>>, %arg3: memref<1x1x8xf32, #tpu.memory_space<vmem>>, %arg4: memref<1x8x1xf32, #tpu.memory_space<vmem>>, %arg5: memref<1x8x1xf32, #tpu.memory_space<vmem>>, %arg6: memref<24x32xf32, #tpu.memory_space<vmem>>, %arg7: memref<1x32xf32, #tpu.memory_space<vmem>>, %arg8: memref<32x96xf32, #tpu.memory_space<vmem>>, %arg9: memref<1x96xf32, #tpu.memory_space<vmem>>, %arg10: memref<32x32xf32, #tpu.memory_space<vmem>>, %arg11: memref<1x32xf32, #tpu.memory_space<vmem>>, %arg12: memref<32x64xf32, #tpu.memory_space<vmem>>, %arg13: memref<1x64xf32, #tpu.memory_space<vmem>>, %arg14: memref<64x32xf32, #tpu.memory_space<vmem>>, %arg15: memref<1x32xf32, #tpu.memory_space<vmem>>, %arg16: memref<1x32xf32, #tpu.memory_space<vmem>>, %arg17: memref<1x32xf32, #tpu.memory_space<vmem>>, %arg18: memref<1x32xf32, #tpu.memory_space<vmem>>, %arg19: memref<1x32xf32, #tpu.memory_space<vmem>>, %arg20: memref<32x96xf32, #tpu.memory_space<vmem>>, %arg21: memref<1x96xf32, #tpu.memory_space<vmem>>, %arg22: memref<32x32xf32, #tpu.memory_space<vmem>>, %arg23: memref<1x32xf32, #tpu.memory_space<vmem>>, %arg24: memref<32x64xf32, #tpu.memory_space<vmem>>, %arg25: memref<1x64xf32, #tpu.memory_space<vmem>>, %arg26: memref<64x32xf32, #tpu.memory_space<vmem>>, %arg27: memref<1x32xf32, #tpu.memory_space<vmem>>, %arg28: memref<1x32xf32, #tpu.memory_space<vmem>>, %arg29: memref<1x32xf32, #tpu.memory_space<vmem>>, %arg30: memref<1x32xf32, #tpu.memory_space<vmem>>, %arg31: memref<1x32xf32, #tpu.memory_space<vmem>>, %arg32: memref<32x128xf32, #tpu.memory_space<vmem>>, %arg33: memref<1x64xf32, #tpu.memory_space<vmem>>, %arg34: memref<64x64xf32, #tpu.memory_space<vmem>>, %arg35: memref<1x32xf32, #tpu.memory_space<vmem>>, %arg36: memref<32x32xf32, #tpu.memory_space<vmem>>, %arg37: memref<1x32xf32, #tpu.memory_space<vmem>>, %arg38: memref<32x3xf32, #tpu.memory_space<vmem>>, %arg39: memref<1x3xf32, #tpu.memory_space<vmem>>, %arg40: memref<1x1x3xf32, #tpu.memory_space<vmem>>) attributes {dimension_semantics = [#tpu.dimension_semantics<parallel>], iteration_bounds = array<i64: 2>, scalar_prefetch = 0 : i64, scratch_operands = 0 : i64, tpu.core_type = #tpu.core_type<tc>, window_params = [{transform_indices = @transform_0, window_bounds = array<i64: 1, 8, 24>}, {transform_indices = @transform_1, window_bounds = array<i64: 1, 8, 32>}, {transform_indices = @transform_2, window_bounds = array<i64: 1, 1, 8>}, {transform_indices = @transform_3, window_bounds = array<i64: 1, 8, 1>}, {transform_indices = @transform_4, window_bounds = array<i64: 1, 8, 1>}, {pipeline_mode = #tpu.pipeline_mode<synchronous>, transform_indices = @transform_5, window_bounds = array<i64: 24, 32>}, {pipeline_mode = #tpu.pipeline_mode<synchronous>, transform_indices = @transform_6, window_bounds = array<i64: 1, 32>}, {pipeline_mode = #tpu.pipeline_mode<synchronous>, transform_indices = @transform_7, window_bounds = array<i64: 32, 96>}, {pipeline_mode = #tpu.pipeline_mode<synchronous>, transform_indices = @transform_8, window_bounds = array<i64: 1, 96>}, {pipeline_mode = #tpu.pipeline_mode<synchronous>, transform_indices = @transform_9, window_bounds = array<i64: 32, 32>}, {pipeline_mode = #tpu.pipeline_mode<synchronous>, transform_indices = @transform_10, window_bounds = array<i64: 1, 32>}, {pipeline_mode = #tpu.pipeline_mode<synchronous>, transform_indices = @transform_11, window_bounds = array<i64: 32, 64>}, {pipeline_mode = #tpu.pipeline_mode<synchronous>, transform_indices = @transform_12, window_bounds = array<i64: 1, 64>}, {pipeline_mode = #tpu.pipeline_mode<synchronous>, transform_indices = @transform_13, window_bounds = array<i64: 64, 32>}, {pipeline_mode = #tpu.pipeline_mode<synchronous>, transform_indices = @transform_14, window_bounds = array<i64: 1, 32>}, {pipeline_mode = #tpu.pipeline_mode<synchronous>, transform_indices = @transform_15, window_bounds = array<i64: 1, 32>}, {pipeline_mode = #tpu.pipeline_mode<synchronous>, transform_indices = @transform_16, window_bounds = array<i64: 1, 32>}, {pipeline_mode = #tpu.pipeline_mode<synchronous>, transform_indices = @transform_17, window_bounds = array<i64: 1, 32>}, {pipeline_mode = #tpu.pipeline_mode<synchronous>, transform_indices = @transform_18, window_bounds = array<i64: 1, 32>}, {pipeline_mode = #tpu.pipeline_mode<synchronous>, transform_indices = @transform_19, window_bounds = array<i64: 32, 96>}, {pipeline_mode = #tpu.pipeline_mode<synchronous>, transform_indices = @transform_20, window_bounds = array<i64: 1, 96>}, {pipeline_mode = #tpu.pipeline_mode<synchronous>, transform_indices = @transform_21, window_bounds = array<i64: 32, 32>}, {pipeline_mode = #tpu.pipeline_mode<synchronous>, transform_indices = @transform_22, window_bounds = array<i64: 1, 32>}, {pipeline_mode = #tpu.pipeline_mode<synchronous>, transform_indices = @transform_23, window_bounds = array<i64: 32, 64>}, {pipeline_mode = #tpu.pipeline_mode<synchronous>, transform_indices = @transform_24, window_bounds = array<i64: 1, 64>}, {pipeline_mode = #tpu.pipeline_mode<synchronous>, transform_indices = @transform_25, window_bounds = array<i64: 64, 32>}, {pipeline_mode = #tpu.pipeline_mode<synchronous>, transform_indices = @transform_26, window_bounds = array<i64: 1, 32>}, {pipeline_mode = #tpu.pipeline_mode<synchronous>, transform_indices = @transform_27, window_bounds = array<i64: 1, 32>}, {pipeline_mode = #tpu.pipeline_mode<synchronous>, transform_indices = @transform_28, window_bounds = array<i64: 1, 32>}, {pipeline_mode = #tpu.pipeline_mode<synchronous>, transform_indices = @transform_29, window_bounds = array<i64: 1, 32>}, {pipeline_mode = #tpu.pipeline_mode<synchronous>, transform_indices = @transform_30, window_bounds = array<i64: 1, 32>}, {pipeline_mode = #tpu.pipeline_mode<synchronous>, transform_indices = @transform_31, window_bounds = array<i64: 32, 128>}, {pipeline_mode = #tpu.pipeline_mode<synchronous>, transform_indices = @transform_32, window_bounds = array<i64: 1, 64>}, {pipeline_mode = #tpu.pipeline_mode<synchronous>, transform_indices = @transform_33, window_bounds = array<i64: 64, 64>}, {pipeline_mode = #tpu.pipeline_mode<synchronous>, transform_indices = @transform_34, window_bounds = array<i64: 1, 32>}, {pipeline_mode = #tpu.pipeline_mode<synchronous>, transform_indices = @transform_35, window_bounds = array<i64: 32, 32>}, {pipeline_mode = #tpu.pipeline_mode<synchronous>, transform_indices = @transform_36, window_bounds = array<i64: 1, 32>}, {pipeline_mode = #tpu.pipeline_mode<synchronous>, transform_indices = @transform_37, window_bounds = array<i64: 32, 3>}, {pipeline_mode = #tpu.pipeline_mode<synchronous>, transform_indices = @transform_38, window_bounds = array<i64: 1, 3>}, {transform_indices = @transform_39, window_bounds = array<i64: 1, 1, 3>}]} {
    %c0 = arith.constant 0 : index
    %c0_0 = arith.constant 0 : index
    %c0_1 = arith.constant 0 : index
    %0 = vector.load %arg1[%c0, %c0_0, %c0_1] : memref<1x8x24xf32, #tpu.memory_space<vmem>>, vector<1x8x24xf32>
    %1 = vector.shape_cast %0 : vector<1x8x24xf32> to vector<8x24xf32>
    %c0_2 = arith.constant 0 : index
    %c0_3 = arith.constant 0 : index
    %c0_4 = arith.constant 0 : index
    %2 = vector.load %arg2[%c0_2, %c0_3, %c0_4] : memref<1x8x32xf32, #tpu.memory_space<vmem>>, vector<1x8x32xf32>
    %3 = vector.shape_cast %2 : vector<1x8x32xf32> to vector<8x32xf32>
    %c0_5 = arith.constant 0 : index
    %c0_6 = arith.constant 0 : index
    %c0_7 = arith.constant 0 : index
    %4 = vector.load %arg3[%c0_5, %c0_6, %c0_7] : memref<1x1x8xf32, #tpu.memory_space<vmem>>, vector<1x1x8xf32>
    %5 = vector.shape_cast %4 : vector<1x1x8xf32> to vector<1x8xf32>
    %c0_8 = arith.constant 0 : index
    %c0_9 = arith.constant 0 : index
    %c0_10 = arith.constant 0 : index
    %6 = vector.load %arg4[%c0_8, %c0_9, %c0_10] : memref<1x8x1xf32, #tpu.memory_space<vmem>>, vector<1x8x1xf32>
    %7 = vector.shape_cast %6 : vector<1x8x1xf32> to vector<8x1xf32>
    %c0_11 = arith.constant 0 : index
    %c0_12 = arith.constant 0 : index
    %c0_13 = arith.constant 0 : index
    %8 = vector.load %arg5[%c0_11, %c0_12, %c0_13] : memref<1x8x1xf32, #tpu.memory_space<vmem>>, vector<1x8x1xf32>
    %9 = vector.shape_cast %8 : vector<1x8x1xf32> to vector<8x1xf32>
    %c0_14 = arith.constant 0 : index
    %c0_15 = arith.constant 0 : index
    %10 = vector.load %arg6[%c0_14, %c0_15] : memref<24x32xf32, #tpu.memory_space<vmem>>, vector<24x32xf32>
    %c0_16 = arith.constant 0 : index
    %c0_17 = arith.constant 0 : index
    %11 = vector.load %arg7[%c0_16, %c0_17] : memref<1x32xf32, #tpu.memory_space<vmem>>, vector<1x32xf32>
    %cst = arith.constant dense<0.000000e+00> : vector<8x32xf32>
    %12 = tpu.matmul %1, %10, %cst {dimension_numbers = #tpu.dot_dimension_numbers<[1], [0], [0], [1], [0, 0, 1, 1], [], []>} : vector<8x24xf32>, vector<24x32xf32>, vector<8x32xf32> -> vector<8x32xf32>
    %13 = vector.broadcast %11 : vector<1x32xf32> to vector<8x32xf32>
    %14 = arith.addf %12, %13 : vector<8x32xf32>
    %15 = arith.addf %14, %3 : vector<8x32xf32>
    %c0_18 = arith.constant 0 : index
    %c0_19 = arith.constant 0 : index
    %16 = vector.load %arg8[%c0_18, %c0_19] : memref<32x96xf32, #tpu.memory_space<vmem>>, vector<32x96xf32>
    %c0_20 = arith.constant 0 : index
    %c0_21 = arith.constant 0 : index
    %17 = vector.load %arg9[%c0_20, %c0_21] : memref<1x96xf32, #tpu.memory_space<vmem>>, vector<1x96xf32>
    %c0_22 = arith.constant 0 : index
    %c0_23 = arith.constant 0 : index
    %18 = vector.load %arg10[%c0_22, %c0_23] : memref<32x32xf32, #tpu.memory_space<vmem>>, vector<32x32xf32>
    %c0_24 = arith.constant 0 : index
    %c0_25 = arith.constant 0 : index
    %19 = vector.load %arg11[%c0_24, %c0_25] : memref<1x32xf32, #tpu.memory_space<vmem>>, vector<1x32xf32>
    %c0_26 = arith.constant 0 : index
    %c0_27 = arith.constant 0 : index
    %20 = vector.load %arg12[%c0_26, %c0_27] : memref<32x64xf32, #tpu.memory_space<vmem>>, vector<32x64xf32>
    %c0_28 = arith.constant 0 : index
    %c0_29 = arith.constant 0 : index
    %21 = vector.load %arg13[%c0_28, %c0_29] : memref<1x64xf32, #tpu.memory_space<vmem>>, vector<1x64xf32>
    %c0_30 = arith.constant 0 : index
    %c0_31 = arith.constant 0 : index
    %22 = vector.load %arg14[%c0_30, %c0_31] : memref<64x32xf32, #tpu.memory_space<vmem>>, vector<64x32xf32>
    %c0_32 = arith.constant 0 : index
    %c0_33 = arith.constant 0 : index
    %23 = vector.load %arg15[%c0_32, %c0_33] : memref<1x32xf32, #tpu.memory_space<vmem>>, vector<1x32xf32>
    %c0_34 = arith.constant 0 : index
    %c0_35 = arith.constant 0 : index
    %24 = vector.load %arg16[%c0_34, %c0_35] : memref<1x32xf32, #tpu.memory_space<vmem>>, vector<1x32xf32>
    %c0_36 = arith.constant 0 : index
    %c0_37 = arith.constant 0 : index
    %25 = vector.load %arg17[%c0_36, %c0_37] : memref<1x32xf32, #tpu.memory_space<vmem>>, vector<1x32xf32>
    %c0_38 = arith.constant 0 : index
    %c0_39 = arith.constant 0 : index
    %26 = vector.load %arg18[%c0_38, %c0_39] : memref<1x32xf32, #tpu.memory_space<vmem>>, vector<1x32xf32>
    %c0_40 = arith.constant 0 : index
    %c0_41 = arith.constant 0 : index
    %27 = vector.load %arg19[%c0_40, %c0_41] : memref<1x32xf32, #tpu.memory_space<vmem>>, vector<1x32xf32>
    %cst_42 = arith.constant dense<0.000000e+00> : vector<8x96xf32>
    %28 = tpu.matmul %15, %16, %cst_42 {dimension_numbers = #tpu.dot_dimension_numbers<[1], [0], [0], [1], [0, 0, 1, 1], [], []>} : vector<8x32xf32>, vector<32x96xf32>, vector<8x96xf32> -> vector<8x96xf32>
    %29 = vector.broadcast %17 : vector<1x96xf32> to vector<8x96xf32>
    %30 = arith.addf %28, %29 : vector<8x96xf32>
    %cst_43 = arith.constant 0.000000e+00 : f32
    %31 = vector.broadcast %cst_43 : f32 to vector<8x32xf32>
    %32 = vector.extract_strided_slice %30 {offsets = [0, 0], sizes = [8, 8], strides = [1, 1]} : vector<8x96xf32> to vector<8x8xf32>
    %33 = vector.extract_strided_slice %30 {offsets = [0, 32], sizes = [8, 8], strides = [1, 1]} : vector<8x96xf32> to vector<8x8xf32>
    %34 = vector.extract_strided_slice %30 {offsets = [0, 64], sizes = [8, 8], strides = [1, 1]} : vector<8x96xf32> to vector<8x8xf32>
    %cst_44 = arith.constant dense<0.000000e+00> : vector<8x8xf32>
    %35 = tpu.matmul %32, %33, %cst_44 {dimension_numbers = #tpu.dot_dimension_numbers<[1], [1], [0], [0], [0, 0, 1, 0], [], []>} : vector<8x8xf32>, vector<8x8xf32>, vector<8x8xf32> -> vector<8x8xf32>
    %cst_45 = arith.constant 0.353553385 : f32
    %36 = vector.broadcast %cst_45 : f32 to vector<8x8xf32>
    %37 = arith.mulf %35, %36 : vector<8x8xf32>
    %cst_46 = arith.constant -1.000000e+09 : f32
    %38 = vector.broadcast %cst_46 : f32 to vector<1x8xf32>
    %39 = arith.mulf %5, %38 : vector<1x8xf32>
    %40 = vector.broadcast %39 : vector<1x8xf32> to vector<8x8xf32>
    %41 = arith.addf %37, %40 : vector<8x8xf32>
    %cst_47 = arith.constant dense<0xFF800000> : vector<8xf32>
    %42 = vector.multi_reduction <maximumf>, %41, %cst_47 [1] : vector<8x8xf32> to vector<8xf32>
    %43 = vector.shape_cast %42 : vector<8xf32> to vector<8x1xf32>
    %44 = vector.broadcast %43 : vector<8x1xf32> to vector<8x8xf32>
    %45 = arith.subf %41, %44 : vector<8x8xf32>
    %46 = math.exp %45 : vector<8x8xf32>
    %cst_48 = arith.constant dense<0.000000e+00> : vector<8xf32>
    %47 = vector.multi_reduction <add>, %46, %cst_48 [1] : vector<8x8xf32> to vector<8xf32>
    %48 = vector.shape_cast %47 : vector<8xf32> to vector<8x1xf32>
    %49 = tpu.reciprocal %48 {approx = true} : vector<8x1xf32> -> vector<8x1xf32>
    %50 = vector.broadcast %49 : vector<8x1xf32> to vector<8x8xf32>
    %51 = arith.mulf %46, %50 : vector<8x8xf32>
    %cst_49 = arith.constant dense<0.000000e+00> : vector<8x8xf32>
    %52 = tpu.matmul %51, %34, %cst_49 {dimension_numbers = #tpu.dot_dimension_numbers<[1], [0], [0], [1], [0, 0, 1, 1], [], []>} : vector<8x8xf32>, vector<8x8xf32>, vector<8x8xf32> -> vector<8x8xf32>
    %53 = vector.extract_strided_slice %18 {offsets = [0, 0], sizes = [8, 32], strides = [1, 1]} : vector<32x32xf32> to vector<8x32xf32>
    %cst_50 = arith.constant dense<0.000000e+00> : vector<8x32xf32>
    %54 = tpu.matmul %52, %53, %cst_50 {dimension_numbers = #tpu.dot_dimension_numbers<[1], [0], [0], [1], [0, 0, 1, 1], [], []>} : vector<8x8xf32>, vector<8x32xf32>, vector<8x32xf32> -> vector<8x32xf32>
    %55 = arith.addf %31, %54 : vector<8x32xf32>
    %56 = vector.extract_strided_slice %30 {offsets = [0, 8], sizes = [8, 8], strides = [1, 1]} : vector<8x96xf32> to vector<8x8xf32>
    %57 = vector.extract_strided_slice %30 {offsets = [0, 40], sizes = [8, 8], strides = [1, 1]} : vector<8x96xf32> to vector<8x8xf32>
    %58 = vector.extract_strided_slice %30 {offsets = [0, 72], sizes = [8, 8], strides = [1, 1]} : vector<8x96xf32> to vector<8x8xf32>
    %cst_51 = arith.constant dense<0.000000e+00> : vector<8x8xf32>
    %59 = tpu.matmul %56, %57, %cst_51 {dimension_numbers = #tpu.dot_dimension_numbers<[1], [1], [0], [0], [0, 0, 1, 0], [], []>} : vector<8x8xf32>, vector<8x8xf32>, vector<8x8xf32> -> vector<8x8xf32>
    %cst_52 = arith.constant 0.353553385 : f32
    %60 = vector.broadcast %cst_52 : f32 to vector<8x8xf32>
    %61 = arith.mulf %59, %60 : vector<8x8xf32>
    %cst_53 = arith.constant -1.000000e+09 : f32
    %62 = vector.broadcast %cst_53 : f32 to vector<1x8xf32>
    %63 = arith.mulf %5, %62 : vector<1x8xf32>
    %64 = vector.broadcast %63 : vector<1x8xf32> to vector<8x8xf32>
    %65 = arith.addf %61, %64 : vector<8x8xf32>
    %cst_54 = arith.constant dense<0xFF800000> : vector<8xf32>
    %66 = vector.multi_reduction <maximumf>, %65, %cst_54 [1] : vector<8x8xf32> to vector<8xf32>
    %67 = vector.shape_cast %66 : vector<8xf32> to vector<8x1xf32>
    %68 = vector.broadcast %67 : vector<8x1xf32> to vector<8x8xf32>
    %69 = arith.subf %65, %68 : vector<8x8xf32>
    %70 = math.exp %69 : vector<8x8xf32>
    %cst_55 = arith.constant dense<0.000000e+00> : vector<8xf32>
    %71 = vector.multi_reduction <add>, %70, %cst_55 [1] : vector<8x8xf32> to vector<8xf32>
    %72 = vector.shape_cast %71 : vector<8xf32> to vector<8x1xf32>
    %73 = tpu.reciprocal %72 {approx = true} : vector<8x1xf32> -> vector<8x1xf32>
    %74 = vector.broadcast %73 : vector<8x1xf32> to vector<8x8xf32>
    %75 = arith.mulf %70, %74 : vector<8x8xf32>
    %cst_56 = arith.constant dense<0.000000e+00> : vector<8x8xf32>
    %76 = tpu.matmul %75, %58, %cst_56 {dimension_numbers = #tpu.dot_dimension_numbers<[1], [0], [0], [1], [0, 0, 1, 1], [], []>} : vector<8x8xf32>, vector<8x8xf32>, vector<8x8xf32> -> vector<8x8xf32>
    %77 = vector.extract_strided_slice %18 {offsets = [8, 0], sizes = [8, 32], strides = [1, 1]} : vector<32x32xf32> to vector<8x32xf32>
    %cst_57 = arith.constant dense<0.000000e+00> : vector<8x32xf32>
    %78 = tpu.matmul %76, %77, %cst_57 {dimension_numbers = #tpu.dot_dimension_numbers<[1], [0], [0], [1], [0, 0, 1, 1], [], []>} : vector<8x8xf32>, vector<8x32xf32>, vector<8x32xf32> -> vector<8x32xf32>
    %79 = arith.addf %55, %78 : vector<8x32xf32>
    %80 = vector.extract_strided_slice %30 {offsets = [0, 16], sizes = [8, 8], strides = [1, 1]} : vector<8x96xf32> to vector<8x8xf32>
    %81 = vector.extract_strided_slice %30 {offsets = [0, 48], sizes = [8, 8], strides = [1, 1]} : vector<8x96xf32> to vector<8x8xf32>
    %82 = vector.extract_strided_slice %30 {offsets = [0, 80], sizes = [8, 8], strides = [1, 1]} : vector<8x96xf32> to vector<8x8xf32>
    %cst_58 = arith.constant dense<0.000000e+00> : vector<8x8xf32>
    %83 = tpu.matmul %80, %81, %cst_58 {dimension_numbers = #tpu.dot_dimension_numbers<[1], [1], [0], [0], [0, 0, 1, 0], [], []>} : vector<8x8xf32>, vector<8x8xf32>, vector<8x8xf32> -> vector<8x8xf32>
    %cst_59 = arith.constant 0.353553385 : f32
    %84 = vector.broadcast %cst_59 : f32 to vector<8x8xf32>
    %85 = arith.mulf %83, %84 : vector<8x8xf32>
    %cst_60 = arith.constant -1.000000e+09 : f32
    %86 = vector.broadcast %cst_60 : f32 to vector<1x8xf32>
    %87 = arith.mulf %5, %86 : vector<1x8xf32>
    %88 = vector.broadcast %87 : vector<1x8xf32> to vector<8x8xf32>
    %89 = arith.addf %85, %88 : vector<8x8xf32>
    %cst_61 = arith.constant dense<0xFF800000> : vector<8xf32>
    %90 = vector.multi_reduction <maximumf>, %89, %cst_61 [1] : vector<8x8xf32> to vector<8xf32>
    %91 = vector.shape_cast %90 : vector<8xf32> to vector<8x1xf32>
    %92 = vector.broadcast %91 : vector<8x1xf32> to vector<8x8xf32>
    %93 = arith.subf %89, %92 : vector<8x8xf32>
    %94 = math.exp %93 : vector<8x8xf32>
    %cst_62 = arith.constant dense<0.000000e+00> : vector<8xf32>
    %95 = vector.multi_reduction <add>, %94, %cst_62 [1] : vector<8x8xf32> to vector<8xf32>
    %96 = vector.shape_cast %95 : vector<8xf32> to vector<8x1xf32>
    %97 = tpu.reciprocal %96 {approx = true} : vector<8x1xf32> -> vector<8x1xf32>
    %98 = vector.broadcast %97 : vector<8x1xf32> to vector<8x8xf32>
    %99 = arith.mulf %94, %98 : vector<8x8xf32>
    %cst_63 = arith.constant dense<0.000000e+00> : vector<8x8xf32>
    %100 = tpu.matmul %99, %82, %cst_63 {dimension_numbers = #tpu.dot_dimension_numbers<[1], [0], [0], [1], [0, 0, 1, 1], [], []>} : vector<8x8xf32>, vector<8x8xf32>, vector<8x8xf32> -> vector<8x8xf32>
    %101 = vector.extract_strided_slice %18 {offsets = [16, 0], sizes = [8, 32], strides = [1, 1]} : vector<32x32xf32> to vector<8x32xf32>
    %cst_64 = arith.constant dense<0.000000e+00> : vector<8x32xf32>
    %102 = tpu.matmul %100, %101, %cst_64 {dimension_numbers = #tpu.dot_dimension_numbers<[1], [0], [0], [1], [0, 0, 1, 1], [], []>} : vector<8x8xf32>, vector<8x32xf32>, vector<8x32xf32> -> vector<8x32xf32>
    %103 = arith.addf %79, %102 : vector<8x32xf32>
    %104 = vector.extract_strided_slice %30 {offsets = [0, 24], sizes = [8, 8], strides = [1, 1]} : vector<8x96xf32> to vector<8x8xf32>
    %105 = vector.extract_strided_slice %30 {offsets = [0, 56], sizes = [8, 8], strides = [1, 1]} : vector<8x96xf32> to vector<8x8xf32>
    %106 = vector.extract_strided_slice %30 {offsets = [0, 88], sizes = [8, 8], strides = [1, 1]} : vector<8x96xf32> to vector<8x8xf32>
    %cst_65 = arith.constant dense<0.000000e+00> : vector<8x8xf32>
    %107 = tpu.matmul %104, %105, %cst_65 {dimension_numbers = #tpu.dot_dimension_numbers<[1], [1], [0], [0], [0, 0, 1, 0], [], []>} : vector<8x8xf32>, vector<8x8xf32>, vector<8x8xf32> -> vector<8x8xf32>
    %cst_66 = arith.constant 0.353553385 : f32
    %108 = vector.broadcast %cst_66 : f32 to vector<8x8xf32>
    %109 = arith.mulf %107, %108 : vector<8x8xf32>
    %cst_67 = arith.constant -1.000000e+09 : f32
    %110 = vector.broadcast %cst_67 : f32 to vector<1x8xf32>
    %111 = arith.mulf %5, %110 : vector<1x8xf32>
    %112 = vector.broadcast %111 : vector<1x8xf32> to vector<8x8xf32>
    %113 = arith.addf %109, %112 : vector<8x8xf32>
    %cst_68 = arith.constant dense<0xFF800000> : vector<8xf32>
    %114 = vector.multi_reduction <maximumf>, %113, %cst_68 [1] : vector<8x8xf32> to vector<8xf32>
    %115 = vector.shape_cast %114 : vector<8xf32> to vector<8x1xf32>
    %116 = vector.broadcast %115 : vector<8x1xf32> to vector<8x8xf32>
    %117 = arith.subf %113, %116 : vector<8x8xf32>
    %118 = math.exp %117 : vector<8x8xf32>
    %cst_69 = arith.constant dense<0.000000e+00> : vector<8xf32>
    %119 = vector.multi_reduction <add>, %118, %cst_69 [1] : vector<8x8xf32> to vector<8xf32>
    %120 = vector.shape_cast %119 : vector<8xf32> to vector<8x1xf32>
    %121 = tpu.reciprocal %120 {approx = true} : vector<8x1xf32> -> vector<8x1xf32>
    %122 = vector.broadcast %121 : vector<8x1xf32> to vector<8x8xf32>
    %123 = arith.mulf %118, %122 : vector<8x8xf32>
    %cst_70 = arith.constant dense<0.000000e+00> : vector<8x8xf32>
    %124 = tpu.matmul %123, %106, %cst_70 {dimension_numbers = #tpu.dot_dimension_numbers<[1], [0], [0], [1], [0, 0, 1, 1], [], []>} : vector<8x8xf32>, vector<8x8xf32>, vector<8x8xf32> -> vector<8x8xf32>
    %125 = vector.extract_strided_slice %18 {offsets = [24, 0], sizes = [8, 32], strides = [1, 1]} : vector<32x32xf32> to vector<8x32xf32>
    %cst_71 = arith.constant dense<0.000000e+00> : vector<8x32xf32>
    %126 = tpu.matmul %124, %125, %cst_71 {dimension_numbers = #tpu.dot_dimension_numbers<[1], [0], [0], [1], [0, 0, 1, 1], [], []>} : vector<8x8xf32>, vector<8x32xf32>, vector<8x32xf32> -> vector<8x32xf32>
    %127 = arith.addf %103, %126 : vector<8x32xf32>
    %128 = vector.broadcast %19 : vector<1x32xf32> to vector<8x32xf32>
    %129 = arith.addf %127, %128 : vector<8x32xf32>
    %130 = arith.addf %15, %129 : vector<8x32xf32>
    %cst_72 = arith.constant dense<0.000000e+00> : vector<8xf32>
    %131 = vector.multi_reduction <add>, %130, %cst_72 [1] : vector<8x32xf32> to vector<8xf32>
    %132 = vector.shape_cast %131 : vector<8xf32> to vector<8x1xf32>
    %cst_73 = arith.constant 3.200000e+01 : f32
    %133 = vector.broadcast %cst_73 : f32 to vector<8x1xf32>
    %134 = arith.divf %132, %133 : vector<8x1xf32>
    %135 = vector.broadcast %134 : vector<8x1xf32> to vector<8x32xf32>
    %136 = arith.subf %130, %135 : vector<8x32xf32>
    %137 = arith.mulf %136, %136 : vector<8x32xf32>
    %cst_74 = arith.constant dense<0.000000e+00> : vector<8xf32>
    %138 = vector.multi_reduction <add>, %137, %cst_74 [1] : vector<8x32xf32> to vector<8xf32>
    %139 = vector.shape_cast %138 : vector<8xf32> to vector<8x1xf32>
    %cst_75 = arith.constant 3.200000e+01 : f32
    %140 = vector.broadcast %cst_75 : f32 to vector<8x1xf32>
    %141 = arith.divf %139, %140 : vector<8x1xf32>
    %142 = vector.broadcast %134 : vector<8x1xf32> to vector<8x32xf32>
    %143 = arith.subf %130, %142 : vector<8x32xf32>
    %cst_76 = arith.constant 9.99999974E-6 : f32
    %144 = vector.broadcast %cst_76 : f32 to vector<8x1xf32>
    %145 = arith.addf %141, %144 : vector<8x1xf32>
    %146 = math.rsqrt %145 : vector<8x1xf32>
    %147 = vector.broadcast %146 : vector<8x1xf32> to vector<8x32xf32>
    %148 = arith.mulf %143, %147 : vector<8x32xf32>
    %149 = vector.broadcast %24 : vector<1x32xf32> to vector<8x32xf32>
    %150 = arith.mulf %148, %149 : vector<8x32xf32>
    %151 = vector.broadcast %25 : vector<1x32xf32> to vector<8x32xf32>
    %152 = arith.addf %150, %151 : vector<8x32xf32>
    %cst_77 = arith.constant dense<0.000000e+00> : vector<8x64xf32>
    %153 = tpu.matmul %152, %20, %cst_77 {dimension_numbers = #tpu.dot_dimension_numbers<[1], [0], [0], [1], [0, 0, 1, 1], [], []>} : vector<8x32xf32>, vector<32x64xf32>, vector<8x64xf32> -> vector<8x64xf32>
    %154 = vector.broadcast %21 : vector<1x64xf32> to vector<8x64xf32>
    %155 = arith.addf %153, %154 : vector<8x64xf32>
    %cst_78 = arith.constant 0.000000e+00 : f32
    %156 = vector.broadcast %cst_78 : f32 to vector<8x64xf32>
    %157 = arith.maximumf %155, %156 : vector<8x64xf32>
    %cst_79 = arith.constant dense<0.000000e+00> : vector<8x32xf32>
    %158 = tpu.matmul %157, %22, %cst_79 {dimension_numbers = #tpu.dot_dimension_numbers<[1], [0], [0], [1], [0, 0, 1, 1], [], []>} : vector<8x64xf32>, vector<64x32xf32>, vector<8x32xf32> -> vector<8x32xf32>
    %159 = vector.broadcast %23 : vector<1x32xf32> to vector<8x32xf32>
    %160 = arith.addf %158, %159 : vector<8x32xf32>
    %161 = arith.addf %152, %160 : vector<8x32xf32>
    %cst_80 = arith.constant dense<0.000000e+00> : vector<8xf32>
    %162 = vector.multi_reduction <add>, %161, %cst_80 [1] : vector<8x32xf32> to vector<8xf32>
    %163 = vector.shape_cast %162 : vector<8xf32> to vector<8x1xf32>
    %cst_81 = arith.constant 3.200000e+01 : f32
    %164 = vector.broadcast %cst_81 : f32 to vector<8x1xf32>
    %165 = arith.divf %163, %164 : vector<8x1xf32>
    %166 = vector.broadcast %165 : vector<8x1xf32> to vector<8x32xf32>
    %167 = arith.subf %161, %166 : vector<8x32xf32>
    %168 = arith.mulf %167, %167 : vector<8x32xf32>
    %cst_82 = arith.constant dense<0.000000e+00> : vector<8xf32>
    %169 = vector.multi_reduction <add>, %168, %cst_82 [1] : vector<8x32xf32> to vector<8xf32>
    %170 = vector.shape_cast %169 : vector<8xf32> to vector<8x1xf32>
    %cst_83 = arith.constant 3.200000e+01 : f32
    %171 = vector.broadcast %cst_83 : f32 to vector<8x1xf32>
    %172 = arith.divf %170, %171 : vector<8x1xf32>
    %173 = vector.broadcast %165 : vector<8x1xf32> to vector<8x32xf32>
    %174 = arith.subf %161, %173 : vector<8x32xf32>
    %cst_84 = arith.constant 9.99999974E-6 : f32
    %175 = vector.broadcast %cst_84 : f32 to vector<8x1xf32>
    %176 = arith.addf %172, %175 : vector<8x1xf32>
    %177 = math.rsqrt %176 : vector<8x1xf32>
    %178 = vector.broadcast %177 : vector<8x1xf32> to vector<8x32xf32>
    %179 = arith.mulf %174, %178 : vector<8x32xf32>
    %180 = vector.broadcast %26 : vector<1x32xf32> to vector<8x32xf32>
    %181 = arith.mulf %179, %180 : vector<8x32xf32>
    %182 = vector.broadcast %27 : vector<1x32xf32> to vector<8x32xf32>
    %183 = arith.addf %181, %182 : vector<8x32xf32>
    %c0_85 = arith.constant 0 : index
    %c0_86 = arith.constant 0 : index
    %184 = vector.load %arg20[%c0_85, %c0_86] : memref<32x96xf32, #tpu.memory_space<vmem>>, vector<32x96xf32>
    %c0_87 = arith.constant 0 : index
    %c0_88 = arith.constant 0 : index
    %185 = vector.load %arg21[%c0_87, %c0_88] : memref<1x96xf32, #tpu.memory_space<vmem>>, vector<1x96xf32>
    %c0_89 = arith.constant 0 : index
    %c0_90 = arith.constant 0 : index
    %186 = vector.load %arg22[%c0_89, %c0_90] : memref<32x32xf32, #tpu.memory_space<vmem>>, vector<32x32xf32>
    %c0_91 = arith.constant 0 : index
    %c0_92 = arith.constant 0 : index
    %187 = vector.load %arg23[%c0_91, %c0_92] : memref<1x32xf32, #tpu.memory_space<vmem>>, vector<1x32xf32>
    %c0_93 = arith.constant 0 : index
    %c0_94 = arith.constant 0 : index
    %188 = vector.load %arg24[%c0_93, %c0_94] : memref<32x64xf32, #tpu.memory_space<vmem>>, vector<32x64xf32>
    %c0_95 = arith.constant 0 : index
    %c0_96 = arith.constant 0 : index
    %189 = vector.load %arg25[%c0_95, %c0_96] : memref<1x64xf32, #tpu.memory_space<vmem>>, vector<1x64xf32>
    %c0_97 = arith.constant 0 : index
    %c0_98 = arith.constant 0 : index
    %190 = vector.load %arg26[%c0_97, %c0_98] : memref<64x32xf32, #tpu.memory_space<vmem>>, vector<64x32xf32>
    %c0_99 = arith.constant 0 : index
    %c0_100 = arith.constant 0 : index
    %191 = vector.load %arg27[%c0_99, %c0_100] : memref<1x32xf32, #tpu.memory_space<vmem>>, vector<1x32xf32>
    %c0_101 = arith.constant 0 : index
    %c0_102 = arith.constant 0 : index
    %192 = vector.load %arg28[%c0_101, %c0_102] : memref<1x32xf32, #tpu.memory_space<vmem>>, vector<1x32xf32>
    %c0_103 = arith.constant 0 : index
    %c0_104 = arith.constant 0 : index
    %193 = vector.load %arg29[%c0_103, %c0_104] : memref<1x32xf32, #tpu.memory_space<vmem>>, vector<1x32xf32>
    %c0_105 = arith.constant 0 : index
    %c0_106 = arith.constant 0 : index
    %194 = vector.load %arg30[%c0_105, %c0_106] : memref<1x32xf32, #tpu.memory_space<vmem>>, vector<1x32xf32>
    %c0_107 = arith.constant 0 : index
    %c0_108 = arith.constant 0 : index
    %195 = vector.load %arg31[%c0_107, %c0_108] : memref<1x32xf32, #tpu.memory_space<vmem>>, vector<1x32xf32>
    %cst_109 = arith.constant dense<0.000000e+00> : vector<8x96xf32>
    %196 = tpu.matmul %183, %184, %cst_109 {dimension_numbers = #tpu.dot_dimension_numbers<[1], [0], [0], [1], [0, 0, 1, 1], [], []>} : vector<8x32xf32>, vector<32x96xf32>, vector<8x96xf32> -> vector<8x96xf32>
    %197 = vector.broadcast %185 : vector<1x96xf32> to vector<8x96xf32>
    %198 = arith.addf %196, %197 : vector<8x96xf32>
    %cst_110 = arith.constant 0.000000e+00 : f32
    %199 = vector.broadcast %cst_110 : f32 to vector<8x32xf32>
    %200 = vector.extract_strided_slice %198 {offsets = [0, 0], sizes = [8, 8], strides = [1, 1]} : vector<8x96xf32> to vector<8x8xf32>
    %201 = vector.extract_strided_slice %198 {offsets = [0, 32], sizes = [8, 8], strides = [1, 1]} : vector<8x96xf32> to vector<8x8xf32>
    %202 = vector.extract_strided_slice %198 {offsets = [0, 64], sizes = [8, 8], strides = [1, 1]} : vector<8x96xf32> to vector<8x8xf32>
    %cst_111 = arith.constant dense<0.000000e+00> : vector<8x8xf32>
    %203 = tpu.matmul %200, %201, %cst_111 {dimension_numbers = #tpu.dot_dimension_numbers<[1], [1], [0], [0], [0, 0, 1, 0], [], []>} : vector<8x8xf32>, vector<8x8xf32>, vector<8x8xf32> -> vector<8x8xf32>
    %cst_112 = arith.constant 0.353553385 : f32
    %204 = vector.broadcast %cst_112 : f32 to vector<8x8xf32>
    %205 = arith.mulf %203, %204 : vector<8x8xf32>
    %cst_113 = arith.constant -1.000000e+09 : f32
    %206 = vector.broadcast %cst_113 : f32 to vector<1x8xf32>
    %207 = arith.mulf %5, %206 : vector<1x8xf32>
    %208 = vector.broadcast %207 : vector<1x8xf32> to vector<8x8xf32>
    %209 = arith.addf %205, %208 : vector<8x8xf32>
    %cst_114 = arith.constant dense<0xFF800000> : vector<8xf32>
    %210 = vector.multi_reduction <maximumf>, %209, %cst_114 [1] : vector<8x8xf32> to vector<8xf32>
    %211 = vector.shape_cast %210 : vector<8xf32> to vector<8x1xf32>
    %212 = vector.broadcast %211 : vector<8x1xf32> to vector<8x8xf32>
    %213 = arith.subf %209, %212 : vector<8x8xf32>
    %214 = math.exp %213 : vector<8x8xf32>
    %cst_115 = arith.constant dense<0.000000e+00> : vector<8xf32>
    %215 = vector.multi_reduction <add>, %214, %cst_115 [1] : vector<8x8xf32> to vector<8xf32>
    %216 = vector.shape_cast %215 : vector<8xf32> to vector<8x1xf32>
    %217 = tpu.reciprocal %216 {approx = true} : vector<8x1xf32> -> vector<8x1xf32>
    %218 = vector.broadcast %217 : vector<8x1xf32> to vector<8x8xf32>
    %219 = arith.mulf %214, %218 : vector<8x8xf32>
    %cst_116 = arith.constant dense<0.000000e+00> : vector<8x8xf32>
    %220 = tpu.matmul %219, %202, %cst_116 {dimension_numbers = #tpu.dot_dimension_numbers<[1], [0], [0], [1], [0, 0, 1, 1], [], []>} : vector<8x8xf32>, vector<8x8xf32>, vector<8x8xf32> -> vector<8x8xf32>
    %221 = vector.extract_strided_slice %186 {offsets = [0, 0], sizes = [8, 32], strides = [1, 1]} : vector<32x32xf32> to vector<8x32xf32>
    %cst_117 = arith.constant dense<0.000000e+00> : vector<8x32xf32>
    %222 = tpu.matmul %220, %221, %cst_117 {dimension_numbers = #tpu.dot_dimension_numbers<[1], [0], [0], [1], [0, 0, 1, 1], [], []>} : vector<8x8xf32>, vector<8x32xf32>, vector<8x32xf32> -> vector<8x32xf32>
    %223 = arith.addf %199, %222 : vector<8x32xf32>
    %224 = vector.extract_strided_slice %198 {offsets = [0, 8], sizes = [8, 8], strides = [1, 1]} : vector<8x96xf32> to vector<8x8xf32>
    %225 = vector.extract_strided_slice %198 {offsets = [0, 40], sizes = [8, 8], strides = [1, 1]} : vector<8x96xf32> to vector<8x8xf32>
    %226 = vector.extract_strided_slice %198 {offsets = [0, 72], sizes = [8, 8], strides = [1, 1]} : vector<8x96xf32> to vector<8x8xf32>
    %cst_118 = arith.constant dense<0.000000e+00> : vector<8x8xf32>
    %227 = tpu.matmul %224, %225, %cst_118 {dimension_numbers = #tpu.dot_dimension_numbers<[1], [1], [0], [0], [0, 0, 1, 0], [], []>} : vector<8x8xf32>, vector<8x8xf32>, vector<8x8xf32> -> vector<8x8xf32>
    %cst_119 = arith.constant 0.353553385 : f32
    %228 = vector.broadcast %cst_119 : f32 to vector<8x8xf32>
    %229 = arith.mulf %227, %228 : vector<8x8xf32>
    %cst_120 = arith.constant -1.000000e+09 : f32
    %230 = vector.broadcast %cst_120 : f32 to vector<1x8xf32>
    %231 = arith.mulf %5, %230 : vector<1x8xf32>
    %232 = vector.broadcast %231 : vector<1x8xf32> to vector<8x8xf32>
    %233 = arith.addf %229, %232 : vector<8x8xf32>
    %cst_121 = arith.constant dense<0xFF800000> : vector<8xf32>
    %234 = vector.multi_reduction <maximumf>, %233, %cst_121 [1] : vector<8x8xf32> to vector<8xf32>
    %235 = vector.shape_cast %234 : vector<8xf32> to vector<8x1xf32>
    %236 = vector.broadcast %235 : vector<8x1xf32> to vector<8x8xf32>
    %237 = arith.subf %233, %236 : vector<8x8xf32>
    %238 = math.exp %237 : vector<8x8xf32>
    %cst_122 = arith.constant dense<0.000000e+00> : vector<8xf32>
    %239 = vector.multi_reduction <add>, %238, %cst_122 [1] : vector<8x8xf32> to vector<8xf32>
    %240 = vector.shape_cast %239 : vector<8xf32> to vector<8x1xf32>
    %241 = tpu.reciprocal %240 {approx = true} : vector<8x1xf32> -> vector<8x1xf32>
    %242 = vector.broadcast %241 : vector<8x1xf32> to vector<8x8xf32>
    %243 = arith.mulf %238, %242 : vector<8x8xf32>
    %cst_123 = arith.constant dense<0.000000e+00> : vector<8x8xf32>
    %244 = tpu.matmul %243, %226, %cst_123 {dimension_numbers = #tpu.dot_dimension_numbers<[1], [0], [0], [1], [0, 0, 1, 1], [], []>} : vector<8x8xf32>, vector<8x8xf32>, vector<8x8xf32> -> vector<8x8xf32>
    %245 = vector.extract_strided_slice %186 {offsets = [8, 0], sizes = [8, 32], strides = [1, 1]} : vector<32x32xf32> to vector<8x32xf32>
    %cst_124 = arith.constant dense<0.000000e+00> : vector<8x32xf32>
    %246 = tpu.matmul %244, %245, %cst_124 {dimension_numbers = #tpu.dot_dimension_numbers<[1], [0], [0], [1], [0, 0, 1, 1], [], []>} : vector<8x8xf32>, vector<8x32xf32>, vector<8x32xf32> -> vector<8x32xf32>
    %247 = arith.addf %223, %246 : vector<8x32xf32>
    %248 = vector.extract_strided_slice %198 {offsets = [0, 16], sizes = [8, 8], strides = [1, 1]} : vector<8x96xf32> to vector<8x8xf32>
    %249 = vector.extract_strided_slice %198 {offsets = [0, 48], sizes = [8, 8], strides = [1, 1]} : vector<8x96xf32> to vector<8x8xf32>
    %250 = vector.extract_strided_slice %198 {offsets = [0, 80], sizes = [8, 8], strides = [1, 1]} : vector<8x96xf32> to vector<8x8xf32>
    %cst_125 = arith.constant dense<0.000000e+00> : vector<8x8xf32>
    %251 = tpu.matmul %248, %249, %cst_125 {dimension_numbers = #tpu.dot_dimension_numbers<[1], [1], [0], [0], [0, 0, 1, 0], [], []>} : vector<8x8xf32>, vector<8x8xf32>, vector<8x8xf32> -> vector<8x8xf32>
    %cst_126 = arith.constant 0.353553385 : f32
    %252 = vector.broadcast %cst_126 : f32 to vector<8x8xf32>
    %253 = arith.mulf %251, %252 : vector<8x8xf32>
    %cst_127 = arith.constant -1.000000e+09 : f32
    %254 = vector.broadcast %cst_127 : f32 to vector<1x8xf32>
    %255 = arith.mulf %5, %254 : vector<1x8xf32>
    %256 = vector.broadcast %255 : vector<1x8xf32> to vector<8x8xf32>
    %257 = arith.addf %253, %256 : vector<8x8xf32>
    %cst_128 = arith.constant dense<0xFF800000> : vector<8xf32>
    %258 = vector.multi_reduction <maximumf>, %257, %cst_128 [1] : vector<8x8xf32> to vector<8xf32>
    %259 = vector.shape_cast %258 : vector<8xf32> to vector<8x1xf32>
    %260 = vector.broadcast %259 : vector<8x1xf32> to vector<8x8xf32>
    %261 = arith.subf %257, %260 : vector<8x8xf32>
    %262 = math.exp %261 : vector<8x8xf32>
    %cst_129 = arith.constant dense<0.000000e+00> : vector<8xf32>
    %263 = vector.multi_reduction <add>, %262, %cst_129 [1] : vector<8x8xf32> to vector<8xf32>
    %264 = vector.shape_cast %263 : vector<8xf32> to vector<8x1xf32>
    %265 = tpu.reciprocal %264 {approx = true} : vector<8x1xf32> -> vector<8x1xf32>
    %266 = vector.broadcast %265 : vector<8x1xf32> to vector<8x8xf32>
    %267 = arith.mulf %262, %266 : vector<8x8xf32>
    %cst_130 = arith.constant dense<0.000000e+00> : vector<8x8xf32>
    %268 = tpu.matmul %267, %250, %cst_130 {dimension_numbers = #tpu.dot_dimension_numbers<[1], [0], [0], [1], [0, 0, 1, 1], [], []>} : vector<8x8xf32>, vector<8x8xf32>, vector<8x8xf32> -> vector<8x8xf32>
    %269 = vector.extract_strided_slice %186 {offsets = [16, 0], sizes = [8, 32], strides = [1, 1]} : vector<32x32xf32> to vector<8x32xf32>
    %cst_131 = arith.constant dense<0.000000e+00> : vector<8x32xf32>
    %270 = tpu.matmul %268, %269, %cst_131 {dimension_numbers = #tpu.dot_dimension_numbers<[1], [0], [0], [1], [0, 0, 1, 1], [], []>} : vector<8x8xf32>, vector<8x32xf32>, vector<8x32xf32> -> vector<8x32xf32>
    %271 = arith.addf %247, %270 : vector<8x32xf32>
    %272 = vector.extract_strided_slice %198 {offsets = [0, 24], sizes = [8, 8], strides = [1, 1]} : vector<8x96xf32> to vector<8x8xf32>
    %273 = vector.extract_strided_slice %198 {offsets = [0, 56], sizes = [8, 8], strides = [1, 1]} : vector<8x96xf32> to vector<8x8xf32>
    %274 = vector.extract_strided_slice %198 {offsets = [0, 88], sizes = [8, 8], strides = [1, 1]} : vector<8x96xf32> to vector<8x8xf32>
    %cst_132 = arith.constant dense<0.000000e+00> : vector<8x8xf32>
    %275 = tpu.matmul %272, %273, %cst_132 {dimension_numbers = #tpu.dot_dimension_numbers<[1], [1], [0], [0], [0, 0, 1, 0], [], []>} : vector<8x8xf32>, vector<8x8xf32>, vector<8x8xf32> -> vector<8x8xf32>
    %cst_133 = arith.constant 0.353553385 : f32
    %276 = vector.broadcast %cst_133 : f32 to vector<8x8xf32>
    %277 = arith.mulf %275, %276 : vector<8x8xf32>
    %cst_134 = arith.constant -1.000000e+09 : f32
    %278 = vector.broadcast %cst_134 : f32 to vector<1x8xf32>
    %279 = arith.mulf %5, %278 : vector<1x8xf32>
    %280 = vector.broadcast %279 : vector<1x8xf32> to vector<8x8xf32>
    %281 = arith.addf %277, %280 : vector<8x8xf32>
    %cst_135 = arith.constant dense<0xFF800000> : vector<8xf32>
    %282 = vector.multi_reduction <maximumf>, %281, %cst_135 [1] : vector<8x8xf32> to vector<8xf32>
    %283 = vector.shape_cast %282 : vector<8xf32> to vector<8x1xf32>
    %284 = vector.broadcast %283 : vector<8x1xf32> to vector<8x8xf32>
    %285 = arith.subf %281, %284 : vector<8x8xf32>
    %286 = math.exp %285 : vector<8x8xf32>
    %cst_136 = arith.constant dense<0.000000e+00> : vector<8xf32>
    %287 = vector.multi_reduction <add>, %286, %cst_136 [1] : vector<8x8xf32> to vector<8xf32>
    %288 = vector.shape_cast %287 : vector<8xf32> to vector<8x1xf32>
    %289 = tpu.reciprocal %288 {approx = true} : vector<8x1xf32> -> vector<8x1xf32>
    %290 = vector.broadcast %289 : vector<8x1xf32> to vector<8x8xf32>
    %291 = arith.mulf %286, %290 : vector<8x8xf32>
    %cst_137 = arith.constant dense<0.000000e+00> : vector<8x8xf32>
    %292 = tpu.matmul %291, %274, %cst_137 {dimension_numbers = #tpu.dot_dimension_numbers<[1], [0], [0], [1], [0, 0, 1, 1], [], []>} : vector<8x8xf32>, vector<8x8xf32>, vector<8x8xf32> -> vector<8x8xf32>
    %293 = vector.extract_strided_slice %186 {offsets = [24, 0], sizes = [8, 32], strides = [1, 1]} : vector<32x32xf32> to vector<8x32xf32>
    %cst_138 = arith.constant dense<0.000000e+00> : vector<8x32xf32>
    %294 = tpu.matmul %292, %293, %cst_138 {dimension_numbers = #tpu.dot_dimension_numbers<[1], [0], [0], [1], [0, 0, 1, 1], [], []>} : vector<8x8xf32>, vector<8x32xf32>, vector<8x32xf32> -> vector<8x32xf32>
    %295 = arith.addf %271, %294 : vector<8x32xf32>
    %296 = vector.broadcast %187 : vector<1x32xf32> to vector<8x32xf32>
    %297 = arith.addf %295, %296 : vector<8x32xf32>
    %298 = arith.addf %183, %297 : vector<8x32xf32>
    %cst_139 = arith.constant dense<0.000000e+00> : vector<8xf32>
    %299 = vector.multi_reduction <add>, %298, %cst_139 [1] : vector<8x32xf32> to vector<8xf32>
    %300 = vector.shape_cast %299 : vector<8xf32> to vector<8x1xf32>
    %cst_140 = arith.constant 3.200000e+01 : f32
    %301 = vector.broadcast %cst_140 : f32 to vector<8x1xf32>
    %302 = arith.divf %300, %301 : vector<8x1xf32>
    %303 = vector.broadcast %302 : vector<8x1xf32> to vector<8x32xf32>
    %304 = arith.subf %298, %303 : vector<8x32xf32>
    %305 = arith.mulf %304, %304 : vector<8x32xf32>
    %cst_141 = arith.constant dense<0.000000e+00> : vector<8xf32>
    %306 = vector.multi_reduction <add>, %305, %cst_141 [1] : vector<8x32xf32> to vector<8xf32>
    %307 = vector.shape_cast %306 : vector<8xf32> to vector<8x1xf32>
    %cst_142 = arith.constant 3.200000e+01 : f32
    %308 = vector.broadcast %cst_142 : f32 to vector<8x1xf32>
    %309 = arith.divf %307, %308 : vector<8x1xf32>
    %310 = vector.broadcast %302 : vector<8x1xf32> to vector<8x32xf32>
    %311 = arith.subf %298, %310 : vector<8x32xf32>
    %cst_143 = arith.constant 9.99999974E-6 : f32
    %312 = vector.broadcast %cst_143 : f32 to vector<8x1xf32>
    %313 = arith.addf %309, %312 : vector<8x1xf32>
    %314 = math.rsqrt %313 : vector<8x1xf32>
    %315 = vector.broadcast %314 : vector<8x1xf32> to vector<8x32xf32>
    %316 = arith.mulf %311, %315 : vector<8x32xf32>
    %317 = vector.broadcast %192 : vector<1x32xf32> to vector<8x32xf32>
    %318 = arith.mulf %316, %317 : vector<8x32xf32>
    %319 = vector.broadcast %193 : vector<1x32xf32> to vector<8x32xf32>
    %320 = arith.addf %318, %319 : vector<8x32xf32>
    %cst_144 = arith.constant dense<0.000000e+00> : vector<8x64xf32>
    %321 = tpu.matmul %320, %188, %cst_144 {dimension_numbers = #tpu.dot_dimension_numbers<[1], [0], [0], [1], [0, 0, 1, 1], [], []>} : vector<8x32xf32>, vector<32x64xf32>, vector<8x64xf32> -> vector<8x64xf32>
    %322 = vector.broadcast %189 : vector<1x64xf32> to vector<8x64xf32>
    %323 = arith.addf %321, %322 : vector<8x64xf32>
    %cst_145 = arith.constant 0.000000e+00 : f32
    %324 = vector.broadcast %cst_145 : f32 to vector<8x64xf32>
    %325 = arith.maximumf %323, %324 : vector<8x64xf32>
    %cst_146 = arith.constant dense<0.000000e+00> : vector<8x32xf32>
    %326 = tpu.matmul %325, %190, %cst_146 {dimension_numbers = #tpu.dot_dimension_numbers<[1], [0], [0], [1], [0, 0, 1, 1], [], []>} : vector<8x64xf32>, vector<64x32xf32>, vector<8x32xf32> -> vector<8x32xf32>
    %327 = vector.broadcast %191 : vector<1x32xf32> to vector<8x32xf32>
    %328 = arith.addf %326, %327 : vector<8x32xf32>
    %329 = arith.addf %320, %328 : vector<8x32xf32>
    %cst_147 = arith.constant dense<0.000000e+00> : vector<8xf32>
    %330 = vector.multi_reduction <add>, %329, %cst_147 [1] : vector<8x32xf32> to vector<8xf32>
    %331 = vector.shape_cast %330 : vector<8xf32> to vector<8x1xf32>
    %cst_148 = arith.constant 3.200000e+01 : f32
    %332 = vector.broadcast %cst_148 : f32 to vector<8x1xf32>
    %333 = arith.divf %331, %332 : vector<8x1xf32>
    %334 = vector.broadcast %333 : vector<8x1xf32> to vector<8x32xf32>
    %335 = arith.subf %329, %334 : vector<8x32xf32>
    %336 = arith.mulf %335, %335 : vector<8x32xf32>
    %cst_149 = arith.constant dense<0.000000e+00> : vector<8xf32>
    %337 = vector.multi_reduction <add>, %336, %cst_149 [1] : vector<8x32xf32> to vector<8xf32>
    %338 = vector.shape_cast %337 : vector<8xf32> to vector<8x1xf32>
    %cst_150 = arith.constant 3.200000e+01 : f32
    %339 = vector.broadcast %cst_150 : f32 to vector<8x1xf32>
    %340 = arith.divf %338, %339 : vector<8x1xf32>
    %341 = vector.broadcast %333 : vector<8x1xf32> to vector<8x32xf32>
    %342 = arith.subf %329, %341 : vector<8x32xf32>
    %cst_151 = arith.constant 9.99999974E-6 : f32
    %343 = vector.broadcast %cst_151 : f32 to vector<8x1xf32>
    %344 = arith.addf %340, %343 : vector<8x1xf32>
    %345 = math.rsqrt %344 : vector<8x1xf32>
    %346 = vector.broadcast %345 : vector<8x1xf32> to vector<8x32xf32>
    %347 = arith.mulf %342, %346 : vector<8x32xf32>
    %348 = vector.broadcast %194 : vector<1x32xf32> to vector<8x32xf32>
    %349 = arith.mulf %347, %348 : vector<8x32xf32>
    %350 = vector.broadcast %195 : vector<1x32xf32> to vector<8x32xf32>
    %351 = arith.addf %349, %350 : vector<8x32xf32>
    %352 = vector.broadcast %7 : vector<8x1xf32> to vector<8x32xf32>
    %353 = arith.mulf %351, %352 : vector<8x32xf32>
    %c0_152 = arith.constant 0 : index
    %c0_153 = arith.constant 0 : index
    %354 = vector.load %arg32[%c0_152, %c0_153] : memref<32x128xf32, #tpu.memory_space<vmem>>, vector<32x128xf32>
    %c0_154 = arith.constant 0 : index
    %c0_155 = arith.constant 0 : index
    %355 = vector.load %arg33[%c0_154, %c0_155] : memref<1x64xf32, #tpu.memory_space<vmem>>, vector<1x64xf32>
    %cst_156 = arith.constant dense<0.000000e+00> : vector<8x128xf32>
    %356 = tpu.matmul %353, %354, %cst_156 {dimension_numbers = #tpu.dot_dimension_numbers<[1], [0], [0], [1], [0, 0, 1, 1], [], []>} : vector<8x32xf32>, vector<32x128xf32>, vector<8x128xf32> -> vector<8x128xf32>
    %357 = vector.extract_strided_slice %356 {offsets = [0, 0], sizes = [8, 64], strides = [1, 1]} : vector<8x128xf32> to vector<8x64xf32>
    %358 = vector.broadcast %355 : vector<1x64xf32> to vector<8x64xf32>
    %359 = arith.addf %357, %358 : vector<8x64xf32>
    %cst_157 = arith.constant 0.000000e+00 : f32
    %360 = vector.broadcast %cst_157 : f32 to vector<8x64xf32>
    %361 = arith.cmpf oge, %359, %360 : vector<8x64xf32>
    %cst_158 = arith.constant 0.00999999977 : f32
    %362 = vector.broadcast %cst_158 : f32 to vector<8x64xf32>
    %363 = arith.mulf %362, %359 : vector<8x64xf32>
    %364 = arith.select %361, %359, %363 : vector<8x64xi1>, vector<8x64xf32>
    %365 = vector.extract_strided_slice %356 {offsets = [0, 64], sizes = [8, 64], strides = [1, 1]} : vector<8x128xf32> to vector<8x64xf32>
    %366 = arith.addf %364, %365 : vector<8x64xf32>
    %c0_159 = arith.constant 0 : index
    %c0_160 = arith.constant 0 : index
    %367 = vector.load %arg34[%c0_159, %c0_160] : memref<64x64xf32, #tpu.memory_space<vmem>>, vector<64x64xf32>
    %c0_161 = arith.constant 0 : index
    %c0_162 = arith.constant 0 : index
    %368 = vector.load %arg35[%c0_161, %c0_162] : memref<1x32xf32, #tpu.memory_space<vmem>>, vector<1x32xf32>
    %cst_163 = arith.constant dense<0.000000e+00> : vector<8x64xf32>
    %369 = tpu.matmul %366, %367, %cst_163 {dimension_numbers = #tpu.dot_dimension_numbers<[1], [0], [0], [1], [0, 0, 1, 1], [], []>} : vector<8x64xf32>, vector<64x64xf32>, vector<8x64xf32> -> vector<8x64xf32>
    %370 = vector.extract_strided_slice %369 {offsets = [0, 0], sizes = [8, 32], strides = [1, 1]} : vector<8x64xf32> to vector<8x32xf32>
    %371 = vector.broadcast %368 : vector<1x32xf32> to vector<8x32xf32>
    %372 = arith.addf %370, %371 : vector<8x32xf32>
    %cst_164 = arith.constant 0.000000e+00 : f32
    %373 = vector.broadcast %cst_164 : f32 to vector<8x32xf32>
    %374 = arith.cmpf oge, %372, %373 : vector<8x32xf32>
    %cst_165 = arith.constant 0.00999999977 : f32
    %375 = vector.broadcast %cst_165 : f32 to vector<8x32xf32>
    %376 = arith.mulf %375, %372 : vector<8x32xf32>
    %377 = arith.select %374, %372, %376 : vector<8x32xi1>, vector<8x32xf32>
    %378 = vector.extract_strided_slice %369 {offsets = [0, 32], sizes = [8, 32], strides = [1, 1]} : vector<8x64xf32> to vector<8x32xf32>
    %379 = arith.addf %377, %378 : vector<8x32xf32>
    %c0_166 = arith.constant 0 : index
    %c0_167 = arith.constant 0 : index
    %380 = vector.load %arg36[%c0_166, %c0_167] : memref<32x32xf32, #tpu.memory_space<vmem>>, vector<32x32xf32>
    %c0_168 = arith.constant 0 : index
    %c0_169 = arith.constant 0 : index
    %381 = vector.load %arg37[%c0_168, %c0_169] : memref<1x32xf32, #tpu.memory_space<vmem>>, vector<1x32xf32>
    %cst_170 = arith.constant dense<0.000000e+00> : vector<8x32xf32>
    %382 = tpu.matmul %379, %380, %cst_170 {dimension_numbers = #tpu.dot_dimension_numbers<[1], [0], [0], [1], [0, 0, 1, 1], [], []>} : vector<8x32xf32>, vector<32x32xf32>, vector<8x32xf32> -> vector<8x32xf32>
    %383 = vector.broadcast %381 : vector<1x32xf32> to vector<8x32xf32>
    %384 = arith.addf %382, %383 : vector<8x32xf32>
    %cst_171 = arith.constant 0.000000e+00 : f32
    %385 = vector.broadcast %cst_171 : f32 to vector<8x32xf32>
    %386 = arith.cmpf oge, %384, %385 : vector<8x32xf32>
    %cst_172 = arith.constant 0.00999999977 : f32
    %387 = vector.broadcast %cst_172 : f32 to vector<8x32xf32>
    %388 = arith.mulf %387, %384 : vector<8x32xf32>
    %389 = arith.select %386, %384, %388 : vector<8x32xi1>, vector<8x32xf32>
    %390 = arith.addf %389, %379 : vector<8x32xf32>
    %c0_173 = arith.constant 0 : index
    %c0_174 = arith.constant 0 : index
    %391 = vector.load %arg38[%c0_173, %c0_174] : memref<32x3xf32, #tpu.memory_space<vmem>>, vector<32x3xf32>
    %c0_175 = arith.constant 0 : index
    %c0_176 = arith.constant 0 : index
    %392 = vector.load %arg39[%c0_175, %c0_176] : memref<1x3xf32, #tpu.memory_space<vmem>>, vector<1x3xf32>
    %cst_177 = arith.constant dense<0.000000e+00> : vector<8x3xf32>
    %393 = tpu.matmul %390, %391, %cst_177 {dimension_numbers = #tpu.dot_dimension_numbers<[1], [0], [0], [1], [0, 0, 1, 1], [], []>} : vector<8x32xf32>, vector<32x3xf32>, vector<8x3xf32> -> vector<8x3xf32>
    %394 = vector.broadcast %392 : vector<1x3xf32> to vector<8x3xf32>
    %395 = arith.addf %393, %394 : vector<8x3xf32>
    %396 = vector.broadcast %9 : vector<8x1xf32> to vector<8x3xf32>
    %397 = arith.mulf %395, %396 : vector<8x3xf32>
    %cst_178 = arith.constant dense<0.000000e+00> : vector<3xf32>
    %398 = vector.multi_reduction <add>, %397, %cst_178 [0] : vector<8x3xf32> to vector<3xf32>
    %399 = vector.shape_cast %398 : vector<3xf32> to vector<1x3xf32>
    %cst_179 = arith.constant dense<0.000000e+00> : vector<1xf32>
    %400 = vector.multi_reduction <add>, %9, %cst_179 [0] : vector<8x1xf32> to vector<1xf32>
    %401 = vector.shape_cast %400 : vector<1xf32> to vector<1x1xf32>
    %cst_180 = arith.constant 1.000000e+00 : f32
    %402 = vector.broadcast %cst_180 : f32 to vector<1x1xf32>
    %403 = arith.maximumf %401, %402 : vector<1x1xf32>
    %404 = tpu.reciprocal %403 {approx = true} : vector<1x1xf32> -> vector<1x1xf32>
    %405 = vector.broadcast %404 : vector<1x1xf32> to vector<1x3xf32>
    %406 = arith.mulf %399, %405 : vector<1x3xf32>
    %c0_181 = arith.constant 0 : index
    %c0_182 = arith.constant 0 : index
    %c0_183 = arith.constant 0 : index
    %407 = vector.load %arg40[%c0_181, %c0_182, %c0_183] : memref<1x1x3xf32, #tpu.memory_space<vmem>>, vector<1x1x3xf32>
    %408 = vector.shape_cast %407 : vector<1x1x3xf32> to vector<1x3xf32>
    %409 = vector.shape_cast %406 : vector<1x3xf32> to vector<1x1x3xf32>
    tpu.vector_store %arg40[%c0_181, %c0_182, %c0_183], %409 {strides = array<i32>} : memref<1x1x3xf32, #tpu.memory_space<vmem>>, vector<1x1x3xf32>,
    return
  }
  func.func @transform_0(%arg0: i32) -> (i32, i32, i32) {
    %c0_i32 = arith.constant 0 : i32
    %c0_i32_0 = arith.constant 0 : i32
    %c0_i32_1 = arith.constant 0 : i32
    return %arg0, %c0_i32, %c0_i32_0 : i32, i32, i32
  }
  func.func @transform_1(%arg0: i32) -> (i32, i32, i32) {
    %c0_i32 = arith.constant 0 : i32
    %c0_i32_0 = arith.constant 0 : i32
    %c0_i32_1 = arith.constant 0 : i32
    return %arg0, %c0_i32, %c0_i32_0 : i32, i32, i32
  }
  func.func @transform_2(%arg0: i32) -> (i32, i32, i32) {
    %c0_i32 = arith.constant 0 : i32
    %c0_i32_0 = arith.constant 0 : i32
    %c0_i32_1 = arith.constant 0 : i32
    return %arg0, %c0_i32, %c0_i32_0 : i32, i32, i32
  }
  func.func @transform_3(%arg0: i32) -> (i32, i32, i32) {
    %c0_i32 = arith.constant 0 : i32
    %c0_i32_0 = arith.constant 0 : i32
    %c0_i32_1 = arith.constant 0 : i32
    return %arg0, %c0_i32, %c0_i32_0 : i32, i32, i32
  }
  func.func @transform_4(%arg0: i32) -> (i32, i32, i32) {
    %c0_i32 = arith.constant 0 : i32
    %c0_i32_0 = arith.constant 0 : i32
    %c0_i32_1 = arith.constant 0 : i32
    return %arg0, %c0_i32, %c0_i32_0 : i32, i32, i32
  }
  func.func @transform_5(%arg0: i32) -> (i32, i32) {
    %c0_i32 = arith.constant 0 : i32
    %c0_i32_0 = arith.constant 0 : i32
    %c0_i32_1 = arith.constant 0 : i32
    return %c0_i32, %c0_i32_0 : i32, i32
  }
  func.func @transform_6(%arg0: i32) -> (i32, i32) {
    %c0_i32 = arith.constant 0 : i32
    %c0_i32_0 = arith.constant 0 : i32
    %c0_i32_1 = arith.constant 0 : i32
    return %c0_i32, %c0_i32_0 : i32, i32
  }
  func.func @transform_7(%arg0: i32) -> (i32, i32) {
    %c0_i32 = arith.constant 0 : i32
    %c0_i32_0 = arith.constant 0 : i32
    %c0_i32_1 = arith.constant 0 : i32
    return %c0_i32, %c0_i32_0 : i32, i32
  }
  func.func @transform_8(%arg0: i32) -> (i32, i32) {
    %c0_i32 = arith.constant 0 : i32
    %c0_i32_0 = arith.constant 0 : i32
    %c0_i32_1 = arith.constant 0 : i32
    return %c0_i32, %c0_i32_0 : i32, i32
  }
  func.func @transform_9(%arg0: i32) -> (i32, i32) {
    %c0_i32 = arith.constant 0 : i32
    %c0_i32_0 = arith.constant 0 : i32
    %c0_i32_1 = arith.constant 0 : i32
    return %c0_i32, %c0_i32_0 : i32, i32
  }
  func.func @transform_10(%arg0: i32) -> (i32, i32) {
    %c0_i32 = arith.constant 0 : i32
    %c0_i32_0 = arith.constant 0 : i32
    %c0_i32_1 = arith.constant 0 : i32
    return %c0_i32, %c0_i32_0 : i32, i32
  }
  func.func @transform_11(%arg0: i32) -> (i32, i32) {
    %c0_i32 = arith.constant 0 : i32
    %c0_i32_0 = arith.constant 0 : i32
    %c0_i32_1 = arith.constant 0 : i32
    return %c0_i32, %c0_i32_0 : i32, i32
  }
  func.func @transform_12(%arg0: i32) -> (i32, i32) {
    %c0_i32 = arith.constant 0 : i32
    %c0_i32_0 = arith.constant 0 : i32
    %c0_i32_1 = arith.constant 0 : i32
    return %c0_i32, %c0_i32_0 : i32, i32
  }
  func.func @transform_13(%arg0: i32) -> (i32, i32) {
    %c0_i32 = arith.constant 0 : i32
    %c0_i32_0 = arith.constant 0 : i32
    %c0_i32_1 = arith.constant 0 : i32
    return %c0_i32, %c0_i32_0 : i32, i32
  }
  func.func @transform_14(%arg0: i32) -> (i32, i32) {
    %c0_i32 = arith.constant 0 : i32
    %c0_i32_0 = arith.constant 0 : i32
    %c0_i32_1 = arith.constant 0 : i32
    return %c0_i32, %c0_i32_0 : i32, i32
  }
  func.func @transform_15(%arg0: i32) -> (i32, i32) {
    %c0_i32 = arith.constant 0 : i32
    %c0_i32_0 = arith.constant 0 : i32
    %c0_i32_1 = arith.constant 0 : i32
    return %c0_i32, %c0_i32_0 : i32, i32
  }
  func.func @transform_16(%arg0: i32) -> (i32, i32) {
    %c0_i32 = arith.constant 0 : i32
    %c0_i32_0 = arith.constant 0 : i32
    %c0_i32_1 = arith.constant 0 : i32
    return %c0_i32, %c0_i32_0 : i32, i32
  }
  func.func @transform_17(%arg0: i32) -> (i32, i32) {
    %c0_i32 = arith.constant 0 : i32
    %c0_i32_0 = arith.constant 0 : i32
    %c0_i32_1 = arith.constant 0 : i32
    return %c0_i32, %c0_i32_0 : i32, i32
  }
  func.func @transform_18(%arg0: i32) -> (i32, i32) {
    %c0_i32 = arith.constant 0 : i32
    %c0_i32_0 = arith.constant 0 : i32
    %c0_i32_1 = arith.constant 0 : i32
    return %c0_i32, %c0_i32_0 : i32, i32
  }
  func.func @transform_19(%arg0: i32) -> (i32, i32) {
    %c0_i32 = arith.constant 0 : i32
    %c0_i32_0 = arith.constant 0 : i32
    %c0_i32_1 = arith.constant 0 : i32
    return %c0_i32, %c0_i32_0 : i32, i32
  }
  func.func @transform_20(%arg0: i32) -> (i32, i32) {
    %c0_i32 = arith.constant 0 : i32
    %c0_i32_0 = arith.constant 0 : i32
    %c0_i32_1 = arith.constant 0 : i32
    return %c0_i32, %c0_i32_0 : i32, i32
  }
  func.func @transform_21(%arg0: i32) -> (i32, i32) {
    %c0_i32 = arith.constant 0 : i32
    %c0_i32_0 = arith.constant 0 : i32
    %c0_i32_1 = arith.constant 0 : i32
    return %c0_i32, %c0_i32_0 : i32, i32
  }
  func.func @transform_22(%arg0: i32) -> (i32, i32) {
    %c0_i32 = arith.constant 0 : i32
    %c0_i32_0 = arith.constant 0 : i32
    %c0_i32_1 = arith.constant 0 : i32
    return %c0_i32, %c0_i32_0 : i32, i32
  }
  func.func @transform_23(%arg0: i32) -> (i32, i32) {
    %c0_i32 = arith.constant 0 : i32
    %c0_i32_0 = arith.constant 0 : i32
    %c0_i32_1 = arith.constant 0 : i32
    return %c0_i32, %c0_i32_0 : i32, i32
  }
  func.func @transform_24(%arg0: i32) -> (i32, i32) {
    %c0_i32 = arith.constant 0 : i32
    %c0_i32_0 = arith.constant 0 : i32
    %c0_i32_1 = arith.constant 0 : i32
    return %c0_i32, %c0_i32_0 : i32, i32
  }
  func.func @transform_25(%arg0: i32) -> (i32, i32) {
    %c0_i32 = arith.constant 0 : i32
    %c0_i32_0 = arith.constant 0 : i32
    %c0_i32_1 = arith.constant 0 : i32
    return %c0_i32, %c0_i32_0 : i32, i32
  }
  func.func @transform_26(%arg0: i32) -> (i32, i32) {
    %c0_i32 = arith.constant 0 : i32
    %c0_i32_0 = arith.constant 0 : i32
    %c0_i32_1 = arith.constant 0 : i32
    return %c0_i32, %c0_i32_0 : i32, i32
  }
  func.func @transform_27(%arg0: i32) -> (i32, i32) {
    %c0_i32 = arith.constant 0 : i32
    %c0_i32_0 = arith.constant 0 : i32
    %c0_i32_1 = arith.constant 0 : i32
    return %c0_i32, %c0_i32_0 : i32, i32
  }
  func.func @transform_28(%arg0: i32) -> (i32, i32) {
    %c0_i32 = arith.constant 0 : i32
    %c0_i32_0 = arith.constant 0 : i32
    %c0_i32_1 = arith.constant 0 : i32
    return %c0_i32, %c0_i32_0 : i32, i32
  }
  func.func @transform_29(%arg0: i32) -> (i32, i32) {
    %c0_i32 = arith.constant 0 : i32
    %c0_i32_0 = arith.constant 0 : i32
    %c0_i32_1 = arith.constant 0 : i32
    return %c0_i32, %c0_i32_0 : i32, i32
  }
  func.func @transform_30(%arg0: i32) -> (i32, i32) {
    %c0_i32 = arith.constant 0 : i32
    %c0_i32_0 = arith.constant 0 : i32
    %c0_i32_1 = arith.constant 0 : i32
    return %c0_i32, %c0_i32_0 : i32, i32
  }
  func.func @transform_31(%arg0: i32) -> (i32, i32) {
    %c0_i32 = arith.constant 0 : i32
    %c0_i32_0 = arith.constant 0 : i32
    %c0_i32_1 = arith.constant 0 : i32
    return %c0_i32, %c0_i32_0 : i32, i32
  }
  func.func @transform_32(%arg0: i32) -> (i32, i32) {
    %c0_i32 = arith.constant 0 : i32
    %c0_i32_0 = arith.constant 0 : i32
    %c0_i32_1 = arith.constant 0 : i32
    return %c0_i32, %c0_i32_0 : i32, i32
  }
  func.func @transform_33(%arg0: i32) -> (i32, i32) {
    %c0_i32 = arith.constant 0 : i32
    %c0_i32_0 = arith.constant 0 : i32
    %c0_i32_1 = arith.constant 0 : i32
    return %c0_i32, %c0_i32_0 : i32, i32
  }
  func.func @transform_34(%arg0: i32) -> (i32, i32) {
    %c0_i32 = arith.constant 0 : i32
    %c0_i32_0 = arith.constant 0 : i32
    %c0_i32_1 = arith.constant 0 : i32
    return %c0_i32, %c0_i32_0 : i32, i32
  }
  func.func @transform_35(%arg0: i32) -> (i32, i32) {
    %c0_i32 = arith.constant 0 : i32
    %c0_i32_0 = arith.constant 0 : i32
    %c0_i32_1 = arith.constant 0 : i32
    return %c0_i32, %c0_i32_0 : i32, i32
  }
  func.func @transform_36(%arg0: i32) -> (i32, i32) {
    %c0_i32 = arith.constant 0 : i32
    %c0_i32_0 = arith.constant 0 : i32
    %c0_i32_1 = arith.constant 0 : i32
    return %c0_i32, %c0_i32_0 : i32, i32
  }
  func.func @transform_37(%arg0: i32) -> (i32, i32) {
    %c0_i32 = arith.constant 0 : i32
    %c0_i32_0 = arith.constant 0 : i32
    %c0_i32_1 = arith.constant 0 : i32
    return %c0_i32, %c0_i32_0 : i32, i32
  }
  func.func @transform_38(%arg0: i32) -> (i32, i32) {
    %c0_i32 = arith.constant 0 : i32
    %c0_i32_0 = arith.constant 0 : i32
    %c0_i32_1 = arith.constant 0 : i32
    return %c0_i32, %c0_i32_0 : i32, i32
  }
  func.func @transform_39(%arg0: i32) -> (i32, i32, i32) {
    %c0_i32 = arith.constant 0 : i32
    %c0_i32_0 = arith.constant 0 : i32
    %c0_i32_1 = arith.constant 0 : i32
    return %arg0, %c0_i32, %c0_i32_0 : i32, i32, i32
  }
}

</mosaic_0001>

<bundles_post_ra>
// kernel: crabnet_forward.1
= control target key start
LH: loop header
LB: loop body
LE: loop exit
PB: predicated region body
PF: predicated region fallthrough
CT: control target
= control target key end

     0   :  { %s6801_s6 = smov 1   ;;  %s6802_s10 = smov 2   ;;  %s7843_s0 = inlined_call_operand.smem [shape: u32[40], index: -1, kind: input, shape index: {}] }
   0x1   :  { %s6891_s5 = sld [smem:[%s7843_s0]]   ;;  %s6803_s14 = smov 3  }
   0x2   :  { %s6896_s9 = sld [smem:[%s7843_s0 + %s6801_s6]]   ;;  %s6804_s18 = smov 4  }
   0x3   :  { %s6901_s13 = sld [smem:[%s7843_s0 + %s6802_s10]]   ;;  %s6805_s22 = smov 5  }
   0x4   :  { %s6906_s17 = sld [smem:[%s7843_s0 + %s6803_s14]]   ;;  %s6806_s26 = smov 6  }
   0x5   :  { %s6911_s21 = sld [smem:[%s7843_s0 + %s6804_s18]]   ;;  %s6807_s30 = smov 7  }
   0x6   :  { %s6916_s25 = sld [smem:[%s7843_s0 + %s6805_s22]]   ;;  %s6808_s4 = smov 8  }
   0x7   :  { %7867 = sst [smem:[#allocation56_spill]] %s6891_s5  ;;  %s6809_s10 = smov 9  }
   0x8   :  { %7868 = sst [smem:[#allocation57_spill]] %s6896_s9  ;;  %s6810_s15 = smov 10  }
   0x9   :  { %7869 = sst [smem:[#allocation58_spill]] %s6901_s13  ;;  %s6811_s20 = smov 11  }
   0xa   :  { %7870 = sst [smem:[#allocation59_spill]] %s6906_s17  ;;  %s6813_s1 = smov 13  }
   0xb   :  { %7871 = sst [smem:[#allocation60_spill]] %s6911_s21  ;;  %s6814_s7 = smov 14  }
   0xc   :  { %s6921_s29 = sld [smem:[%s7843_s0 + %s6806_s26]]   ;;  %s6812_s26 = smov 12  }
   0xd   :  { %s6926_s3 = sld [smem:[%s7843_s0 + %s6807_s30]]   ;;  %s6816_s22 = smov 16  }
   0xe   :  { %s6931_s8 = sld [smem:[%s7843_s0 + %s6808_s4]]   ;;  %s6817_s28 = smov 17  }
   0xf   :  { %s6936_s14 = sld [smem:[%s7843_s0 + %s6809_s10]]  }
  0x10   :  { %s6941_s19 = sld [smem:[%s7843_s0 + %s6810_s15]]   ;;  %s6815_s15 = smov 15  }
  0x11   :  { %s6946_s24 = sld [smem:[%s7843_s0 + %s6811_s20]]  }
  0x12   :  { %s6951_s30 = sld [smem:[%s7843_s0 + %s6812_s26]]  }
  0x13   :  { %7872 = sst [smem:[#allocation61_spill]] %s6926_s3 }
  0x14   :  { %s6956_s6 = sld [smem:[%s7843_s0 + %s6813_s1]]  }
  0x15   :  { %s6961_s12 = sld [smem:[%s7843_s0 + %s6814_s7]]   ;;  %s6818_s7 = smov 18  }
  0x16   :  { %s6966_s20 = sld [smem:[%s7843_s0 + %s6815_s15]]   ;;  %s6819_s15 = smov 19  }
  0x17   :  { %7873 = sst [smem:[#allocation62_spill]] %s6946_s24 }
  0x18   :  { %s6971_s27 = sld [smem:[%s7843_s0 + %s6816_s22]]   ;;  %s6820_s22 = smov 20  }
  0x19   :  { %s6976_s4 = sld [smem:[%s7843_s0 + %s6817_s28]]   ;;  %s6821_s28 = smov 21  }
  0x1a   :  { %7874 = sst [smem:[#allocation63_spill]] %s6956_s6 }
  0x1b   :  { %s6981_s17 = sld [smem:[%s7843_s0 + %s6818_s7]]   ;;  %s6822_s7 = smov 22  }
  0x1c   :  { %7875 = sst [smem:[#allocation64_spill]] %s6966_s20 }
  0x1d   :  { %s6986_s21 = sld [smem:[%s7843_s0 + %s6819_s15]]   ;;  %s6823_s15 = smov 23  }
  0x1e   :  { %7876 = sst [smem:[#allocation65_spill]] %s6971_s27 }
  0x1f   :  { %7877 = sst [smem:[#allocation66_spill]] %s6976_s4 }
  0x20   :  { %s6991_s27 = sld [smem:[%s7843_s0 + %s6820_s22]]   ;;  %s6824_s22 = smov 24  }
  0x21   :  { %7878 = sst [smem:[#allocation67_spill]] %s6981_s17 }
  0x22   :  { %s6996_s4 = sld [smem:[%s7843_s0 + %s6821_s28]]   ;;  %s6825_s28 = smov 25  }
  0x23   :  { %7879 = sst [smem:[#allocation68_spill]] %s6986_s21 }
  0x24   :  { %s7001_s17 = sld [smem:[%s7843_s0 + %s6822_s7]]   ;;  %s6826_s7 = smov 26  }
  0x25   :  { %s7006_s20 = sld [smem:[%s7843_s0 + %s6823_s15]]   ;;  %s6827_s15 = smov 27  }
  0x26   :  { %s7011_s13 = sld [smem:[%s7843_s0 + %s6824_s22]]   ;;  %s6828_s22 = smov 28  }
  0x27   :  { %s7016_s9 = sld [smem:[%s7843_s0 + %s6825_s28]]   ;;  %s6829_s28 = smov 29  }
  0x28   :  { %7880 = sst [smem:[#allocation69_spill]] %s6996_s4 }
  0x29   :  { %s7021_s5 = sld [smem:[%s7843_s0 + %s6826_s7]]   ;;  %s6830_s7 = smov 30  }
  0x2a   :  { %s7031_s4 = sld [smem:[%s7843_s0 + %s6828_s22]]   ;;  %s6832_s22 = smov 32  }
  0x2b   :  { %7881 = sst [smem:[#allocation70_spill]] %s7006_s20 }
  0x2c   :  { %s7026_s20 = sld [smem:[%s7843_s0 + %s6827_s15]]   ;;  %s6831_s15 = smov 31  }
  0x2d   :  { %7882 = sst [smem:[#allocation71_spill]] %s7016_s9 }
  0x2e   :  { %s7036_s9 = sld [smem:[%s7843_s0 + %s6829_s28]]   ;;  %s6833_s28 = smov 33  }
  0x2f   :  { %7883 = sst [smem:[#allocation72_spill]] %s7021_s5 }
  0x30   :  { %7885 = sst [smem:[#allocation74_spill]] %s7031_s4 }
  0x31   :  { %s7041_s21 = sld [smem:[%s7843_s0 + %s6830_s7]]   ;;  %s6834_s7 = smov 34  }
  0x32   :  { %7884 = sst [smem:[#allocation73_spill]] %s7026_s20 }
  0x33   :  { %s7046_s20 = sld [smem:[%s7843_s0 + %s6831_s15]]   ;;  %s6835_s15 = smov 35  }
  0x34   :  { %7886 = sst [smem:[#allocation75_spill]] %s7036_s9 }
  0x35   :  { %s7051_s4 = sld [smem:[%s7843_s0 + %s6832_s22]]   ;;  %s6836_s22 = smov 36  }
  0x36   :  { %s7056_s9 = sld [smem:[%s7843_s0 + %s6833_s28]]   ;;  %s6837_s28 = smov 37  }
  0x37   :  { %7887 = sst [smem:[#allocation76_spill]] %s7041_s21 }
  0x38   :  { %s7061_s21 = sld [smem:[%s7843_s0 + %s6834_s7]]   ;;  %s6838_s7 = smov 38  }
  0x39   :  { %7888 = sst [smem:[#allocation77_spill]] %s7046_s20 }
  0x3a   :  { %s7066_s20 = sld [smem:[%s7843_s0 + %s6835_s15]]   ;;  %s6839_s15 = smov 39  }
  0x3b   :  { %7889 = sst [smem:[#allocation78_spill]] %s7051_s4 }
  0x3c   :  { %7890 = sst [smem:[#allocation79_spill]] %s7056_s9 }
  0x3d   :  { %s7071_s6 = sld [smem:[%s7843_s0 + %s6836_s22]]  }
  0x3e   :  { %s7076_s9 = sld [smem:[%s7843_s0 + %s6837_s28]]  }
  0x3f   :  { %s7081_s24 = sld [smem:[%s7843_s0 + %s6838_s7]]  }
  0x40   :  { %7891 = sst [smem:[#allocation80_spill]] %s7066_s20 }
  0x41   :  { %s7086_s20 = sld [smem:[%s7843_s0 + %s6839_s15]]  }
  0x43   :  { %7892 = sst [smem:[#allocation81_spill]] %s7071_s6 }
  0x44   :  { %84 = vsyncpa [#allocation3], 0 }
  0x45   :  { %85 = vsyncpa [#allocation5], 0 }
  0x46   :  { %86 = vsyncpa [#allocation8], 0 }
  0x47   :  { %87 = vsyncpa [#allocation11], 0 }
  0x48   :  { %88 = vsyncpa [#allocation14], 0 }
  0x49   :  { %89 = vsyncpa [#allocation17], 0 }
  0x4a   :  { %90 = vsyncpa [#allocation20], 0 }
  0x4b   :  { %91 = vsyncpa [#allocation23], 0 }
  0x4c   :  { %92 = vsyncpa [#allocation26], 0 }
  0x4d   :  { %93 = vsyncpa [#allocation29], 0 }
  0x4e   :  { %94 = vsyncpa [#allocation32], 0 }
  0x4f   :  { %95 = vsyncpa [#allocation35], 0 }
  0x50   :  { %96 = vsyncpa [#allocation38], 0 }
  0x51   :  { %97 = vsyncpa [#allocation41], 0  ;;  %s7088_s22 = smov 0  }
  0x52 LB: > { %s7893_s6 = sld [smem:[#allocation81_spill]]  ;;  %s7894_s5 = sld [smem:[#allocation72_spill]]  ;;  %s6799_s22 = sphi %s7088_s22, %s103_s22  }
  0x53   : > { %s7895_s3 = sld [smem:[#allocation61_spill]]  ;;  %s7896_s4 = sld [smem:[#allocation78_spill]] }
  0x54   : > { %s6840_s0 = smov [#allocation4]   ;;  %s7094_s26 = sadd.s32 4294967295, %s6799_s22  }
  0x55   : > { %s1004_s23 = sshll.u32 %s6840_s0, 4  ;;  %p5057_p0 = scmp.ge.s32.totalorder %s6799_s22, 1  ;;  %s7099_s23 = int_to_ptr.vmem [resolvable:$true] %s1004_s23 }
  0x56   : > { %p978_p1 = scmp.lt.s32.totalorder %s6799_s22, 3  ;;  %p7853_p2 = scmp.eq.s32.totalorder %s7094_s26, 0 }
  0x57   : > { %s6841_s1 = smov [#allocation7]   ;;  %s6842_s7 = smov [#allocation10]  }
  0x58   : > { %p7101_p3 = pnand %p5057_p0, %p978_p1  ;;  %s1028_s2 = sshll.u32 %s6841_s1, 4  ;;  %s7107_s2 = int_to_ptr.vmem [resolvable:$true] %s1028_s2 }
  0x59   : > { %s1052_s10 = sshll.u32 %s6842_s7, 4  ;;  %s6843_s15 = smov [#allocation13]   ;;  %s7115_s10 = int_to_ptr.vmem [resolvable:$true] %s1052_s10 }
  0x5a   : > { %s7897_s28 = scalar_select %p7101_p3, 1, 0 }
  0x5b   : > { %p5744_p4 = pneg %p7101_p3  ;;  %s1076_s16 = sshll.u32 %s6843_s15, 4  ;;  %s7117_s16 = int_to_ptr.vmem [resolvable:$true] %s1076_s16 }
  0x5c   : > { %s6009_s18 = scalar_lea.hbm %s6921_s29, 16 }
  0x5d   : > { %p7111_p5 = pnand %p7853_p2, %p5744_p4  ;;  %p6010_p6 = scmp.ne.s32.totalorder %s6921_s29, %s6009_s18 }
  0x5e   : > { %p6016_p10 = scmp.lt.u32.totalorder %s6009_s18, %s6921_s29 }
  0x5f   : > { %p7123_p7 = pneg %p7111_p5 }
  0x61   : > { %p6012_p8 = pnand %p7123_p7, %p6010_p6 }
  0x63   : > { %p6013_p9 = pneg %p6012_p8 }
  0x65   : > { %p6018_p11 = pnand %p6016_p10, %p6013_p9 }
  0x67   : > { %6021 = shalt.err (!%p6018_p11)
}
  0x68   : > { %s6022_s1 = scalar_lea.vmem %s7099_s23, 16  ;;  %s6029_s7 = scalar_lea.vmem %s7099_s23, 32 }
  0x69   : > { %p6023_p12 = scmp.ne.s32.totalorder %s7099_s23, %s6022_s1  ;;  %p6030_p1 = scmp.lt.s32.totalorder %s7099_s23, %s7099_s23 }
  0x6a   : > { %p6031_p4 = scmp.lt.s32.totalorder %s6029_s7, %s6022_s1 }
  0x6b   : > { %p6025_p13 = pnand %p6023_p12, %p7123_p7 }
  0x6c   : > { %p6032_p2 = por %p6031_p4, %p6030_p1 }
  0x6d   : > { %p6026_p0 = pneg %p6025_p13 }
  0x6f   : > { %p6033_p6 = pnand %p6032_p2, %p6026_p0 }
  0x71   : > { %6036 = shalt.err (!%p6033_p6)
}
  0x72   : > { %5750 = dma.hbm_to_vmem [thread:$0]  (!%p7111_p5), %s6921_s29, 16, %s7099_s23, [#allocation5]  }
  0x73   : > { %s6037_s15 = scalar_lea.hbm %s6931_s8, 16 }
  0x74   : > { %p6038_p8 = scmp.ne.s32.totalorder %s6931_s8, %s6037_s15  ;;  %p6044_p11 = scmp.lt.u32.totalorder %s6037_s15, %s6931_s8 }
  0x76   : > { %p6040_p9 = pnand %p6038_p8, %p7123_p7 }
  0x78   : > { %p6041_p10 = pneg %p6040_p9 }
  0x7a   : > { %p6046_p12 = pnand %p6044_p11, %p6041_p10 }
  0x7c   : > { %6049 = shalt.err (!%p6046_p12)
}
  0x7d   : > { %s6050_s18 = scalar_lea.vmem %s7107_s2, 16  ;;  %s6057_s1 = scalar_lea.vmem %s7107_s2, 32 }
  0x7e   : > { %p6051_p2 = scmp.ne.s32.totalorder %s7107_s2, %s6050_s18  ;;  %p6058_p1 = scmp.lt.s32.totalorder %s7107_s2, %s7107_s2 }
  0x7f   : > { %p6059_p4 = scmp.lt.s32.totalorder %s6057_s1, %s6050_s18 }
  0x80   : > { %p6053_p13 = pnand %p6051_p2, %p7123_p7 }
  0x81   : > { %p6060_p6 = por %p6059_p4, %p6058_p1 }
  0x82   : > { %p6054_p0 = pneg %p6053_p13 }
  0x84   : > { %p6061_p8 = pnand %p6060_p6, %p6054_p0 }
  0x86   : > { %6064 = shalt.err (!%p6061_p8)
}
  0x87   : > { %5756 = dma.hbm_to_vmem [thread:$0]  (!%p7111_p5), %s6931_s8, 16, %s7107_s2, [#allocation8]  }
  0x88   : > { %s6065_s23 = scalar_lea.hbm %s6941_s19, 16 }
  0x89   : > { %p6066_p9 = scmp.ne.s32.totalorder %s6941_s19, %s6065_s23  ;;  %p6072_p12 = scmp.lt.u32.totalorder %s6065_s23, %s6941_s19 }
  0x8b   : > { %p6068_p10 = pnand %p6066_p9, %p7123_p7 }
  0x8d   : > { %p6069_p11 = pneg %p6068_p10 }
  0x8f   : > { %p6074_p2 = pnand %p6072_p12, %p6069_p11 }
  0x91   : > { %6077 = shalt.err (!%p6074_p2)
}
  0x92   : > { %s6078_s7 = scalar_lea.vmem %s7115_s10, 16  ;;  %s6085_s15 = scalar_lea.vmem %s7115_s10, 32 }
  0x93   : > { %p6079_p13 = scmp.ne.s32.totalorder %s7115_s10, %s6078_s7  ;;  %p6086_p4 = scmp.lt.s32.totalorder %s7115_s10, %s7115_s10 }
  0x94   : > { %p6087_p6 = scmp.lt.s32.totalorder %s6085_s15, %s6078_s7 }
  0x95   : > { %p6081_p0 = pnand %p6079_p13, %p7123_p7 }
  0x96   : > { %p6088_p8 = por %p6087_p6, %p6086_p4 }
  0x97   : > { %p6082_p1 = pneg %p6081_p0 }
  0x99   : > { %p6089_p9 = pnand %p6088_p8, %p6082_p1 }
  0x9b   : > { %6092 = shalt.err (!%p6089_p9)
}
  0x9c   : > { %5762 = dma.hbm_to_vmem [thread:$0]  (!%p7111_p5), %s6941_s19, 16, %s7115_s10, [#allocation11]  }
  0x9d   : > { %s6093_s2 = scalar_lea.hbm %s6951_s30, 16 }
  0x9e   : > { %p6094_p10 = scmp.ne.s32.totalorder %s6951_s30, %s6093_s2  ;;  %p6100_p2 = scmp.lt.u32.totalorder %s6093_s2, %s6951_s30 }
  0xa0   : > { %p6096_p11 = pnand %p6094_p10, %p7123_p7 }
  0xa2   : > { %p6097_p12 = pneg %p6096_p11 }
  0xa4   : > { %p6102_p13 = pnand %p6100_p2, %p6097_p12 }
  0xa6   : > { %6105 = shalt.err (!%p6102_p13)
}
  0xa7   : > { %s6106_s18 = scalar_lea.vmem %s7117_s16, 16  ;;  %s6113_s1 = scalar_lea.vmem %s7117_s16, 32 }
  0xa8   : > { %p6107_p0 = scmp.ne.s32.totalorder %s7117_s16, %s6106_s18  ;;  %p6114_p6 = scmp.lt.s32.totalorder %s7117_s16, %s7117_s16 }
  0xa9   : > { %p6115_p8 = scmp.lt.s32.totalorder %s6113_s1, %s6106_s18 }
  0xaa   : > { %p6109_p1 = pnand %p6107_p0, %p7123_p7 }
  0xab   : > { %p6116_p9 = por %p6115_p8, %p6114_p6 }
  0xac   : > { %p6110_p4 = pneg %p6109_p1 }
  0xae   : > { %p6117_p10 = pnand %p6116_p9, %p6110_p4 }
  0xb0   : > { %6120 = shalt.err (!%p6117_p10)
}
  0xb1   : > { %5768 = dma.hbm_to_vmem [thread:$0]  (!%p7111_p5), %s6951_s30, 16, %s7117_s16, [#allocation14]  }
  0xb2   : > { %s6844_s10 = smov [#allocation16]   ;;  %s6845_s7 = smov [#allocation19]  }
  0xb3   : > { %s1100_s23 = sshll.u32 %s6844_s10, 4  ;;  %s1136_s15 = sshll.u32 %s6845_s7, 4  ;;  %s1101_s23 = int_to_ptr.vmem [resolvable:$true] %s1100_s23  ;;  %s1137_s15 = int_to_ptr.vmem [resolvable:$true] %s1136_s15 }
  0xb4   : > { %s6121_s2 = scalar_lea.hbm %s6961_s12, 16 }
  0xb5   : > { %p6122_p11 = scmp.ne.s32.totalorder %s6961_s12, %s6121_s2  ;;  %p6128_p13 = scmp.lt.u32.totalorder %s6121_s2, %s6961_s12 }
  0xb7   : > { %p6124_p12 = pnand %p6122_p11, %p7123_p7 }
  0xb9   : > { %p6125_p2 = pneg %p6124_p12 }
  0xbb   : > { %p6130_p0 = pnand %p6128_p13, %p6125_p2 }
  0xbd   : > { %6133 = shalt.err (!%p6130_p0)
}
  0xbe   : > { %s6134_s18 = scalar_lea.vmem %s1101_s23, 16  ;;  %s6141_s16 = scalar_lea.vmem %s1101_s23, 32 }
  0xbf   : > { %p6135_p1 = scmp.ne.s32.totalorder %s1101_s23, %s6134_s18  ;;  %p6142_p8 = scmp.lt.s32.totalorder %s1101_s23, %s1101_s23 }
  0xc0   : > { %p6143_p9 = scmp.lt.s32.totalorder %s6141_s16, %s6134_s18 }
  0xc1   : > { %p6137_p4 = pnand %p6135_p1, %p7123_p7 }
  0xc2   : > { %p6144_p10 = por %p6143_p9, %p6142_p8 }
  0xc3   : > { %p6138_p6 = pneg %p6137_p4 }
  0xc5   : > { %p6145_p3 = pnand %p6144_p10, %p6138_p6 }
  0xc7   : > { %6148 = shalt.err (!%p6145_p3)
}
  0xc8   : > { %5774 = dma.hbm_to_vmem [thread:$0]  (!%p7111_p5), %s6961_s12, 16, %s1101_s23, [#allocation17]  }
  0xc9   : > { %s6149_s1 = scalar_lea.hbm %s6991_s27, 16 }
  0xca   : > { %p6150_p11 = scmp.ne.s32.totalorder %s6991_s27, %s6149_s1  ;;  %p6156_p13 = scmp.lt.u32.totalorder %s6149_s1, %s6991_s27 }
  0xcc   : > { %p6152_p12 = pnand %p6150_p11, %p7123_p7 }
  0xce   : > { %p6153_p2 = pneg %p6152_p12 }
  0xd0   : > { %p6158_p0 = pnand %p6156_p13, %p6153_p2 }
  0xd2   : > { %6161 = shalt.err (!%p6158_p0)
}
  0xd3   : > { %s6162_s10 = scalar_lea.vmem %s1137_s15, 16  ;;  %s6169_s7 = scalar_lea.vmem %s1137_s15, 32 }
  0xd4   : > { %p6163_p3 = scmp.ne.s32.totalorder %s1137_s15, %s6162_s10  ;;  %p6170_p6 = scmp.lt.s32.totalorder %s1137_s15, %s1137_s15 }
  0xd5   : > { %p6171_p8 = scmp.lt.s32.totalorder %s6169_s7, %s6162_s10 }
  0xd6   : > { %p6165_p1 = pnand %p6163_p3, %p7123_p7 }
  0xd7   : > { %p6172_p9 = por %p6171_p8, %p6170_p6 }
  0xd8   : > { %p6166_p4 = pneg %p6165_p1 }
  0xda   : > { %p6173_p10 = pnand %p6172_p9, %p6166_p4 }
  0xdc   : > { %6176 = shalt.err (!%p6173_p10)
}
  0xdd   : > { %5780 = dma.hbm_to_vmem [thread:$0]  (!%p7111_p5), %s6991_s27, 16, %s1137_s15, [#allocation20]  }
  0xde   : > { %s6846_s23 = smov [#allocation22]   ;;  %s6847_s18 = smov [#allocation25]  }
  0xdf   : > { %s1160_s2 = sshll.u32 %s6846_s23, 4  ;;  %s1184_s16 = sshll.u32 %s6847_s18, 4  ;;  %s1161_s2 = int_to_ptr.vmem [resolvable:$true] %s1160_s2  ;;  %s1185_s16 = int_to_ptr.vmem [resolvable:$true] %s1184_s16 }
  0xe0   : > { %s6177_s1 = scalar_lea.hbm %s7001_s17, 16 }
  0xe1   : > { %p6178_p11 = scmp.ne.s32.totalorder %s7001_s17, %s6177_s1  ;;  %p6184_p13 = scmp.lt.u32.totalorder %s6177_s1, %s7001_s17 }
  0xe3   : > { %p6180_p12 = pnand %p6178_p11, %p7123_p7 }
  0xe5   : > { %p6181_p2 = pneg %p6180_p12 }
  0xe7   : > { %p6186_p0 = pnand %p6184_p13, %p6181_p2 }
  0xe9   : > { %6189 = shalt.err (!%p6186_p0)
}
  0xea   : > { %s6190_s10 = scalar_lea.vmem %s1161_s2, 16  ;;  %s6197_s15 = scalar_lea.vmem %s1161_s2, 32 }
  0xeb   : > { %p6191_p3 = scmp.ne.s32.totalorder %s1161_s2, %s6190_s10  ;;  %p6198_p6 = scmp.lt.s32.totalorder %s1161_s2, %s1161_s2 }
  0xec   : > { %p6199_p8 = scmp.lt.s32.totalorder %s6197_s15, %s6190_s10 }
  0xed   : > { %p6193_p1 = pnand %p6191_p3, %p7123_p7 }
  0xee   : > { %p6200_p9 = por %p6199_p8, %p6198_p6 }
  0xef   : > { %p6194_p4 = pneg %p6193_p1 }
  0xf1   : > { %p6201_p10 = pnand %p6200_p9, %p6194_p4 }
  0xf3   : > { %6204 = shalt.err (!%p6201_p10)
}
  0xf4   : > { %5786 = dma.hbm_to_vmem [thread:$0]  (!%p7111_p5), %s7001_s17, 16, %s1161_s2, [#allocation23]  }
  0xf5   : > { %s6205_s7 = scalar_lea.hbm %s7011_s13, 16 }
  0xf6   : > { %p6206_p11 = scmp.ne.s32.totalorder %s7011_s13, %s6205_s7  ;;  %p6212_p13 = scmp.lt.u32.totalorder %s6205_s7, %s7011_s13 }
  0xf8   : > { %p6208_p12 = pnand %p6206_p11, %p7123_p7 }
  0xfa   : > { %p6209_p2 = pneg %p6208_p12 }
  0xfc   : > { %p6214_p0 = pnand %p6212_p13, %p6209_p2 }
  0xfe   : > { %6217 = shalt.err (!%p6214_p0)
}
  0xff   : > { %s6218_s23 = scalar_lea.vmem %s1185_s16, 16  ;;  %s6225_s18 = scalar_lea.vmem %s1185_s16, 32 }
 0x100   : > { %p6219_p3 = scmp.ne.s32.totalorder %s1185_s16, %s6218_s23  ;;  %p6226_p6 = scmp.lt.s32.totalorder %s1185_s16, %s1185_s16 }
 0x101   : > { %p6227_p8 = scmp.lt.s32.totalorder %s6225_s18, %s6218_s23 }
 0x102   : > { %p6221_p1 = pnand %p6219_p3, %p7123_p7 }
 0x103   : > { %p6228_p9 = por %p6227_p8, %p6226_p6 }
 0x104   : > { %p6222_p4 = pneg %p6221_p1 }
 0x106   : > { %p6229_p10 = pnand %p6228_p9, %p6222_p4 }
 0x108   : > { %6232 = shalt.err (!%p6229_p10)
}
 0x109   : > { %5792 = dma.hbm_to_vmem [thread:$0]  (!%p7111_p5), %s7011_s13, 16, %s1185_s16, [#allocation26]  }
 0x10a   : > { %s6848_s2 = smov [#allocation28]   ;;  %s6849_s10 = smov [#allocation31]  }
 0x10b   : > { %s1208_s1 = sshll.u32 %s6848_s2, 4  ;;  %s1244_s15 = sshll.u32 %s6849_s10, 4  ;;  %s1209_s1 = int_to_ptr.vmem [resolvable:$true] %s1208_s1  ;;  %s1245_s15 = int_to_ptr.vmem [resolvable:$true] %s1244_s15 }
 0x10c   : > { %s6233_s7 = scalar_lea.hbm %s7894_s5, 16 }
 0x10d   : > { %p6234_p11 = scmp.ne.s32.totalorder %s7894_s5, %s6233_s7  ;;  %p6240_p13 = scmp.lt.u32.totalorder %s6233_s7, %s7894_s5 }
 0x10f   : > { %p6236_p12 = pnand %p6234_p11, %p7123_p7 }
 0x111   : > { %p6237_p2 = pneg %p6236_p12 }
 0x113   : > { %p6242_p0 = pnand %p6240_p13, %p6237_p2 }
 0x115   : > { %6245 = shalt.err (!%p6242_p0)
}
 0x116   : > { %s6246_s23 = scalar_lea.vmem %s1209_s1, 16  ;;  %s6253_s16 = scalar_lea.vmem %s1209_s1, 32 }
 0x117   : > { %p6247_p3 = scmp.ne.s32.totalorder %s1209_s1, %s6246_s23  ;;  %p6254_p6 = scmp.lt.s32.totalorder %s1209_s1, %s1209_s1 }
 0x118   : > { %p6255_p8 = scmp.lt.s32.totalorder %s6253_s16, %s6246_s23 }
 0x119   : > { %p6249_p1 = pnand %p6247_p3, %p7123_p7 }
 0x11a   : > { %p6256_p9 = por %p6255_p8, %p6254_p6 }
 0x11b   : > { %p6250_p4 = pneg %p6249_p1 }
 0x11d   : > { %p6257_p10 = pnand %p6256_p9, %p6250_p4 }
 0x11f   : > { %6260 = shalt.err (!%p6257_p10)
}
 0x120   : > { %5798 = dma.hbm_to_vmem [thread:$0]  (!%p7111_p5), %s7894_s5, 16, %s1209_s1, [#allocation29]  }
 0x121   : > { %s6261_s18 = scalar_lea.hbm %s7896_s4, 16 }
 0x122   : > { %p6262_p11 = scmp.ne.s32.totalorder %s7896_s4, %s6261_s18  ;;  %p6268_p13 = scmp.lt.u32.totalorder %s6261_s18, %s7896_s4 }
 0x124   : > { %p6264_p12 = pnand %p6262_p11, %p7123_p7 }
 0x126   : > { %p6265_p2 = pneg %p6264_p12 }
 0x128   : > { %p6270_p0 = pnand %p6268_p13, %p6265_p2 }
 0x12a   : > { %6273 = shalt.err (!%p6270_p0)
}
 0x12b   : > { %s6274_s2 = scalar_lea.vmem %s1245_s15, 16  ;;  %s6281_s10 = scalar_lea.vmem %s1245_s15, 32 }
 0x12c   : > { %p6275_p3 = scmp.ne.s32.totalorder %s1245_s15, %s6274_s2  ;;  %p6282_p6 = scmp.lt.s32.totalorder %s1245_s15, %s1245_s15 }
 0x12d   : > { %p6283_p8 = scmp.lt.s32.totalorder %s6281_s10, %s6274_s2 }
 0x12e   : > { %p6277_p1 = pnand %p6275_p3, %p7123_p7 }
 0x12f   : > { %p6284_p9 = por %p6283_p8, %p6282_p6 }
 0x130   : > { %p6278_p4 = pneg %p6277_p1 }
 0x132   : > { %p6285_p10 = pnand %p6284_p9, %p6278_p4 }
 0x134   : > { %6288 = shalt.err (!%p6285_p10)
}
 0x135   : > { %5804 = dma.hbm_to_vmem [thread:$0]  (!%p7111_p5), %s7896_s4, 16, %s1245_s15, [#allocation32]  }
 0x136   : > { %s6850_s1 = smov [#allocation34]   ;;  %s6851_s23 = smov [#allocation37]  }
 0x137   : > { %s1268_s7 = sshll.u32 %s6850_s1, 4  ;;  %s1292_s16 = sshll.u32 %s6851_s23, 4  ;;  %s1269_s7 = int_to_ptr.vmem [resolvable:$true] %s1268_s7  ;;  %s1293_s16 = int_to_ptr.vmem [resolvable:$true] %s1292_s16 }
 0x138   : > { %s6289_s18 = scalar_lea.hbm %s7061_s21, 16 }
 0x139   : > { %p6290_p11 = scmp.ne.s32.totalorder %s7061_s21, %s6289_s18  ;;  %p6296_p13 = scmp.lt.u32.totalorder %s6289_s18, %s7061_s21 }
 0x13b   : > { %p6292_p12 = pnand %p6290_p11, %p7123_p7 }
 0x13d   : > { %p6293_p2 = pneg %p6292_p12 }
 0x13f   : > { %p6298_p0 = pnand %p6296_p13, %p6293_p2 }
 0x141   : > { %6301 = shalt.err (!%p6298_p0)
}
 0x142   : > { %s6302_s2 = scalar_lea.vmem %s1269_s7, 16  ;;  %s6309_s15 = scalar_lea.vmem %s1269_s7, 32 }
 0x143   : > { %p6303_p3 = scmp.ne.s32.totalorder %s1269_s7, %s6302_s2  ;;  %p6310_p6 = scmp.lt.s32.totalorder %s1269_s7, %s1269_s7 }
 0x144   : > { %p6311_p8 = scmp.lt.s32.totalorder %s6309_s15, %s6302_s2 }
 0x145   : > { %p6305_p1 = pnand %p6303_p3, %p7123_p7 }
 0x146   : > { %p6312_p9 = por %p6311_p8, %p6310_p6 }
 0x147   : > { %p6306_p4 = pneg %p6305_p1 }
 0x149   : > { %p6313_p10 = pnand %p6312_p9, %p6306_p4 }
 0x14b   : > { %6316 = shalt.err (!%p6313_p10)
}
 0x14c   : > { %5810 = dma.hbm_to_vmem [thread:$0]  (!%p7111_p5), %s7061_s21, 16, %s1269_s7, [#allocation35]  }
 0x14d   : > { %s6317_s10 = scalar_lea.hbm %s7893_s6, 16 }
 0x14e   : > { %p6318_p11 = scmp.ne.s32.totalorder %s7893_s6, %s6317_s10  ;;  %p6324_p13 = scmp.lt.u32.totalorder %s6317_s10, %s7893_s6 }
 0x150   : > { %p6320_p12 = pnand %p6318_p11, %p7123_p7 }
 0x152   : > { %p6321_p2 = pneg %p6320_p12 }
 0x154   : > { %p6326_p0 = pnand %p6324_p13, %p6321_p2 }
 0x156   : > { %6329 = shalt.err (!%p6326_p0)
}
 0x157   : > { %s6330_s1 = scalar_lea.vmem %s1293_s16, 16  ;;  %s6337_s23 = scalar_lea.vmem %s1293_s16, 32 }
 0x158   : > { %p6331_p3 = scmp.ne.s32.totalorder %s1293_s16, %s6330_s1  ;;  %p6338_p6 = scmp.lt.s32.totalorder %s1293_s16, %s1293_s16 }
 0x159   : > { %p6339_p8 = scmp.lt.s32.totalorder %s6337_s23, %s6330_s1 }
 0x15a   : > { %p6333_p1 = pnand %p6331_p3, %p7123_p7 }
 0x15b   : > { %p6340_p9 = por %p6339_p8, %p6338_p6 }
 0x15c   : > { %p6334_p4 = pneg %p6333_p1 }
 0x15e   : > { %p6341_p10 = pnand %p6340_p9, %p6334_p4 }
 0x160   : > { %6344 = shalt.err (!%p6341_p10)
}
 0x161   : > { %5816 = dma.hbm_to_vmem [thread:$0]  (!%p7111_p5), %s7893_s6, 16, %s1293_s16, [#allocation38]  }
 0x162   : > { %s6852_s7 = smov [#allocation2]   ;;  %s6345_s2 = scalar_lea.hbm %s6916_s25, 384 }
 0x163   : > { %s990_s18 = sshll.u32 %s6852_s7, 4  ;;  %p6346_p11 = scmp.ne.s32.totalorder %s6916_s25, %s6345_s2  ;;  %s991_s18 = int_to_ptr.vmem [resolvable:$true] %s990_s18 }
 0x164   : > { %p6352_p13 = scmp.lt.u32.totalorder %s6345_s2, %s6916_s25 }
 0x165   : > { %p6348_p12 = pnand %p6346_p11, %p7123_p7 }
 0x167   : > { %p6349_p2 = pneg %p6348_p12 }
 0x169   : > { %p6354_p0 = pnand %p6352_p13, %p6349_p2 }
 0x16b   : > { %6357 = shalt.err (!%p6354_p0)
}
 0x16c   : > { %s6358_s15 = scalar_lea.vmem %s991_s18, 384  ;;  %p6366_p6 = scmp.lt.s32.totalorder %s991_s18, %s991_s18 }
 0x16d   : > { %p6359_p3 = scmp.ne.s32.totalorder %s991_s18, %s6358_s15  ;;  %p6367_p8 = scmp.lt.s32.totalorder %s6358_s15, %s6358_s15 }
 0x16f   : > { %p6361_p1 = pnand %p6359_p3, %p7123_p7  ;;  %p6368_p9 = por %p6367_p8, %p6366_p6 }
 0x171   : > { %p6362_p4 = pneg %p6361_p1 }
 0x173   : > { %p6369_p10 = pnand %p6368_p9, %p6362_p4 }
 0x175   : > { %6372 = shalt.err (!%p6369_p10)
}
 0x176   : > { %s6853_s16 = smov 128   ;;  %s6854_s10 = smov 8  }
 0x177   : > { %5747 = dma.hbm_to_vmem [thread:$0]  (!%p7111_p5), %s6916_s25, 384, %s991_s18, [#allocation3], %s6853_s16, %s6853_s16, %s6854_s10  }
 0x178   : > { %s6855_s1 = smov [#allocation6]   ;;  %s6856_s7 = smov [#allocation9]  }
 0x179   : > { %s1014_s23 = sshll.u32 %s6855_s1, 4  ;;  %s1038_s2 = sshll.u32 %s6856_s7, 4  ;;  %s1015_s23 = int_to_ptr.vmem [resolvable:$true] %s1014_s23  ;;  %s7282_s2 = int_to_ptr.vmem [resolvable:$true] %s1038_s2 }
 0x17a   : > { %s6373_s15 = scalar_lea.hbm %s7895_s3, 512 }
 0x17b   : > { %p6374_p11 = scmp.ne.s32.totalorder %s7895_s3, %s6373_s15  ;;  %p6380_p13 = scmp.lt.u32.totalorder %s6373_s15, %s7895_s3 }
 0x17d   : > { %p6376_p12 = pnand %p6374_p11, %p7123_p7 }
 0x17f   : > { %p6377_p2 = pneg %p6376_p12 }
 0x181   : > { %p6382_p0 = pnand %p6380_p13, %p6377_p2 }
 0x183   : > { %6385 = shalt.err (!%p6382_p0)
}
 0x184   : > { %s6386_s4 = scalar_lea.vmem %s1015_s23, 512  ;;  %p6394_p6 = scmp.lt.s32.totalorder %s1015_s23, %s1015_s23 }
 0x185   : > { %p6387_p3 = scmp.ne.s32.totalorder %s1015_s23, %s6386_s4  ;;  %p6395_p8 = scmp.lt.s32.totalorder %s6386_s4, %s6386_s4 }
 0x187   : > { %p6389_p1 = pnand %p6387_p3, %p7123_p7  ;;  %p6396_p9 = por %p6395_p8, %p6394_p6 }
 0x189   : > { %p6390_p4 = pneg %p6389_p1 }
 0x18b   : > { %p6397_p10 = pnand %p6396_p9, %p6390_p4 }
 0x18d   : > { %6400 = shalt.err (!%p6397_p10)
}
 0x18e   : > { %5753 = dma.hbm_to_vmem [thread:$0]  (!%p7111_p5), %s7895_s3, 512, %s1015_s23, [#allocation5], %s6853_s16, %s6853_s16, %s6854_s10  }
 0x18f   : > { %s6401_s18 = scalar_lea.hbm %s6936_s14, 512 }
 0x190   : > { %p6402_p11 = scmp.ne.s32.totalorder %s6936_s14, %s6401_s18  ;;  %p6408_p13 = scmp.lt.u32.totalorder %s6401_s18, %s6936_s14 }
 0x192   : > { %p6404_p12 = pnand %p6402_p11, %p7123_p7 }
 0x194   : > { %p6405_p2 = pneg %p6404_p12 }
 0x196   : > { %p6410_p0 = pnand %p6408_p13, %p6405_p2 }
 0x198   : > { %6413 = shalt.err (!%p6410_p0)
}
 0x199   : > { %s6414_s4 = scalar_lea.vmem %s7282_s2, 512  ;;  %p6422_p6 = scmp.lt.s32.totalorder %s7282_s2, %s7282_s2 }
 0x19a   : > { %p6415_p3 = scmp.ne.s32.totalorder %s7282_s2, %s6414_s4  ;;  %p6423_p8 = scmp.lt.s32.totalorder %s6414_s4, %s6414_s4 }
 0x19c   : > { %p6417_p1 = pnand %p6415_p3, %p7123_p7  ;;  %p6424_p9 = por %p6423_p8, %p6422_p6 }
 0x19e   : > { %p6418_p4 = pneg %p6417_p1 }
 0x1a0   : > { %p6425_p10 = pnand %p6424_p9, %p6418_p4 }
 0x1a2   : > { %6428 = shalt.err (!%p6425_p10)
}
 0x1a3   : > { %s7900_s1 = sld [smem:[#allocation62_spill]]  ;;  %s6857_s23 = smov [#allocation12]  }
 0x1a4   : > { %5759 = dma.hbm_to_vmem [thread:$0]  (!%p7111_p5), %s6936_s14, 512, %s7282_s2, [#allocation8], %s6853_s16, %s6853_s16, %s6854_s10  }
 0x1a5   : > { %s1062_s7 = sshll.u32 %s6857_s23, 4  ;;  %s6858_s15 = smov [#allocation15]   ;;  %s1063_s7 = int_to_ptr.vmem [resolvable:$true] %s1062_s7 }
 0x1a6   : > { %s1086_s18 = sshll.u32 %s6858_s15, 4  ;;  %s7315_s18 = int_to_ptr.vmem [resolvable:$true] %s1086_s18 }
 0x1a9   : > { %s6429_s4 = scalar_lea.hbm %s7900_s1, 512 }
 0x1aa   : > { %p6430_p11 = scmp.ne.s32.totalorder %s7900_s1, %s6429_s4  ;;  %p6436_p13 = scmp.lt.u32.totalorder %s6429_s4, %s7900_s1 }
 0x1ac   : > { %p6432_p12 = pnand %p6430_p11, %p7123_p7 }
 0x1ae   : > { %p6433_p2 = pneg %p6432_p12 }
 0x1b0   : > { %p6438_p0 = pnand %p6436_p13, %p6433_p2 }
 0x1b2   : > { %6441 = shalt.err (!%p6438_p0)
}
 0x1b3   : > { %s6442_s3 = scalar_lea.vmem %s1063_s7, 512  ;;  %p6450_p6 = scmp.lt.s32.totalorder %s1063_s7, %s1063_s7 }
 0x1b4   : > { %p6443_p3 = scmp.ne.s32.totalorder %s1063_s7, %s6442_s3  ;;  %p6451_p8 = scmp.lt.s32.totalorder %s6442_s3, %s6442_s3 }
 0x1b6   : > { %p6445_p1 = pnand %p6443_p3, %p7123_p7  ;;  %p6452_p9 = por %p6451_p8, %p6450_p6 }
 0x1b8   : > { %p6446_p4 = pneg %p6445_p1 }
 0x1ba   : > { %p6453_p10 = pnand %p6452_p9, %p6446_p4 }
 0x1bc   : > { %6456 = shalt.err (!%p6453_p10)
}
 0x1bd   : > { %s7901_s2 = sld [smem:[#allocation63_spill]] }
 0x1be   : > { %5765 = dma.hbm_to_vmem [thread:$0]  (!%p7111_p5), %s7900_s1, 512, %s1063_s7, [#allocation11], %s6853_s16, %s6853_s16, %s6854_s10  }
 0x1c3   : > { %s6457_s23 = scalar_lea.hbm %s7901_s2, 1024 }
 0x1c4   : > { %p6458_p11 = scmp.ne.s32.totalorder %s7901_s2, %s6457_s23  ;;  %p6464_p13 = scmp.lt.u32.totalorder %s6457_s23, %s7901_s2 }
 0x1c6   : > { %p6460_p12 = pnand %p6458_p11, %p7123_p7 }
 0x1c8   : > { %p6461_p2 = pneg %p6460_p12 }
 0x1ca   : > { %p6466_p0 = pnand %p6464_p13, %p6461_p2 }
 0x1cc   : > { %6469 = shalt.err (!%p6466_p0)
}
 0x1cd   : > { %s6470_s3 = scalar_lea.vmem %s7315_s18, 1024  ;;  %p6478_p6 = scmp.lt.s32.totalorder %s7315_s18, %s7315_s18 }
 0x1ce   : > { %p6471_p3 = scmp.ne.s32.totalorder %s7315_s18, %s6470_s3  ;;  %p6479_p8 = scmp.lt.s32.totalorder %s6470_s3, %s6470_s3 }
 0x1d0   : > { %p6473_p1 = pnand %p6471_p3, %p7123_p7  ;;  %p6480_p9 = por %p6479_p8, %p6478_p6 }
 0x1d2   : > { %p6474_p4 = pneg %p6473_p1 }
 0x1d4   : > { %p6481_p10 = pnand %p6480_p9, %p6474_p4 }
 0x1d6   : > { %6484 = shalt.err (!%p6481_p10)
}
 0x1d7   : > { %s7902_s7 = sld [smem:[#allocation68_spill]]  ;;  %s6859_s15 = smov [#allocation18]  }
 0x1d8   : > { %5771 = dma.hbm_to_vmem [thread:$0]  (!%p7111_p5), %s7901_s2, 1024, %s7315_s18, [#allocation14], %s6853_s16, %s6853_s16, %s6854_s10  }
 0x1d9   : > { %s1122_s4 = sshll.u32 %s6859_s15, 4  ;;  %s6860_s23 = smov [#allocation21]   ;;  %s1123_s4 = int_to_ptr.vmem [resolvable:$true] %s1122_s4 }
 0x1da   : > { %s1146_s1 = sshll.u32 %s6860_s23, 4  ;;  %s7348_s1 = int_to_ptr.vmem [resolvable:$true] %s1146_s1 }
 0x1dd   : > { %s6485_s3 = scalar_lea.hbm %s7902_s7, 512 }
 0x1de   : > { %p6486_p11 = scmp.ne.s32.totalorder %s7902_s7, %s6485_s3  ;;  %p6492_p13 = scmp.lt.u32.totalorder %s6485_s3, %s7902_s7 }
 0x1e0   : > { %p6488_p12 = pnand %p6486_p11, %p7123_p7 }
 0x1e2   : > { %p6489_p2 = pneg %p6488_p12 }
 0x1e4   : > { %p6494_p0 = pnand %p6492_p13, %p6489_p2 }
 0x1e6   : > { %6497 = shalt.err (!%p6494_p0)
}
 0x1e7   : > { %s6498_s5 = scalar_lea.vmem %s1123_s4, 512  ;;  %p6506_p6 = scmp.lt.s32.totalorder %s1123_s4, %s1123_s4 }
 0x1e8   : > { %p6499_p3 = scmp.ne.s32.totalorder %s1123_s4, %s6498_s5  ;;  %p6507_p8 = scmp.lt.s32.totalorder %s6498_s5, %s6498_s5 }
 0x1ea   : > { %p6501_p1 = pnand %p6499_p3, %p7123_p7  ;;  %p6508_p9 = por %p6507_p8, %p6506_p6 }
 0x1ec   : > { %p6502_p4 = pneg %p6501_p1 }
 0x1ee   : > { %p6509_p10 = pnand %p6508_p9, %p6502_p4 }
 0x1f0   : > { %6512 = shalt.err (!%p6509_p10)
}
 0x1f1   : > { %s7903_s18 = sld [smem:[#allocation69_spill]] }
 0x1f2   : > { %5777 = dma.hbm_to_vmem [thread:$0]  (!%p7111_p5), %s7902_s7, 512, %s1123_s4, [#allocation17], %s6853_s16, %s6853_s16, %s6854_s10  }
 0x1f7   : > { %s6513_s15 = scalar_lea.hbm %s7903_s18, 512 }
 0x1f8   : > { %p6514_p11 = scmp.ne.s32.totalorder %s7903_s18, %s6513_s15  ;;  %p6520_p13 = scmp.lt.u32.totalorder %s6513_s15, %s7903_s18 }
 0x1fa   : > { %p6516_p12 = pnand %p6514_p11, %p7123_p7 }
 0x1fc   : > { %p6517_p2 = pneg %p6516_p12 }
 0x1fe   : > { %p6522_p0 = pnand %p6520_p13, %p6517_p2 }
 0x200   : > { %6525 = shalt.err (!%p6522_p0)
}
 0x201   : > { %s6526_s5 = scalar_lea.vmem %s7348_s1, 512  ;;  %p6534_p6 = scmp.lt.s32.totalorder %s7348_s1, %s7348_s1 }
 0x202   : > { %p6527_p3 = scmp.ne.s32.totalorder %s7348_s1, %s6526_s5  ;;  %p6535_p8 = scmp.lt.s32.totalorder %s6526_s5, %s6526_s5 }
 0x204   : > { %p6529_p1 = pnand %p6527_p3, %p7123_p7  ;;  %p6536_p9 = por %p6535_p8, %p6534_p6 }
 0x206   : > { %p6530_p4 = pneg %p6529_p1 }
 0x208   : > { %p6537_p10 = pnand %p6536_p9, %p6530_p4 }
 0x20a   : > { %6540 = shalt.err (!%p6537_p10)
}
 0x20b   : > { %s7904_s4 = sld [smem:[#allocation70_spill]]  ;;  %s6861_s23 = smov [#allocation24]  }
 0x20c   : > { %5783 = dma.hbm_to_vmem [thread:$0]  (!%p7111_p5), %s7903_s18, 512, %s7348_s1, [#allocation20], %s6853_s16, %s6853_s16, %s6854_s10  }
 0x20d   : > { %s1170_s3 = sshll.u32 %s6861_s23, 4  ;;  %s6862_s15 = smov [#allocation27]   ;;  %s1171_s3 = int_to_ptr.vmem [resolvable:$true] %s1170_s3 }
 0x20e   : > { %s1194_s2 = sshll.u32 %s6862_s15, 4  ;;  %s7381_s2 = int_to_ptr.vmem [resolvable:$true] %s1194_s2 }
 0x211   : > { %s6541_s5 = scalar_lea.hbm %s7904_s4, 512 }
 0x212   : > { %p6542_p11 = scmp.ne.s32.totalorder %s7904_s4, %s6541_s5  ;;  %p6548_p13 = scmp.lt.u32.totalorder %s6541_s5, %s7904_s4 }
 0x214   : > { %p6544_p12 = pnand %p6542_p11, %p7123_p7 }
 0x216   : > { %p6545_p2 = pneg %p6544_p12 }
 0x218   : > { %p6550_p0 = pnand %p6548_p13, %p6545_p2 }
 0x21a   : > { %6553 = shalt.err (!%p6550_p0)
}
 0x21b   : > { %s6554_s6 = scalar_lea.vmem %s1171_s3, 512  ;;  %p6562_p6 = scmp.lt.s32.totalorder %s1171_s3, %s1171_s3 }
 0x21c   : > { %p6555_p3 = scmp.ne.s32.totalorder %s1171_s3, %s6554_s6  ;;  %p6563_p8 = scmp.lt.s32.totalorder %s6554_s6, %s6554_s6 }
 0x21e   : > { %p6557_p1 = pnand %p6555_p3, %p7123_p7  ;;  %p6564_p9 = por %p6563_p8, %p6562_p6 }
 0x220   : > { %p6558_p4 = pneg %p6557_p1 }
 0x222   : > { %p6565_p10 = pnand %p6564_p9, %p6558_p4 }
 0x224   : > { %6568 = shalt.err (!%p6565_p10)
}
 0x225   : > { %s7905_s1 = sld [smem:[#allocation71_spill]] }
 0x226   : > { %5789 = dma.hbm_to_vmem [thread:$0]  (!%p7111_p5), %s7904_s4, 512, %s1171_s3, [#allocation23], %s6853_s16, %s6853_s16, %s6854_s10  }
 0x22b   : > { %s6569_s23 = scalar_lea.hbm %s7905_s1, 1024 }
 0x22c   : > { %p6570_p11 = scmp.ne.s32.totalorder %s7905_s1, %s6569_s23  ;;  %p6576_p13 = scmp.lt.u32.totalorder %s6569_s23, %s7905_s1 }
 0x22e   : > { %p6572_p12 = pnand %p6570_p11, %p7123_p7 }
 0x230   : > { %p6573_p2 = pneg %p6572_p12 }
 0x232   : > { %p6578_p0 = pnand %p6576_p13, %p6573_p2 }
 0x234   : > { %6581 = shalt.err (!%p6578_p0)
}
 0x235   : > { %s6582_s6 = scalar_lea.vmem %s7381_s2, 1024  ;;  %p6590_p6 = scmp.lt.s32.totalorder %s7381_s2, %s7381_s2 }
 0x236   : > { %p6583_p3 = scmp.ne.s32.totalorder %s7381_s2, %s6582_s6  ;;  %p6591_p8 = scmp.lt.s32.totalorder %s6582_s6, %s6582_s6 }
 0x238   : > { %p6585_p1 = pnand %p6583_p3, %p7123_p7  ;;  %p6592_p9 = por %p6591_p8, %p6590_p6 }
 0x23a   : > { %p6586_p4 = pneg %p6585_p1 }
 0x23c   : > { %p6593_p10 = pnand %p6592_p9, %p6586_p4 }
 0x23e   : > { %6596 = shalt.err (!%p6593_p10)
}
 0x23f   : > { %s7906_s3 = sld [smem:[#allocation77_spill]]  ;;  %s6863_s15 = smov [#allocation30]  }
 0x240   : > { %5795 = dma.hbm_to_vmem [thread:$0]  (!%p7111_p5), %s7905_s1, 1024, %s7381_s2, [#allocation26], %s6853_s16, %s6853_s16, %s6854_s10  }
 0x241   : > { %s1230_s5 = sshll.u32 %s6863_s15, 4  ;;  %s6864_s23 = smov [#allocation33]   ;;  %s1231_s5 = int_to_ptr.vmem [resolvable:$true] %s1230_s5 }
 0x242   : > { %s1254_s4 = sshll.u32 %s6864_s23, 4  ;;  %s7414_s4 = int_to_ptr.vmem [resolvable:$true] %s1254_s4 }
 0x245   : > { %s6597_s6 = scalar_lea.hbm %s7906_s3, 512 }
 0x246   : > { %p6598_p11 = scmp.ne.s32.totalorder %s7906_s3, %s6597_s6  ;;  %p6604_p13 = scmp.lt.u32.totalorder %s6597_s6, %s7906_s3 }
 0x248   : > { %p6600_p12 = pnand %p6598_p11, %p7123_p7 }
 0x24a   : > { %p6601_p2 = pneg %p6600_p12 }
 0x24c   : > { %p6606_p0 = pnand %p6604_p13, %p6601_p2 }
 0x24e   : > { %6609 = shalt.err (!%p6606_p0)
}
 0x24f   : > { %s6610_s7 = scalar_lea.vmem %s1231_s5, 512  ;;  %p6618_p6 = scmp.lt.s32.totalorder %s1231_s5, %s1231_s5 }
 0x250   : > { %p6611_p3 = scmp.ne.s32.totalorder %s1231_s5, %s6610_s7  ;;  %p6619_p8 = scmp.lt.s32.totalorder %s6610_s7, %s6610_s7 }
 0x252   : > { %p6613_p1 = pnand %p6611_p3, %p7123_p7  ;;  %p6620_p9 = por %p6619_p8, %p6618_p6 }
 0x254   : > { %p6614_p4 = pneg %p6613_p1 }
 0x256   : > { %p6621_p10 = pnand %p6620_p9, %p6614_p4 }
 0x258   : > { %6624 = shalt.err (!%p6621_p10)
}
 0x259   : > { %s7907_s2 = sld [smem:[#allocation79_spill]] }
 0x25a   : > { %5801 = dma.hbm_to_vmem [thread:$0]  (!%p7111_p5), %s7906_s3, 512, %s1231_s5, [#allocation29], %s6853_s16, %s6853_s16, %s6854_s10  }
 0x25f   : > { %s6625_s15 = scalar_lea.hbm %s7907_s2, 1024 }
 0x260   : > { %p6626_p11 = scmp.ne.s32.totalorder %s7907_s2, %s6625_s15  ;;  %p6632_p13 = scmp.lt.u32.totalorder %s6625_s15, %s7907_s2 }
 0x262   : > { %p6628_p12 = pnand %p6626_p11, %p7123_p7 }
 0x264   : > { %p6629_p2 = pneg %p6628_p12 }
 0x266   : > { %p6634_p0 = pnand %p6632_p13, %p6629_p2 }
 0x268   : > { %6637 = shalt.err (!%p6634_p0)
}
 0x269   : > { %s6638_s7 = scalar_lea.vmem %s7414_s4, 1024  ;;  %p6646_p6 = scmp.lt.s32.totalorder %s7414_s4, %s7414_s4 }
 0x26a   : > { %p6639_p3 = scmp.ne.s32.totalorder %s7414_s4, %s6638_s7  ;;  %p6647_p8 = scmp.lt.s32.totalorder %s6638_s7, %s6638_s7 }
 0x26c   : > { %p6641_p1 = pnand %p6639_p3, %p7123_p7  ;;  %p6648_p9 = por %p6647_p8, %p6646_p6 }
 0x26e   : > { %p6642_p4 = pneg %p6641_p1 }
 0x270   : > { %p6649_p10 = pnand %p6648_p9, %p6642_p4 }
 0x272   : > { %6652 = shalt.err (!%p6649_p10)
}
 0x273   : > { %s7908_s5 = sld [smem:[#allocation80_spill]]  ;;  %s6865_s23 = smov [#allocation36]  }
 0x274   : > { %5807 = dma.hbm_to_vmem [thread:$0]  (!%p7111_p5), %s7907_s2, 1024, %s7414_s4, [#allocation32], %s6853_s16, %s6853_s16, %s6854_s10  }
 0x275   : > { %s1278_s6 = sshll.u32 %s6865_s23, 4  ;;  %s6866_s15 = smov [#allocation39]   ;;  %s1279_s6 = int_to_ptr.vmem [resolvable:$true] %s1278_s6 }
 0x276   : > { %s1302_s1 = sshll.u32 %s6866_s15, 4  ;;  %s7447_s1 = int_to_ptr.vmem [resolvable:$true] %s1302_s1 }
 0x279   : > { %s6653_s7 = scalar_lea.hbm %s7908_s5, 512 }
 0x27a   : > { %p6654_p11 = scmp.ne.s32.totalorder %s7908_s5, %s6653_s7  ;;  %p6660_p13 = scmp.lt.u32.totalorder %s6653_s7, %s7908_s5 }
 0x27c   : > { %p6656_p12 = pnand %p6654_p11, %p7123_p7 }
 0x27e   : > { %p6657_p2 = pneg %p6656_p12 }
 0x280   : > { %p6662_p0 = pnand %p6660_p13, %p6657_p2 }
 0x282   : > { %6665 = shalt.err (!%p6662_p0)
}
 0x283   : > { %s6666_s3 = scalar_lea.vmem %s1279_s6, 512  ;;  %p6674_p6 = scmp.lt.s32.totalorder %s1279_s6, %s1279_s6 }
 0x284   : > { %p6667_p3 = scmp.ne.s32.totalorder %s1279_s6, %s6666_s3  ;;  %p6675_p8 = scmp.lt.s32.totalorder %s6666_s3, %s6666_s3 }
 0x286   : > { %p6669_p1 = pnand %p6667_p3, %p7123_p7  ;;  %p6676_p9 = por %p6675_p8, %p6674_p6 }
 0x288   : > { %p6670_p4 = pneg %p6669_p1 }
 0x28a   : > { %p6677_p10 = pnand %p6676_p9, %p6670_p4 }
 0x28c   : > { %6680 = shalt.err (!%p6677_p10)
}
 0x28d   : > { %5813 = dma.hbm_to_vmem [thread:$0]  (!%p7111_p5), %s7908_s5, 512, %s1279_s6, [#allocation35], %s6853_s16, %s6853_s16, %s6854_s10  }
 0x28e   : > { %s6681_s4 = scalar_lea.hbm %s7076_s9, 512 }
 0x28f   : > { %p6682_p11 = scmp.ne.s32.totalorder %s7076_s9, %s6681_s4  ;;  %p6688_p13 = scmp.lt.u32.totalorder %s6681_s4, %s7076_s9 }
 0x291   : > { %p6684_p12 = pnand %p6682_p11, %p7123_p7 }
 0x293   : > { %p6685_p2 = pneg %p6684_p12 }
 0x295   : > { %p6690_p0 = pnand %p6688_p13, %p6685_p2 }
 0x297   : > { %6693 = shalt.err (!%p6690_p0)
}
 0x298   : > { %s6694_s3 = scalar_lea.vmem %s7447_s1, 512  ;;  %p6702_p6 = scmp.lt.s32.totalorder %s7447_s1, %s7447_s1 }
 0x299   : > { %p6695_p3 = scmp.ne.s32.totalorder %s7447_s1, %s6694_s3  ;;  %p6703_p8 = scmp.lt.s32.totalorder %s6694_s3, %s6694_s3 }
 0x29b   : > { %p6697_p1 = pnand %p6695_p3, %p7123_p7  ;;  %p6704_p9 = por %p6703_p8, %p6702_p6 }
 0x29d   : > { %p6698_p4 = pneg %p6697_p1 }
 0x29f   : > { %p6705_p10 = pnand %p6704_p9, %p6698_p4 }
 0x2a1   : > { %6708 = shalt.err (!%p6705_p10)
}
 0x2a2   : > { %5819 = dma.hbm_to_vmem [thread:$0]  (!%p7111_p5), %s7076_s9, 512, %s7447_s1, [#allocation38], %s6853_s16, %s6853_s16, %s6854_s10  }
 0x2a3   : > { %s6867_s23 = smov [#allocation40]   ;;  %s6709_s15 = scalar_lea.hbm %s7081_s24, 16 }
 0x2a4   : > { %s1316_s6 = sshll.u32 %s6867_s23, 4  ;;  %p6710_p11 = scmp.ne.s32.totalorder %s7081_s24, %s6709_s15  ;;  %s1317_s6 = int_to_ptr.vmem [resolvable:$true] %s1316_s6 }
 0x2a5   : > { %p6716_p13 = scmp.lt.u32.totalorder %s6709_s15, %s7081_s24 }
 0x2a6   : > { %p6712_p12 = pnand %p6710_p11, %p7123_p7 }
 0x2a8   : > { %p6713_p2 = pneg %p6712_p12 }
 0x2aa   : > { %p6718_p0 = pnand %p6716_p13, %p6713_p2 }
 0x2ac   : > { %6721 = shalt.err (!%p6718_p0)
}
 0x2ad   : > { %s6722_s7 = scalar_lea.vmem %s1317_s6, 16  ;;  %s6729_s4 = scalar_lea.vmem %s1317_s6, 32 }
 0x2ae   : > { %p6723_p3 = scmp.ne.s32.totalorder %s1317_s6, %s6722_s7  ;;  %p6730_p6 = scmp.lt.s32.totalorder %s1317_s6, %s1317_s6 }
 0x2af   : > { %p6731_p8 = scmp.lt.s32.totalorder %s6729_s4, %s6722_s7 }
 0x2b0   : > { %p6725_p1 = pnand %p6723_p3, %p7123_p7 }
 0x2b1   : > { %p6732_p9 = por %p6731_p8, %p6730_p6 }
 0x2b2   : > { %p6726_p4 = pneg %p6725_p1 }
 0x2b4   : > { %p6733_p10 = pnand %p6732_p9, %p6726_p4 }
 0x2b6   : > { %6736 = shalt.err (!%p6733_p10)
}
 0x2b7   : > { %5822 = dma.hbm_to_vmem [thread:$0]  (!%p7111_p5), %s7081_s24, 16, %s1317_s6, [#allocation41]  }
 0x2b8   : > { %p7909_p11 = scmp.ne.s32.totalorder %s7897_s28, 0 }
 0x2b9   : > { %p7910_p12 = scmp.eq.s32.totalorder (!%p7909_p11), %s7094_s26, 0 }
 0x2ba   : > { %1363 = sbr.rel (%p7909_p11) target bundleno = 9350 (0x2486), region = 176 }
 0x2c1   : > { %6742 = dma.done.wait (%p7910_p12), [#allocation3], 384   ;;  %p7911_p2 = pmov %p7910_p12 }
 0x2c3   : > { %6744 = vsyncadd (%p7911_p2), [#allocation3], 4294966912  ;;  %p7912_p7 = pmov %p7911_p2 }
 0x2c4   : > { %p7913_p13 = pmov %p7911_p2 }
 0x2c5   : > { %6746 = dma.done.wait (%p7912_p7), [#allocation5], 528  }
 0x2c6   : > { %6748 = vsyncadd (%p7913_p13), [#allocation5], 4294966768  ;;  %p7914_p0 = pmov %p7911_p2 }
 0x2c8   : > { %6750 = dma.done.wait (%p7914_p0), [#allocation8], 528   ;;  %p7915_p5 = pmov %p7914_p0 }
 0x2c9   : > { %p7916_p3 = pmov %p7914_p0 }
 0x2ca   : > { %6752 = vsyncadd (%p7915_p5), [#allocation8], 4294966768 }
 0x2cb   : > { %6754 = dma.done.wait (%p7916_p3), [#allocation11], 528   ;;  %p7917_p1 = pmov %p7914_p0 }
 0x2cc   : > { %p7918_p4 = pmov %p7914_p0 }
 0x2cd   : > { %6756 = vsyncadd (%p7917_p1), [#allocation11], 4294966768 }
 0x2ce   : > { %6758 = dma.done.wait (%p7918_p4), [#allocation14], 1040   ;;  %p7919_p6 = pmov %p7914_p0 }
 0x2cf   : > { %p7920_p8 = pmov %p7914_p0 }
 0x2d0   : > { %6760 = vsyncadd (%p7919_p6), [#allocation14], 4294966256 }
 0x2d1   : > { %6762 = dma.done.wait (%p7920_p8), [#allocation17], 528   ;;  %p7921_p9 = pmov %p7914_p0 }
 0x2d2   : > { %p7922_p10 = pmov %p7914_p0 }
 0x2d3   : > { %6764 = vsyncadd (%p7921_p9), [#allocation17], 4294966768 }
 0x2d4   : > { %6766 = dma.done.wait (%p7922_p10), [#allocation20], 528   ;;  %p7923_p11 = pmov %p7914_p0 }
 0x2d5   : > { %p7924_p12 = pmov %p7914_p0 }
 0x2d6   : > { %6768 = vsyncadd (%p7923_p11), [#allocation20], 4294966768 }
 0x2d7   : > { %6770 = dma.done.wait (%p7924_p12), [#allocation23], 528   ;;  %p7925_p2 = pmov %p7914_p0 }
 0x2d8   : > { %p7926_p7 = pmov %p7914_p0 }
 0x2d9   : > { %6772 = vsyncadd (%p7925_p2), [#allocation23], 4294966768 }
 0x2da   : > { %6774 = dma.done.wait (%p7926_p7), [#allocation26], 1040   ;;  %p7927_p13 = pmov %p7914_p0 }
 0x2dc   : > { %6776 = vsyncadd (%p7927_p13), [#allocation26], 4294966256 }
 0x2dd   : > { %6778 = dma.done.wait (%p7914_p0), [#allocation29], 528   ;;  %p7928_p5 = pmov %p7914_p0 }
 0x2de   : > { %p7929_p3 = pmov %p7914_p0 }
 0x2df   : > { %6780 = vsyncadd (%p7928_p5), [#allocation29], 4294966768 }
 0x2e0   : > { %6782 = dma.done.wait (%p7929_p3), [#allocation32], 1040   ;;  %p7930_p1 = pmov %p7914_p0 }
 0x2e1   : > { %p7931_p4 = pmov %p7914_p0 }
 0x2e2   : > { %6784 = vsyncadd (%p7930_p1), [#allocation32], 4294966256 }
 0x2e3   : > { %6786 = dma.done.wait (%p7931_p4), [#allocation35], 528   ;;  %p7932_p6 = pmov %p7914_p0 }
 0x2e4   : > { %p7933_p8 = pmov %p7914_p0 }
 0x2e5   : > { %6788 = vsyncadd (%p7932_p6), [#allocation35], 4294966768 }
 0x2e6   : > { %6790 = dma.done.wait (%p7933_p8), [#allocation38], 528   ;;  %p7934_p9 = pmov %p7914_p0 }
 0x2e7   : > { %p7935_p10 = pmov %p7914_p0 }
 0x2e8   : > { %6792 = vsyncadd (%p7934_p9), [#allocation38], 4294966768 }
 0x2e9   : > { %6794 = dma.done.wait (%p7935_p10), [#allocation41], 16   ;;  %p7936_p11 = pmov %p7914_p0 }
 0x2ea   : > { %s7937_s28 = sld [smem:[#allocation56_spill]]  ;;  %p1571_p12 = scmp.lt.s32.totalorder %s7094_s26, 1  ;;  %v6868_v0 = vmov 0.0|0.0   ;;  %vm6869_vm0 = vmmov 0   ;;  %v6870_v1 = vmov 0.0   ;;  %v1598_v2 = vld [vmem:[#allocation2] sm:$0xff]  ;;  %v1872_v26 = vlaneseq }
 0x2eb   : > { %6796 = vsyncadd (%p7936_p11), [#allocation41], 4294967280  ;;  %5559 = vmatprep.subr.bf16.mxu0 %v6868_v0  ;;  %5302 = vmatprep.mubr.msk.f32.mxu0 %vm6869_vm0, %v6870_v1  ;;  %v1599_v3 = vld [vmem:[#allocation2 + $0x8] sm:$0xff]  ;;  %v1683_v5 = vld [vmem:[#allocation6] sm:$0xff]  ;;  %s7938_s16 = sld [smem:[#allocation57_spill]]  ;;  %vm1608_vm1 = vcmask 195584  }
 0x2ec   : > { %s7953_s26 = smov (!%p1571_p12, %s7094_s26), 1  ;;  %5562 = vmatprep.subr.bf16.mxu1 %v6868_v0  ;;  %5313 = vmatprep.mubr.msk.f32.mxu1 %vm6869_vm0, %v6870_v1  ;;  %v5560_v4 = vpack.c.bf16 %v1599_v3, %v1598_v2  ;;  %v1684_v6 = vld [vmem:[#allocation6 + $0x8] sm:$0xff]  ;;  %v1600_v8 = vld [vmem:[#allocation2 + $0x10] sm:$0xff]  ;;  %v5116_v13 = vld [vmem:[#allocation4] ss:$0 sm:$0xff]  ;;  %vm1717_vm2 = vcmask 261120  }
 0x2ed   : > { %s7559_s11 = sshll.u32 %s7953_s26, 3  ;;  %v5563_v7 = vpack.c.bf16 %v1684_v6, %v1683_v5  ;;  %v1685_v10 = vld [vmem:[#allocation6 + $0x10] sm:$0xff]  ;;  %v1686_v11 = vld [vmem:[#allocation6 + $0x18] sm:$0xff]  ;;  %v5118_v19 = vld [vmem:[#allocation7] ss:$0 sm:$0xff]  ;;  %s6871_s1 = smov 120  }
 0x2ee   : > { %5561 = vmatpush3.bf16.msra.mxu0 %v5560_v4  ;;  %v5566_v12 = vpack.c.bf16 %v1686_v11, %v1685_v10  ;;  %s6872_s3 = smov 96   ;;  %s7939_s23 = sld [smem:[#allocation58_spill]]  ;;  %vm1794_vm3 = vcmask 64512   ;;  %v1873_v27 = vshrl.u32 %v1872_v26, 7  ;;  %v1689_v52 = vld [vmem:[#allocation9 + $0x8] sm:$0xff]  ;;  %v1688_v61 = vld [vmem:[#allocation9] sm:$0xff] }
 0x2ef   : > { %5300 = vmatprep.subr.mxu0 %v6870_v1  ;;  %5564 = vmatpush3.bf16.msra.mxu1 %v5563_v7  ;;  %s6873_s6 = smov 88   ;;  %s6874_s7 = smov 56   ;;  %vm2882_vm4 = vcmask 523264   ;;  %vm4656_vm5 = vcmask 7168   ;;  %vm4648_vm9 = vcmask 23552   ;;  %vm4672_vm10 = vcmask 16384  }
 0x2f0   : > { %s1574_s0 = scalar_lea.vmem %s7937_s28, %s7559_s11  ;;  %5565 = vmatprep.subr.bf16.mxu1 %v6868_v0  ;;  %v1874_v30 = vsub.s32 0, %v1873_v27  ;;  %s6875_s4 = smov 64  }
 0x2f1   : > { %v1593_v9 = vld [vmem:[%s1574_s0] sm:$0xff]  ;;  %s1578_s10 = scalar_lea.vmem %s7938_s16, %s7559_s11  ;;  %s6876_s28 = smov 80  }
 0x2f2   : > { %5301 = vmatpush3.msra.mxu0 %v1600_v8  ;;  %v1594_v14 = vld [vmem:[%s1578_s10] sm:$0xff]  ;;  %s6877_s0 = smov 112   ;;  %s7866_s16 = smov 72  }
 0x2f3   : > { %5303 = vmatmul.mubr.msk.f32.vlgmr.msra.gmra.mrb[0].mxu0 %vm1608_vm1, %v1593_v9  ;;  %5316 = vmatprep.subr.mxu0 %v6870_v1  ;;  %s6879_s10 = smov 104  }
 0x2f4   : > { %5318 = vmatprep.mubr.msk.f32.mxu0 %vm6869_vm0, %v6870_v1  ;;  %5567 = vmatpush3.bf16.msra.mxu1 %v5566_v12  ;;  %s1581_s15 = scalar_lea.vmem %s7939_s23, %s7953_s26  ;;  %s6880_s23 = smov 48  }
 0x2f5   : > { %5321 = vmatprep.subr.mxu1 %v6870_v1  ;;  %v1595_v28 = vld [vmem:[%s1581_s15] sm:$0x1]  ;;  %s7865_s15 = smov 40  }
 0x2f6   : > { %v1870_v29 = vmul.f32 -1e+09, %v1595_v28 }
 0x2f8   : > { %v7598_v31 = vrot.slane %v1870_v29, %v1874_v30  ;;  %v1690_v29 = vld [vmem:[#allocation9 + $0x10] sm:$0xff] }
 0x3c6   : > { %v1678_v15 = vpop.f32.mrb[0].mxu0 }
 0x3c7   : > { %v1679_v16 = vadd.f32 %v5116_v13, %v1678_v15  ;;  %v5304_v17 = vpop.f32.mrb[1].mxu0 }
 0x3c9   : > { %v7571_v18 = vadd.f32 %v1679_v16, %v1594_v14 }
 0x3cb   : > { %5314 = vmatmul.mubr.msk.f32.vlgmr.msra.gmra.mrb[0].mxu1 %vm1717_vm2, %v7571_v18 }
 0x3cc   : > { %5323 = vmatprep.mubr.msk.f32.mxu1 %vm6869_vm0, %v6870_v1 }
 0x49e   : > { %v1787_v20 = vpop.f32.mrb[0].mxu1 }
 0x49f   : > { %v7577_v21 = vadd.f32 %v5118_v19, %v1787_v20  ;;  %v5315_v22 = vpop.f32.mrb[1].mxu1 }
 0x4a1   : > { %1965 = vrot.lane.b32.xlu1 %v7577_v21, %s6871_s1  ;;  %1792 = vrot.lane.b32.xlu0 %v7577_v21, %s6872_s3 }
 0x4a5   : > { %1967 = vrot.lane.b32.xlu0 %v7577_v21, %s6873_s6 }
 0x513   : > { %v1793_v23 = vpop.permute.xlu0 %1792  ;;  %v1966_v25 = vpop.permute.xlu1 %1965 }
 0x514   : > { %5317 = vmatpush3.xpose.msk.msra.mxu0 %vm1794_vm3, %v1793_v23 }
 0x515   : > { %5326 = vmatprep.subr.mxu0 %v6870_v1 }
 0x517   : > { %5319 = vmatmul.mubr.msk.f32.vlgmr.msra.gmra.mrb[2].mxu0 %vm1794_vm3, %v7577_v21  ;;  %v1968_v24 = vpop.permute.xlu0 %1967 }
 0x518   : > { %5327 = vmatpush3.xpose.msk.msra.mxu0 %vm1794_vm3, %v1968_v24  ;;  %5328 = vmatprep.mubr.msk.f32.mxu0 %vm6869_vm0, %v6870_v1 }
 0x519   : > { %5336 = vmatprep.subr.mxu0 %v6870_v1 }
 0x51b   : > { %5329 = vmatmul.mubr.msk.f32.vlgmr.msra.gmra.mrb[4].mxu0 %vm1794_vm3, %v1966_v25 }
 0x51c   : > { %5338 = vmatprep.mubr.msk.f32.mxu0 %vm6869_vm0, %v6870_v1  ;;  %5337 = vmatpush3.msra.mxu0 %v1689_v52  ;;  %v5136_v52 = vld [vmem:[#allocation10] ss:$0 sm:$0xff] }
 0x51d   : > { %5346 = vmatprep.subr.mxu0 %v6870_v1 }
 0x5ea   : > { %v1865_v32 = vpop.f32.mrb[2].mxu0 }
 0x5eb   : > { %v1869_v33 = vmul.f32 0.35355338, %v1865_v32  ;;  %v5320_v34 = vpop.f32.mrb[3].mxu0 }
 0x5ed   : > { %v1877_v35 = vadd.f32 %v7598_v31, %v1869_v33 }
 0x5ee   : > { %v2039_v36 = vpop.f32.mrb[4].mxu0 }
 0x5ef   : > { %v2043_v37 = vmul.f32 0.35355338, %v2039_v36  ;;  %v5330_v38 = vpop.f32.mrb[5].mxu0  ;;  %v1878_v39 = vsel %vm1794_vm3, %v1877_v35, -inf }
 0x5f0   : > { %1879 = vmax.xlane.f32.xlu1 %v1878_v39 }
 0x5f1   : > { %v2044_v40 = vadd.f32 %v2043_v37, %v7598_v31 }
 0x5f3   : > { %v2045_v41 = vsel %vm1794_vm3, %v2044_v40, -inf }
 0x5f4   : > { %2046 = vmax.xlane.f32.xlu0 %v2045_v41 }
 0x67d   : > { %v1880_v42 = vpop.xlane.xlu1 %1879 }
 0x67e   : > { %v1881_v43 = vsub.f32 %v1877_v35, %v1880_v42 }
 0x680   : > { %v1882_v44 = vmul.f32 1.442695, %v1881_v43 }
 0x681   : > { %v2047_v45 = vpop.xlane.xlu0 %2046 }
 0x682   : > { %5967 = vpow2.f32 %v1882_v44  ;;  %v2048_v46 = vsub.f32 %v2044_v40, %v2047_v45  ;;  %v1691_v44 = vld [vmem:[#allocation9 + $0x18] sm:$0xff] }
 0x684   : > { %v2049_v47 = vmul.f32 1.442695, %v2048_v46 }
 0x686   : > { %5969 = vpow2.f32 %v2049_v47 }
 0x68c   : > { %v5968_v48 = vpop.eup %5967 }
 0x68d   : > { %v1884_v49 = vsel %vm1794_vm3, %v5968_v48, 0.0 }
 0x68e   : > { %1885 = vadd.xlane.f32.xlu0 %v1884_v49 }
 0x690   : > { %v5970_v50 = vpop.eup %5969 }
 0x691   : > { %v2051_v51 = vsel %vm1794_vm3, %v5970_v50, 0.0 }
 0x692   : > { %2052 = vadd.xlane.f32.xlu1 %v2051_v51 }
 0x6a3   : > { %2056 = vrot.lane.b32.xlu1 %v7577_v21, %s6874_s7 }
 0x6a4   : > { %1889 = vrot.lane.b32.xlu0 %v7577_v21, %s6875_s4 }
 0x6a7   : > { %2280 = vrot.lane.b32.xlu1 %v7577_v21, %s6876_s28 }
 0x6a8   : > { %2278 = vrot.lane.b32.xlu0 %v7577_v21, %s6877_s0 }
 0x71b   : > { %v1886_v53 = vpop.xlane.xlu0 %1885 }
 0x71c   : > { %5971 = vrcp.f32 %v1886_v53 }
 0x71f   : > { %v2053_v54 = vpop.xlane.xlu1 %2052  ;;  %v1890_v55 = vpop.permute.xlu0 %1889 }
 0x720   : > { %5973 = vrcp.f32 %v2053_v54  ;;  %5322 = vmatpush3.msra.mxu1 %v1890_v55 }
 0x721   : > { %5331 = vmatprep.subr.mxu1 %v6870_v1 }
 0x723   : > { %v2057_v58 = vpop.permute.xlu1 %2056  ;;  %v2279_v5 = vpop.permute.xlu0 %2278 }
 0x726   : > { %v5972_v56 = vpop.eup %5971 }
 0x727   : > { %v1888_v57 = vmul.f32 %v5972_v56, %v5968_v48  ;;  %v2281_v3 = vpop.permute.xlu1 %2280 }
 0x729   : > { %5324 = vmatmul.mubr.msk.f32.vlgmr.msra.gmra.mrb[2].mxu1 %vm1794_vm3, %v1888_v57 }
 0x72a   : > { %v5974_v59 = vpop.eup %5973  ;;  %5332 = vmatpush3.msra.mxu1 %v2057_v58  ;;  %5333 = vmatprep.mubr.msk.f32.mxu1 %vm6869_vm0, %v6870_v1 }
 0x72b   : > { %v2055_v60 = vmul.f32 %v5974_v59, %v5970_v50  ;;  %5341 = vmatprep.subr.mxu1 %v6870_v1 }
 0x72d   : > { %5334 = vmatmul.mubr.msk.f32.vlgmr.msra.gmra.mrb[4].mxu1 %vm1794_vm3, %v2055_v60 }
 0x72e   : > { %5343 = vmatprep.mubr.msk.f32.mxu1 %vm6869_vm0, %v6870_v1  ;;  %5342 = vmatpush3.msra.mxu1 %v1688_v61 }
 0x72f   : > { %5351 = vmatprep.subr.mxu1 %v6870_v1 }
 0x7fc   : > { %v1961_v62 = vpop.f32.mrb[2].mxu1 }
 0x7fd   : > { %v5325_v63 = vpop.f32.mrb[3].mxu1  ;;  %5344 = vmatmul.mubr.msk.f32.vlgmr.msra.gmra.mrb[6].mxu1 %vm1794_vm3, %v1961_v62 }
 0x7fe   : > { %5353 = vmatprep.mubr.msk.f32.mxu1 %vm6869_vm0, %v6870_v1 }
 0x800   : > { %v2128_v2 = vpop.f32.mrb[4].mxu1 }
 0x801   : > { %v5335_v4 = vpop.f32.mrb[5].mxu1  ;;  %5339 = vmatmul.mubr.msk.f32.vlgmr.msra.gmra.mrb[6].mxu0 %vm1794_vm3, %v2128_v2  ;;  %v1693_v2 = vld [vmem:[#allocation12] sm:$0xff] }
 0x802   : > { %5347 = vmatpush3.xpose.msk.msra.mxu0 %vm1794_vm3, %v2281_v3  ;;  %5348 = vmatprep.mubr.msk.f32.mxu0 %vm6869_vm0, %v6870_v1  ;;  %v1694_v3 = vld [vmem:[#allocation12 + $0x8] sm:$0xff] }
 0x803   : > { %5356 = vmatprep.subr.mxu0 %v6870_v1  ;;  %v5569_v4 = vpack.c.bf16 %v1694_v3, %v1693_v2 }
 0x805   : > { %5349 = vmatmul.mubr.msk.f32.vlgmr.msra.gmra.mrb[8].mxu0 %vm1794_vm3, %v2279_v5  ;;  %v1695_v5 = vld [vmem:[#allocation12 + $0x10] sm:$0xff] }
 0x806   : > { %5358 = vmatprep.mubr.msk.f32.mxu0 %vm6869_vm0, %v6870_v1  ;;  %5357 = vmatpush3.msra.mxu0 %v1690_v29 }
 0x807   : > { %5366 = vmatprep.subr.mxu0 %v6870_v1 }
 0x8d0   : > { %v2274_v6 = vpop.f32.mrb[6].mxu1 }
 0x8d1   : > { %v5345_v7 = vpop.f32.mrb[7].mxu1 }
 0x8d4   : > { %v2201_v8 = vpop.f32.mrb[6].mxu0 }
 0x8d5   : > { %v7635_v9 = vadd.f32 %v2274_v6, %v2201_v8  ;;  %v5340_v10 = vpop.f32.mrb[7].mxu0  ;;  %v1696_v6 = vld [vmem:[#allocation12 + $0x18] sm:$0xff]  ;;  %v1699_v8 = vld [vmem:[#allocation15 + $0x8] sm:$0xff] }
 0x8d6   : > { %v5572_v7 = vpack.c.bf16 %v1696_v6, %v1695_v5 }
 0x8d8   : > { %v2352_v11 = vpop.f32.mrb[8].mxu0 }
 0x8d9   : > { %v2356_v12 = vmul.f32 0.35355338, %v2352_v11  ;;  %v5350_v13 = vpop.f32.mrb[9].mxu0  ;;  %v1701_v11 = vld [vmem:[#allocation15 + $0x18] sm:$0xff] }
 0x8da   : > { %v1702_v13 = vld [vmem:[#allocation15 + $0x20] sm:$0xff] }
 0x8db   : > { %v2357_v14 = vadd.f32 %v2356_v12, %v7598_v31 }
 0x8dd   : > { %v2358_v15 = vsel %vm1794_vm3, %v2357_v14, -inf }
 0x8de   : > { %2359 = vmax.xlane.f32.xlu1 %v2358_v15 }
 0x8ef   : > { %2521 = vrot.lane.b32.xlu1 %v7577_v21, %s7866_s16  ;;  %s7941_s16 = sld [smem:[#allocation65_spill]] }
 0x8f3   : > { %2519 = vrot.lane.b32.xlu1 %v7577_v21, %s6879_s10 }
 0x96b   : > { %v2360_v16 = vpop.xlane.xlu1 %2359 }
 0x96c   : > { %v2361_v17 = vsub.f32 %v2357_v14, %v2360_v16  ;;  %v1703_v14 = vld [vmem:[#allocation15 + $0x28] sm:$0xff] }
 0x96d   : > { %v5581_v15 = vpack.c.bf16 %v1703_v14, %v1702_v13 }
 0x96e   : > { %v2362_v19 = vmul.f32 1.442695, %v2361_v17 }
 0x96f   : > { %v2522_v26 = vpop.permute.xlu1 %2521 }
 0x970   : > { %5975 = vpow2.f32 %v2362_v19 }
 0x973   : > { %v2520_v28 = vpop.permute.xlu1 %2519 }
 0x97a   : > { %v5976_v20 = vpop.eup %5975 }
 0x97b   : > { %v2364_v22 = vsel %vm1794_vm3, %v5976_v20, 0.0 }
 0x97c   : > { %2365 = vadd.xlane.f32.xlu0 %v2364_v22 }
 0x992   : > { %2369 = vrot.lane.b32.xlu0 %v7577_v21, %s6880_s23 }
 0xa09   : > { %v2366_v23 = vpop.xlane.xlu0 %2365 }
 0xa0a   : > { %5977 = vrcp.f32 %v2366_v23 }
 0xa0d   : > { %v2370_v24 = vpop.permute.xlu0 %2369 }
 0xa0e   : > { %5352 = vmatpush3.msra.mxu1 %v2370_v24  ;;  %v5138_v24 = vld [vmem:[%s7941_s16] ss:$0 sm:$0xff]  ;;  %s7942_s16 = sld [smem:[#allocation66_spill]] }
 0xa0f   : > { %5361 = vmatprep.subr.mxu1 %v6870_v1 }
 0xa14   : > { %v5978_v25 = vpop.eup %5977 }
 0xa15   : > { %v2368_v27 = vmul.f32 %v5978_v25, %v5976_v20 }
 0xa17   : > { %5354 = vmatmul.mubr.msk.f32.vlgmr.msra.gmra.mrb[8].mxu1 %vm1794_vm3, %v2368_v27  ;;  %v1704_v27 = vld [vmem:[#allocation15 + $0x30] sm:$0xff] }
 0xa18   : > { %5362 = vmatpush3.xpose.msk.msra.mxu1 %vm1794_vm3, %v2522_v26  ;;  %5363 = vmatprep.mubr.msk.f32.mxu1 %vm6869_vm0, %v6870_v1 }
 0xa19   : > { %5371 = vmatprep.subr.mxu1 %v6870_v1 }
 0xa1b   : > { %5364 = vmatmul.mubr.msk.f32.vlgmr.msra.gmra.mrb[10].mxu1 %vm1794_vm3, %v2520_v28  ;;  %v1705_v28 = vld [vmem:[#allocation15 + $0x38] sm:$0xff] }
 0xa1c   : > { %5373 = vmatprep.mubr.msk.f32.mxu1 %vm6869_vm0, %v6870_v1  ;;  %5372 = vmatpush3.msra.mxu1 %v1691_v44  ;;  %v5584_v29 = vpack.c.bf16 %v1705_v28, %v1704_v27  ;;  %v2990_v27 = vld [vmem:[#allocation21 + $0x8] sm:$0xff] }
 0xa1d   : > { %5574 = vmatprep.subr.bf16.mxu1 %v6868_v0 }
 0xaea   : > { %v2441_v30 = vpop.f32.mrb[8].mxu1 }
 0xaeb   : > { %v5355_v32 = vpop.f32.mrb[9].mxu1  ;;  %5359 = vmatmul.mubr.msk.f32.vlgmr.msra.gmra.mrb[10].mxu0 %vm1794_vm3, %v2441_v30  ;;  %v5139_v30 = vld [vmem:[#allocation13] ss:$0 sm:$0xff] }
 0xaec   : > { %5368 = vmatprep.mubr.msk.f32.mxu0 %vm6869_vm0, %v6870_v1 }
 0xaee   : > { %v2593_v33 = vpop.f32.mrb[10].mxu1 }
 0xaef   : > { %v2597_v34 = vmul.f32 0.35355338, %v2593_v33  ;;  %v5365_v35 = vpop.f32.mrb[11].mxu1 }
 0xaf1   : > { %v2598_v36 = vadd.f32 %v2597_v34, %v7598_v31 }
 0xaf3   : > { %v2599_v37 = vsel %vm1794_vm3, %v2598_v36, -inf }
 0xaf4   : > { %2600 = vmax.xlane.f32.xlu0 %v2599_v37 }
 0xb0a   : > { %2610 = vrot.lane.b32.xlu0 %v7577_v21, %s7865_s15  ;;  %s7940_s15 = sld [smem:[#allocation64_spill]] }
 0xb10   : > { %v5137_v22 = vld [vmem:[%s7940_s15] ss:$0 sm:$0xff]  ;;  %s7943_s15 = sld [smem:[#allocation67_spill]] }
 0xb81   : > { %v2601_v38 = vpop.xlane.xlu0 %2600 }
 0xb82   : > { %v2602_v39 = vsub.f32 %v2598_v36, %v2601_v38  ;;  %v5141_v36 = vld [vmem:[#allocation16] ss:$0 sm:$0xff] }
 0xb84   : > { %v2603_v40 = vmul.f32 1.442695, %v2602_v39 }
 0xb85   : > { %v2611_v41 = vpop.permute.xlu0 %2610 }
 0xb86   : > { %5979 = vpow2.f32 %v2603_v40  ;;  %5367 = vmatpush3.msra.mxu0 %v2611_v41 }
 0xb87   : > { %5568 = vmatprep.subr.bf16.mxu0 %v6868_v0 }
 0xb90   : > { %v5980_v42 = vpop.eup %5979 }
 0xb91   : > { %v2605_v43 = vsel %vm1794_vm3, %v5980_v42, 0.0 }
 0xb92   : > { %2606 = vadd.xlane.f32.xlu1 %v2605_v43 }
 0xbbe   : > { %v2514_v45 = vpop.f32.mrb[10].mxu0 }
 0xbbf   : > { %v2518_v46 = vadd.f32 %v2514_v45, %v7635_v9  ;;  %v5360_v21 = vpop.f32.mrb[11].mxu0  ;;  %v1700_v9 = vld [vmem:[#allocation15 + $0x10] sm:$0xff] }
 0xbc0   : > { %v5578_v12 = vpack.c.bf16 %v1701_v11, %v1700_v9  ;;  %v2984_v21 = vld [vmem:[#allocation18] sm:$0xff] }
 0xc1f   : > { %v2607_v47 = vpop.xlane.xlu1 %2606 }
 0xc20   : > { %5981 = vrcp.f32 %v2607_v47  ;;  %v2985_v47 = vld [vmem:[#allocation18 + $0x8] sm:$0xff] }
 0xc2a   : > { %v5982_v48 = vpop.eup %5981 }
 0xc2b   : > { %v2609_v49 = vmul.f32 %v5982_v48, %v5980_v42  ;;  %v5587_v48 = vpack.c.bf16 %v2985_v47, %v2984_v21 }
 0xc2d   : > { %5369 = vmatmul.mubr.msk.f32.vlgmr.msra.gmra.mrb[12].mxu0 %vm1794_vm3, %v2609_v49  ;;  %v2986_v49 = vld [vmem:[#allocation18 + $0x10] sm:$0xff] }
 0xc2e   : > { %5384 = vmatprep.mubr.msk.f32.mxu0 %vm6869_vm0, %v6870_v1  ;;  %5570 = vmatpush3.bf16.msra.mxu0 %v5569_v4 }
 0xc2f   : > { %5571 = vmatprep.subr.bf16.mxu0 %v6868_v0 }
 0xc32   : > { %5573 = vmatpush3.bf16.msra.mxu0 %v5572_v7 }
 0xc33   : > { %5586 = vmatprep.subr.bf16.mxu0 %v6868_v0 }
 0xd00   : > { %v2682_v50 = vpop.f32.mrb[12].mxu0 }
 0xd01   : > { %v5370_v51 = vpop.f32.mrb[13].mxu0  ;;  %5374 = vmatmul.mubr.msk.f32.vlgmr.msra.gmra.mrb[12].mxu1 %vm1794_vm3, %v2682_v50  ;;  %v2987_v50 = vld [vmem:[#allocation18 + $0x18] sm:$0xff] }
 0xd02   : > { %5403 = vmatprep.mubr.msk.f32.mxu1 %vm6869_vm0, %v6870_v1  ;;  %v5590_v51 = vpack.c.bf16 %v2987_v50, %v2986_v49 }
 0xdd4   : > { %v2755_v53 = vpop.f32.mrb[12].mxu1 }
 0xdd5   : > { %v2759_v54 = vadd.f32 %v2755_v53, %v2518_v46  ;;  %v5375_v55 = vpop.f32.mrb[13].mxu1 }
 0xdd7   : > { %v2766_v56 = vadd.f32 %v5136_v52, %v2759_v54 }
 0xdd9   : > { %v2767_v57 = vadd.f32 %v2766_v56, %v7571_v18  ;;  %v1698_v18 = vld [vmem:[#allocation15] sm:$0xff]  ;;  %v5143_v56 = vld [vmem:[%s7942_s16] ss:$0 sm:$0xff] }
 0xdda   : > { %v5575_v10 = vpack.c.bf16 %v1699_v8, %v1698_v18 }
 0xddb   : > { %v2768_v58 = vsel %vm1717_vm2, %v2767_v57, 0.0 }
 0xddc   : > { %2769 = vadd.xlane.f32.xlu1 %v2768_v58  ;;  %5576 = vmatpush3.bf16.msra.mxu1 %v5575_v10  ;;  %v5144_v58 = vld [vmem:[%s7943_s15] ss:$0 sm:$0xff]  ;;  %s7950_s15 = sld [smem:[#allocation75_spill]] }
 0xddd   : > { %5577 = vmatprep.subr.bf16.mxu1 %v6868_v0 }
 0xde0   : > { %5579 = vmatpush3.bf16.msra.mxu1 %v5578_v12 }
 0xde1   : > { %5580 = vmatprep.subr.bf16.mxu1 %v6868_v0 }
 0xde4   : > { %5582 = vmatpush3.bf16.msra.mxu1 %v5581_v15 }
 0xde5   : > { %5583 = vmatprep.subr.bf16.mxu1 %v6868_v0 }
 0xde8   : > { %5585 = vmatpush3.bf16.msra.mxu1 %v5584_v29 }
 0xde9   : > { %5422 = vmatprep.subr.mxu1 %v6870_v1 }
 0xe69   : > { %v2770_v59 = vpop.xlane.xlu1 %2769 }
 0xe6a   : > { %v2772_v60 = vmul.f32 0.03125, %v2770_v59 }
 0xe6c   : > { %v2773_v61 = vsub.f32 %v2767_v57, %v2772_v60 }
 0xe6e   : > { %v2774_v62 = vmul.f32 %v2773_v61, %v2773_v61 }
 0xe70   : > { %v2775_v63 = vsel %vm1717_vm2, %v2774_v62, 0.0 }
 0xe71   : > { %2776 = vadd.xlane.f32.xlu1 %v2775_v63 }
 0xefe   : > { %v2777_v16 = vpop.xlane.xlu1 %2776 }
 0xeff   : > { %v2778_v17 = vmul.f32 0.03125, %v2777_v16 }
 0xf01   : > { %v2779_v19 = vadd.f32 1e-05, %v2778_v17 }
 0xf03   : > { %5983 = vrsqrt.f32 %v2779_v19 }
 0xf0d   : > { %v5984_v20 = vpop.eup %5983 }
 0xf0e   : > { %v2781_v23 = vmul.f32 %v5984_v20, %v2773_v61  ;;  %v5145_v61 = vld [vmem:[#allocation19] ss:$0 sm:$0xff] }
 0xf10   : > { %v2788_v25 = vmul.f32 %v5137_v22, %v2781_v23 }
 0xf12   : > { %v2795_v26 = vadd.f32 %v5138_v24, %v2788_v25 }
 0xf14   : > { %5385 = vmatmul.mubr.msk.f32.vlgmr.msra.gmra.mrb[14].mxu0 %vm1717_vm2, %v2795_v26 }
 0xf15   : > { %5414 = vmatprep.mubr.msk.f32.mxu0 %vm6869_vm0, %v6870_v1  ;;  %5588 = vmatpush3.bf16.msra.mxu0 %v5587_v48 }
 0xf16   : > { %5589 = vmatprep.subr.bf16.mxu0 %v6868_v0 }
 0xf19   : > { %5591 = vmatpush3.bf16.msra.mxu0 %v5590_v51 }
 0xf1a   : > { %5417 = vmatprep.subr.mxu0 %v6870_v1 }
 0xfe7   : > { %v2871_v32 = vpop.f32.mrb[14].mxu0 }
 0xfe8   : > { %v2872_v33 = vadd.f32 %v5139_v30, %v2871_v32  ;;  %v5386_v34 = vpop.f32.mrb[15].mxu0 }
 0xfea   : > { %v2875_v35 = vmax.f32 %v2872_v33, 0.0 }
 0xfec   : > { %5404 = vmatmul.mubr.msk.f32.vlgmr.msra.gmra.mrb[14].mxu1 %vm2882_vm4, %v2875_v35 }
 0xfed   : > { %5424 = vmatprep.mubr.msk.f32.mxu1 %vm6869_vm0, %v6870_v1 }
0x10bf   : > { %v2952_v37 = vpop.f32.mrb[14].mxu1 }
0x10c0   : > { %v2953_v38 = vadd.f32 %v5141_v36, %v2952_v37  ;;  %v5405_v39 = vpop.f32.mrb[15].mxu1  ;;  %v2989_v37 = vld [vmem:[#allocation21] sm:$0xff] }
0x10c2   : > { %v2956_v40 = vadd.f32 %v2953_v38, %v2795_v26 }
0x10c4   : > { %v2957_v41 = vsel %vm1717_vm2, %v2956_v40, 0.0 }
0x10c5   : > { %2958 = vadd.xlane.f32.xlu1 %v2957_v41 }
0x1152   : > { %v2959_v42 = vpop.xlane.xlu1 %2958 }
0x1153   : > { %v2960_v43 = vmul.f32 0.03125, %v2959_v42 }
0x1155   : > { %v2961_v44 = vsub.f32 %v2956_v40, %v2960_v43 }
0x1157   : > { %v2962_v45 = vmul.f32 %v2961_v44, %v2961_v44 }
0x1159   : > { %v2963_v46 = vsel %vm1717_vm2, %v2962_v45, 0.0 }
0x115a   : > { %2964 = vadd.xlane.f32.xlu1 %v2963_v46 }
0x11e7   : > { %v2965_v52 = vpop.xlane.xlu1 %2964 }
0x11e8   : > { %v2966_v53 = vmul.f32 0.03125, %v2965_v52 }
0x11ea   : > { %v2967_v54 = vadd.f32 1e-05, %v2966_v53 }
0x11ec   : > { %5985 = vrsqrt.f32 %v2967_v54 }
0x11f6   : > { %v5986_v55 = vpop.eup %5985 }
0x11f7   : > { %v2969_v57 = vmul.f32 %v5986_v55, %v2961_v44 }
0x11f9   : > { %v2976_v59 = vmul.f32 %v5143_v56, %v2969_v57 }
0x11fb   : > { %v7696_v60 = vadd.f32 %v5144_v58, %v2976_v59 }
0x11fd   : > { %5415 = vmatmul.mubr.msk.f32.vlgmr.msra.gmra.mrb[16].mxu0 %vm1717_vm2, %v7696_v60 }
0x11fe   : > { %5419 = vmatprep.mubr.msk.f32.mxu0 %vm6869_vm0, %v6870_v1 }
0x12d0   : > { %v3087_v62 = vpop.f32.mrb[16].mxu0 }
0x12d1   : > { %v7702_v63 = vadd.f32 %v5145_v61, %v3087_v62  ;;  %v5416_v2 = vpop.f32.mrb[17].mxu0 }
0x12d3   : > { %3259 = vrot.lane.b32.xlu0 %v7702_v63, %s6873_s6  ;;  %3092 = vrot.lane.b32.xlu1 %v7702_v63, %s6872_s3  ;;  %s7945_s6 = smov 40  }
0x12d7   : > { %3257 = vrot.lane.b32.xlu0 %v7702_v63, %s6871_s1  ;;  %s7944_s1 = smov 72  }
0x1345   : > { %v3093_v3 = vpop.permute.xlu1 %3092  ;;  %v3260_v4 = vpop.permute.xlu0 %3259 }
0x1346   : > { %5418 = vmatpush3.xpose.msk.msra.mxu0 %vm1794_vm3, %v3093_v3 }
0x1347   : > { %5427 = vmatprep.subr.mxu0 %v6870_v1 }
0x1349   : > { %5420 = vmatmul.mubr.msk.f32.vlgmr.msra.gmra.mrb[18].mxu0 %vm1794_vm3, %v7702_v63  ;;  %v3258_v5 = vpop.permute.xlu0 %3257 }
0x134a   : > { %5428 = vmatpush3.xpose.msk.msra.mxu0 %vm1794_vm3, %v3260_v4  ;;  %5429 = vmatprep.mubr.msk.f32.mxu0 %vm6869_vm0, %v6870_v1  ;;  %v2991_v4 = vld [vmem:[#allocation21 + $0x10] sm:$0xff] }
0x134b   : > { %5437 = vmatprep.subr.mxu0 %v6870_v1 }
0x134d   : > { %5430 = vmatmul.mubr.msk.f32.vlgmr.msra.gmra.mrb[20].mxu0 %vm1794_vm3, %v3258_v5 }
0x134e   : > { %5439 = vmatprep.mubr.msk.f32.mxu0 %vm6869_vm0, %v6870_v1  ;;  %5438 = vmatpush3.msra.mxu0 %v2990_v27 }
0x134f   : > { %5447 = vmatprep.subr.mxu0 %v6870_v1 }
0x141c   : > { %v3164_v6 = vpop.f32.mrb[18].mxu0 }
0x141d   : > { %v3168_v7 = vmul.f32 0.35355338, %v3164_v6  ;;  %v5421_v18 = vpop.f32.mrb[19].mxu0 }
0x141f   : > { %v3169_v8 = vadd.f32 %v3168_v7, %v7598_v31 }
0x1420   : > { %v3331_v9 = vpop.f32.mrb[20].mxu0 }
0x1421   : > { %v3335_v10 = vmul.f32 0.35355338, %v3331_v9  ;;  %v5431_v11 = vpop.f32.mrb[21].mxu0  ;;  %v3170_v12 = vsel %vm1794_vm3, %v3169_v8, -inf }
0x1422   : > { %3171 = vmax.xlane.f32.xlu0 %v3170_v12 }
0x1423   : > { %v3336_v13 = vadd.f32 %v3335_v10, %v7598_v31 }
0x1425   : > { %v3337_v14 = vsel %vm1794_vm3, %v3336_v13, -inf }
0x1426   : > { %3338 = vmax.xlane.f32.xlu1 %v3337_v14 }
0x1437   : > { %3348 = vrot.lane.b32.xlu1 %v7702_v63, %s6874_s7  ;;  %s7946_s7 = sld [smem:[#allocation73_spill]] }
0x143b   : > { %3570 = vrot.lane.b32.xlu1 %v7702_v63, %s6877_s0  ;;  %s7948_s0 = sld [smem:[#allocation60_spill]] }
0x14af   : > { %v3172_v15 = vpop.xlane.xlu0 %3171 }
0x14b0   : > { %v3173_v16 = vsub.f32 %v3169_v8, %v3172_v15 }
0x14b2   : > { %v3174_v17 = vmul.f32 1.442695, %v3173_v16  ;;  %v2992_v16 = vld [vmem:[#allocation21 + $0x18] sm:$0xff] }
0x14b3   : > { %v3339_v19 = vpop.xlane.xlu1 %3338 }
0x14b4   : > { %5987 = vpow2.f32 %v3174_v17  ;;  %v3340_v20 = vsub.f32 %v3336_v13, %v3339_v19 }
0x14b6   : > { %v3341_v22 = vmul.f32 1.442695, %v3340_v20 }
0x14b7   : > { %v3349_v34 = vpop.permute.xlu1 %3348 }
0x14b8   : > { %5989 = vpow2.f32 %v3341_v22 }
0x14bb   : > { %v3571_v43 = vpop.permute.xlu1 %3570 }
0x14be   : > { %v5988_v23 = vpop.eup %5987 }
0x14bf   : > { %v3176_v24 = vsel %vm1794_vm3, %v5988_v23, 0.0 }
0x14c0   : > { %3177 = vadd.xlane.f32.xlu0 %v3176_v24 }
0x14c2   : > { %v5990_v25 = vpop.eup %5989 }
0x14c3   : > { %v3343_v26 = vsel %vm1794_vm3, %v5990_v25, 0.0 }
0x14c4   : > { %3344 = vadd.xlane.f32.xlu0 %v3343_v26  ;;  %v5163_v26 = vld [vmem:[#allocation22] ss:$0 sm:$0xff] }
0x14da   : > { %3181 = vrot.lane.b32.xlu0 %v7702_v63, %s6875_s4 }
0x14de   : > { %3572 = vrot.lane.b32.xlu0 %v7702_v63, %s6876_s28  ;;  %s7947_s28 = sld [smem:[#allocation74_spill]] }
0x154d   : > { %v3178_v28 = vpop.xlane.xlu0 %3177 }
0x154e   : > { %5991 = vrcp.f32 %v3178_v28 }
0x1551   : > { %v3345_v29 = vpop.xlane.xlu0 %3344 }
0x1552   : > { %5993 = vrcp.f32 %v3345_v29 }
0x1555   : > { %v3182_v30 = vpop.permute.xlu0 %3181 }
0x1556   : > { %5423 = vmatpush3.msra.mxu1 %v3182_v30 }
0x1557   : > { %5432 = vmatprep.subr.mxu1 %v6870_v1 }
0x1558   : > { %v5992_v32 = vpop.eup %5991 }
0x1559   : > { %v3180_v33 = vmul.f32 %v5992_v32, %v5988_v23  ;;  %v3573_v41 = vpop.permute.xlu0 %3572 }
0x155b   : > { %5425 = vmatmul.mubr.msk.f32.vlgmr.msra.gmra.mrb[16].mxu1 %vm1794_vm3, %v3180_v33 }
0x155c   : > { %v5994_v35 = vpop.eup %5993  ;;  %5433 = vmatpush3.msra.mxu1 %v3349_v34  ;;  %5434 = vmatprep.mubr.msk.f32.mxu1 %vm6869_vm0, %v6870_v1 }
0x155d   : > { %v3347_v36 = vmul.f32 %v5994_v35, %v5990_v25  ;;  %5442 = vmatprep.subr.mxu1 %v6870_v1 }
0x155f   : > { %5435 = vmatmul.mubr.msk.f32.vlgmr.msra.gmra.mrb[18].mxu1 %vm1794_vm3, %v3347_v36 }
0x1560   : > { %5444 = vmatprep.mubr.msk.f32.mxu1 %vm6869_vm0, %v6870_v1  ;;  %5443 = vmatpush3.msra.mxu1 %v2989_v37 }
0x1561   : > { %5452 = vmatprep.subr.mxu1 %v6870_v1 }
0x162e   : > { %v3253_v38 = vpop.f32.mrb[16].mxu1 }
0x162f   : > { %v5426_v39 = vpop.f32.mrb[17].mxu1  ;;  %5445 = vmatmul.mubr.msk.f32.vlgmr.msra.gmra.mrb[20].mxu1 %vm1794_vm3, %v3253_v38 }
0x1630   : > { %5454 = vmatprep.mubr.msk.f32.mxu1 %vm6869_vm0, %v6870_v1  ;;  %v2994_v39 = vld [vmem:[#allocation24] sm:$0xff] }
0x1632   : > { %v3420_v40 = vpop.f32.mrb[18].mxu1 }
0x1633   : > { %v5436_v42 = vpop.f32.mrb[19].mxu1  ;;  %5440 = vmatmul.mubr.msk.f32.vlgmr.msra.gmra.mrb[22].mxu0 %vm1794_vm3, %v3420_v40  ;;  %v2995_v40 = vld [vmem:[#allocation24 + $0x8] sm:$0xff] }
0x1634   : > { %5448 = vmatpush3.xpose.msk.msra.mxu0 %vm1794_vm3, %v3573_v41  ;;  %5449 = vmatprep.mubr.msk.f32.mxu0 %vm6869_vm0, %v6870_v1  ;;  %v5593_v41 = vpack.c.bf16 %v2995_v40, %v2994_v39  ;;  %v2996_v42 = vld [vmem:[#allocation24 + $0x10] sm:$0xff] }
0x1635   : > { %5457 = vmatprep.subr.mxu0 %v6870_v1 }
0x1637   : > { %5450 = vmatmul.mubr.msk.f32.vlgmr.msra.gmra.mrb[24].mxu0 %vm1794_vm3, %v3571_v43  ;;  %v2997_v43 = vld [vmem:[#allocation24 + $0x18] sm:$0xff] }
0x1638   : > { %5459 = vmatprep.mubr.msk.f32.mxu0 %vm6869_vm0, %v6870_v1  ;;  %5458 = vmatpush3.msra.mxu0 %v2991_v4  ;;  %v5166_v4 = vld [vmem:[#allocation25] ss:$0 sm:$0xff] }
0x1639   : > { %5467 = vmatprep.subr.mxu0 %v6870_v1 }
0x1702   : > { %v3566_v44 = vpop.f32.mrb[20].mxu1 }
0x1703   : > { %v5446_v45 = vpop.f32.mrb[21].mxu1 }
0x1704   : > { %v3000_v45 = vld [vmem:[#allocation27 + $0x8] sm:$0xff] }
0x1706   : > { %v3493_v46 = vpop.f32.mrb[22].mxu0 }
0x1707   : > { %v3567_v21 = vadd.f32 %v3566_v44, %v3493_v46  ;;  %v5441_v47 = vpop.f32.mrb[23].mxu0  ;;  %v5596_v44 = vpack.c.bf16 %v2997_v43, %v2996_v42  ;;  %v3001_v46 = vld [vmem:[#allocation27 + $0x10] sm:$0xff] }
0x1708   : > { %v3002_v47 = vld [vmem:[#allocation27 + $0x18] sm:$0xff]  ;;  %v5170_v42 = vld [vmem:[%s7950_s15] ss:$0 sm:$0xff] }
0x170a   : > { %v3644_v48 = vpop.f32.mrb[24].mxu0 }
0x170b   : > { %v3648_v49 = vmul.f32 0.35355338, %v3644_v48  ;;  %v5451_v50 = vpop.f32.mrb[25].mxu0  ;;  %v5602_v48 = vpack.c.bf16 %v3002_v47, %v3001_v46  ;;  %v4373_v47 = vld [vmem:[#allocation33] sm:$0xff] }
0x170c   : > { %v3004_v50 = vld [vmem:[#allocation27 + $0x28] sm:$0xff] }
0x170d   : > { %v3649_v51 = vadd.f32 %v3648_v49, %v7598_v31  ;;  %v3003_v49 = vld [vmem:[#allocation27 + $0x20] sm:$0xff] }
0x170f   : > { %v3650_v52 = vsel %vm1794_vm3, %v3649_v51, -inf }
0x1710   : > { %3651 = vmax.xlane.f32.xlu0 %v3650_v52 }
0x1726   : > { %3661 = vrot.lane.b32.xlu0 %v7702_v63, %s6880_s23  ;;  %s7949_s23 = sld [smem:[#allocation59_spill]] }
0x172a   : > { %3811 = vrot.lane.b32.xlu0 %v7702_v63, %s6879_s10  ;;  %s1589_s10 = scalar_lea.vmem %s7948_s0, %s7559_s11 }
0x172c   : > { %s1585_s16 = scalar_lea.vmem %s7949_s23, %s7559_s11  ;;  %s1592_s11 = scalar_lea.vmem %s7086_s20, %s7953_s26 }
0x179d   : > { %v3652_v53 = vpop.xlane.xlu0 %3651 }
0x179e   : > { %v3653_v54 = vsub.f32 %v3649_v51, %v3652_v53  ;;  %v5605_v51 = vpack.c.bf16 %v3004_v50, %v3003_v49  ;;  %v4375_v49 = vld [vmem:[#allocation33 + $0x10] sm:$0xff] }
0x17a0   : > { %v3654_v55 = vmul.f32 1.442695, %v3653_v54 }
0x17a1   : > { %v3662_v56 = vpop.permute.xlu0 %3661 }
0x17a2   : > { %5995 = vpow2.f32 %v3654_v55  ;;  %5453 = vmatpush3.msra.mxu1 %v3662_v56  ;;  %v5164_v56 = vld [vmem:[%s7946_s7] ss:$0 sm:$0xff] }
0x17a3   : > { %5462 = vmatprep.subr.mxu1 %v6870_v1 }
0x17a5   : > { %v3812_v3 = vpop.permute.xlu0 %3811 }
0x17ac   : > { %v5996_v57 = vpop.eup %5995 }
0x17ad   : > { %v3656_v58 = vsel %vm1794_vm3, %v5996_v57, 0.0 }
0x17ae   : > { %3657 = vadd.xlane.f32.xlu1 %v3656_v58  ;;  %v5165_v58 = vld [vmem:[%s7947_s28] ss:$0 sm:$0xff] }
0x17bf   : > { %3813 = vrot.lane.b32.xlu1 %v7702_v63, %s7944_s1  ;;  %s7951_s1 = sld [smem:[#allocation76_spill]] }
0x183b   : > { %v3658_v59 = vpop.xlane.xlu1 %3657 }
0x183c   : > { %5997 = vrcp.f32 %v3658_v59 }
0x183f   : > { %v3814_v2 = vpop.permute.xlu1 %3813 }
0x1846   : > { %v5998_v61 = vpop.eup %5997 }
0x1847   : > { %v3660_v62 = vmul.f32 %v5998_v61, %v5996_v57 }
0x1849   : > { %5455 = vmatmul.mubr.msk.f32.vlgmr.msra.gmra.mrb[22].mxu1 %vm1794_vm3, %v3660_v62  ;;  %v3005_v62 = vld [vmem:[#allocation27 + $0x30] sm:$0xff] }
0x184a   : > { %5463 = vmatpush3.xpose.msk.msra.mxu1 %vm1794_vm3, %v3814_v2  ;;  %5464 = vmatprep.mubr.msk.f32.mxu1 %vm6869_vm0, %v6870_v1  ;;  %v3006_v2 = vld [vmem:[#allocation27 + $0x38] sm:$0xff] }
0x184b   : > { %5472 = vmatprep.subr.mxu1 %v6870_v1 }
0x184d   : > { %5465 = vmatmul.mubr.msk.f32.vlgmr.msra.gmra.mrb[24].mxu1 %vm1794_vm3, %v3812_v3  ;;  %v5608_v3 = vpack.c.bf16 %v3006_v2, %v3005_v62  ;;  %v5173_v62 = vld [vmem:[#allocation31] ss:$0 sm:$0xff] }
0x184e   : > { %5474 = vmatprep.mubr.msk.f32.mxu1 %vm6869_vm0, %v6870_v1  ;;  %5473 = vmatpush3.msra.mxu1 %v2992_v16 }
0x184f   : > { %5598 = vmatprep.subr.bf16.mxu1 %v6868_v0 }
0x191c   : > { %v3733_v5 = vpop.f32.mrb[22].mxu1 }
0x191d   : > { %v5456_v6 = vpop.f32.mrb[23].mxu1  ;;  %5460 = vmatmul.mubr.msk.f32.vlgmr.msra.gmra.mrb[26].mxu0 %vm1794_vm3, %v3733_v5 }
0x191e   : > { %5469 = vmatprep.mubr.msk.f32.mxu0 %vm6869_vm0, %v6870_v1 }
0x1920   : > { %v3885_v7 = vpop.f32.mrb[24].mxu1 }
0x1921   : > { %v3889_v18 = vmul.f32 0.35355338, %v3885_v7  ;;  %v5466_v8 = vpop.f32.mrb[25].mxu1 }
0x1922   : > { %v5168_v8 = vld [vmem:[#allocation28] ss:$0 sm:$0xff] }
0x1923   : > { %v3890_v9 = vadd.f32 %v3889_v18, %v7598_v31 }
0x1925   : > { %v3891_v10 = vsel %vm1794_vm3, %v3890_v9, -inf }
0x1926   : > { %3892 = vmax.xlane.f32.xlu1 %v3891_v10 }
0x19b3   : > { %v3893_v11 = vpop.xlane.xlu1 %3892 }
0x19b4   : > { %v3894_v12 = vsub.f32 %v3890_v9, %v3893_v11 }
0x19b6   : > { %v3895_v13 = vmul.f32 1.442695, %v3894_v12 }
0x19b8   : > { %5999 = vpow2.f32 %v3895_v13 }
0x19c2   : > { %v6000_v14 = vpop.eup %5999 }
0x19c3   : > { %v3897_v15 = vsel %vm1794_vm3, %v6000_v14, 0.0 }
0x19c4   : > { %3898 = vadd.xlane.f32.xlu0 %v3897_v15  ;;  %v7811_v15 = vld [vmem:[%s1589_s10] sm:$0xff] }
0x19c5   : > { %v4657_v16 = vsel %vm4656_vm5, %v7811_v15, 0.0 }
0x19da   : > { %3902 = vrot.lane.b32.xlu0 %v7702_v63, %s7945_s6 }
0x19f0   : > { %v3806_v17 = vpop.f32.mrb[26].mxu0 }
0x19f1   : > { %v3810_v31 = vadd.f32 %v3806_v17, %v3567_v21  ;;  %v5461_v19 = vpop.f32.mrb[27].mxu0  ;;  %v4658_v17 = vrot.slane %v4657_v16, 4 }
0x1a51   : > { %v3899_v20 = vpop.xlane.xlu0 %3898 }
0x1a52   : > { %6001 = vrcp.f32 %v3899_v20 }
0x1a55   : > { %v3903_v22 = vpop.permute.xlu0 %3902 }
0x1a56   : > { %5468 = vmatpush3.msra.mxu0 %v3903_v22 }
0x1a57   : > { %5592 = vmatprep.subr.bf16.mxu0 %v6868_v0 }
0x1a5c   : > { %v6002_v23 = vpop.eup %6001 }
0x1a5d   : > { %v3901_v24 = vmul.f32 %v6002_v23, %v6000_v14  ;;  %v6882_v14 = vmov 0  }
0x1a5e   : > { %5965 = vset.pattern.permute.xlu1 %v6882_v14  ;;  %5966 = vset.pattern.permute.xlu0 %v6882_v14  ;;  %v5175_v14 = vld [vmem:[#allocation34] ss:$0 sm:$0xff] }
0x1a5f   : > { %5470 = vmatmul.mubr.msk.f32.vlgmr.msra.gmra.mrb[28].mxu0 %vm1794_vm3, %v3901_v24 }
0x1a60   : > { %5485 = vmatprep.mubr.msk.f32.mxu0 %vm6869_vm0, %v6870_v1  ;;  %5594 = vmatpush3.bf16.msra.mxu0 %v5593_v41 }
0x1a61   : > { %5595 = vmatprep.subr.bf16.mxu0 %v6868_v0 }
0x1a64   : > { %5597 = vmatpush3.bf16.msra.mxu0 %v5596_v44  ;;  %v5171_v44 = vld [vmem:[%s7951_s1] ss:$0 sm:$0xff] }
0x1a65   : > { %5610 = vmatprep.subr.bf16.mxu0 %v6868_v0 }
0x1b32   : > { %v3974_v63 = vpop.f32.mrb[28].mxu0 }
0x1b33   : > { %v5471_v25 = vpop.f32.mrb[29].mxu0  ;;  %5475 = vmatmul.mubr.msk.f32.vlgmr.msra.gmra.mrb[26].mxu1 %vm1794_vm3, %v3974_v63 }
0x1b34   : > { %5504 = vmatprep.mubr.msk.f32.mxu1 %vm6869_vm0, %v6870_v1 }
0x1c06   : > { %v4047_v27 = vpop.f32.mrb[26].mxu1 }
0x1c07   : > { %v4051_v28 = vadd.f32 %v4047_v27, %v3810_v31  ;;  %v5476_v29 = vpop.f32.mrb[27].mxu1  ;;  %v4659_v31 = vadd.f32 %v4658_v17, %v4657_v16 }
0x1c08   : > { %v1596_v29 = vld [vmem:[%s1585_s16] sm:$0xff] }
0x1c09   : > { %v4058_v30 = vadd.f32 %v5163_v26, %v4051_v28  ;;  %v4660_v19 = vrot.slane %v4659_v31, 2 }
0x1c0b   : > { %v4059_v32 = vadd.f32 %v4058_v30, %v7696_v60  ;;  %v2999_v60 = vld [vmem:[#allocation27] sm:$0xff]  ;;  %v4661_v20 = vadd.f32 %v4660_v19, %v4659_v31 }
0x1c0c   : > { %v5599_v21 = vpack.c.bf16 %v3000_v45, %v2999_v60 }
0x1c0d   : > { %v4060_v33 = vsel %vm1717_vm2, %v4059_v32, 0.0  ;;  %v4662_v63 = vrot.slane %v4661_v20, 1 }
0x1c0e   : > { %4061 = vadd.xlane.f32.xlu1 %v4060_v33  ;;  %5600 = vmatpush3.bf16.msra.mxu1 %v5599_v21  ;;  %v4281_v33 = vld [vmem:[#allocation30 + $0x8] sm:$0xff] }
0x1c0f   : > { %5601 = vmatprep.subr.bf16.mxu1 %v6868_v0  ;;  %v4663_v27 = vadd.f32 %v4662_v63, %v4661_v20  ;;  %v4560_v63 = vld [vmem:[#allocation39 + $0x10] sm:$0xff] }
0x1c11   : > { %v4664_v28 = vmax.f32 %v4663_v27, 1.0 }
0x1c12   : > { %5603 = vmatpush3.bf16.msra.mxu1 %v5602_v48  ;;  %v4374_v48 = vld [vmem:[#allocation33 + $0x8] sm:$0xff] }
0x1c13   : > { %5604 = vmatprep.subr.bf16.mxu1 %v6868_v0  ;;  %v5617_v50 = vpack.c.bf16 %v4374_v48, %v4373_v47 }
0x1c16   : > { %5606 = vmatpush3.bf16.msra.mxu1 %v5605_v51  ;;  %v4376_v51 = vld [vmem:[#allocation33 + $0x18] sm:$0xff] }
0x1c17   : > { %5607 = vmatprep.subr.bf16.mxu1 %v6868_v0 }
0x1c1a   : > { %5609 = vmatpush3.bf16.msra.mxu1 %v5608_v3 }
0x1c1b   : > { %5628 = vmatprep.subr.bf16.mxu1 %v6868_v0 }
0x1c9b   : > { %v4062_v34 = vpop.xlane.xlu1 %4061 }
0x1c9c   : > { %v4063_v35 = vmul.f32 0.03125, %v4062_v34 }
0x1c9e   : > { %v4064_v36 = vsub.f32 %v4059_v32, %v4063_v35  ;;  %v4280_v32 = vld [vmem:[#allocation30] sm:$0xff]  ;;  %v4282_v35 = vld [vmem:[#allocation30 + $0x10] sm:$0xff] }
0x1c9f   : > { %v5611_v34 = vpack.c.bf16 %v4281_v33, %v4280_v32 }
0x1ca0   : > { %v4065_v37 = vmul.f32 %v4064_v36, %v4064_v36 }
0x1ca2   : > { %v4066_v38 = vsel %vm1717_vm2, %v4065_v37, 0.0 }
0x1ca3   : > { %4067 = vadd.xlane.f32.xlu1 %v4066_v38 }
0x1d30   : > { %v4068_v52 = vpop.xlane.xlu1 %4067 }
0x1d31   : > { %v4069_v53 = vmul.f32 0.03125, %v4068_v52  ;;  %v5620_v52 = vpack.c.bf16 %v4376_v51, %v4375_v49 }
0x1d33   : > { %v4070_v54 = vadd.f32 1e-05, %v4069_v53  ;;  %v4377_v53 = vld [vmem:[#allocation33 + $0x20] sm:$0xff] }
0x1d35   : > { %6003 = vrsqrt.f32 %v4070_v54  ;;  %v4378_v54 = vld [vmem:[#allocation33 + $0x28] sm:$0xff] }
0x1d36   : > { %6005 = vrcp.f32 %v4664_v28 }
0x1d3f   : > { %v6004_v55 = vpop.eup %6003 }
0x1d40   : > { %v4072_v57 = vmul.f32 %v6004_v55, %v4064_v36  ;;  %v6006_v30 = vpop.eup %6005  ;;  %v4283_v36 = vld [vmem:[#allocation30 + $0x18] sm:$0xff]  ;;  %v5623_v55 = vpack.c.bf16 %v4378_v54, %v4377_v53 }
0x1d41   : > { %v5614_v37 = vpack.c.bf16 %v4283_v36, %v4282_v35 }
0x1d42   : > { %v4079_v59 = vmul.f32 %v5164_v56, %v4072_v57  ;;  %v4379_v56 = vld [vmem:[#allocation33 + $0x30] sm:$0xff]  ;;  %v4380_v57 = vld [vmem:[#allocation33 + $0x38] sm:$0xff] }
0x1d44   : > { %v4086_v61 = vadd.f32 %v5165_v58, %v4079_v59  ;;  %v5626_v58 = vpack.c.bf16 %v4380_v57, %v4379_v56 }
0x1d46   : > { %5486 = vmatmul.mubr.msk.f32.vlgmr.msra.gmra.mrb[30].mxu0 %vm1717_vm2, %v4086_v61 }
0x1d47   : > { %5515 = vmatprep.mubr.msk.f32.mxu0 %vm6869_vm0, %v6870_v1  ;;  %5612 = vmatpush3.bf16.msra.mxu0 %v5611_v34 }
0x1d48   : > { %5613 = vmatprep.subr.bf16.mxu0 %v6868_v0 }
0x1d4b   : > { %5615 = vmatpush3.bf16.msra.mxu0 %v5614_v37 }
0x1d4c   : > { %5616 = vmatprep.subr.bf16.mxu0 %v6868_v0 }
0x1e19   : > { %v4162_v5 = vpop.f32.mrb[30].mxu0 }
0x1e1a   : > { %v4163_v6 = vadd.f32 %v5166_v4, %v4162_v5  ;;  %v5487_v7 = vpop.f32.mrb[31].mxu0 }
0x1e1b   : > { %v4470_v7 = vld [vmem:[#allocation36] sm:$0xff] }
0x1e1c   : > { %v4166_v18 = vmax.f32 %v4163_v6, 0.0 }
0x1e1e   : > { %5505 = vmatmul.mubr.msk.f32.vlgmr.msra.gmra.mrb[28].mxu1 %vm2882_vm4, %v4166_v18  ;;  %v4471_v18 = vld [vmem:[#allocation36 + $0x8] sm:$0xff] }
0x1e1f   : > { %5545 = vmatprep.mubr.msk.f32.mxu1 %vm6869_vm0, %v6870_v1 }
0x1ef1   : > { %v4242_v9 = vpop.f32.mrb[28].mxu1 }
0x1ef2   : > { %v4243_v10 = vadd.f32 %v5168_v8, %v4242_v9  ;;  %v5506_v11 = vpop.f32.mrb[29].mxu1  ;;  %v4472_v8 = vld [vmem:[#allocation36 + $0x10] sm:$0xff]  ;;  %v5629_v9 = vpack.c.bf16 %v4471_v18, %v4470_v7 }
0x1ef4   : > { %v4246_v12 = vadd.f32 %v4243_v10, %v4086_v61  ;;  %v4473_v10 = vld [vmem:[#allocation36 + $0x18] sm:$0xff]  ;;  %5630 = vmatpush3.bf16.msra.mxu1 %v5629_v9 }
0x1ef5   : > { %v5632_v11 = vpack.c.bf16 %v4473_v10, %v4472_v8  ;;  %5631 = vmatprep.subr.bf16.mxu1 %v6868_v0 }
0x1ef6   : > { %v4247_v13 = vsel %vm1717_vm2, %v4246_v12, 0.0 }
0x1ef7   : > { %4248 = vadd.xlane.f32.xlu1 %v4247_v13 }
0x1ef8   : > { %5633 = vmatpush3.bf16.msra.mxu1 %v5632_v11 }
0x1ef9   : > { %5634 = vmatprep.subr.bf16.mxu1 %v6868_v0 }
0x1f84   : > { %v4249_v22 = vpop.xlane.xlu1 %4248 }
0x1f85   : > { %v4250_v23 = vmul.f32 0.03125, %v4249_v22  ;;  %v4558_v22 = vld [vmem:[#allocation39] sm:$0xff] }
0x1f87   : > { %v4251_v24 = vsub.f32 %v4246_v12, %v4250_v23  ;;  %v4559_v23 = vld [vmem:[#allocation39 + $0x8] sm:$0xff] }
0x1f89   : > { %v4252_v25 = vmul.f32 %v4251_v24, %v4251_v24 }
0x1f8b   : > { %v4253_v26 = vsel %vm1717_vm2, %v4252_v25, 0.0 }
0x1f8c   : > { %4254 = vadd.xlane.f32.xlu1 %v4253_v26  ;;  %v5176_v26 = vld [vmem:[#allocation37] ss:$0 sm:$0xff] }
0x1f9d   : > { %4276 = vperm.xlu1 %5965, %v1596_v29  }
0x1fa1   : > { %4668 = vperm.xlu1 %5965, %v6006_v30  }
0x2019   : > { %v4255_v38 = vpop.xlane.xlu1 %4254 }
0x201a   : > { %v4256_v39 = vmul.f32 0.03125, %v4255_v38 }
0x201c   : > { %v4257_v40 = vadd.f32 1e-05, %v4256_v39 }
0x201d   : > { %v4277_v46 = vpop.permute.xlu1 %4276 }
0x201e   : > { %6007 = vrsqrt.f32 %v4257_v40 }
0x2028   : > { %v6008_v41 = vpop.eup %6007 }
0x2029   : > { %v4259_v43 = vmul.f32 %v6008_v41, %v4251_v24  ;;  %v5635_v24 = vpack.c.bf16 %v4559_v23, %v4558_v22 }
0x202b   : > { %v4266_v60 = vmul.f32 %v5170_v42, %v4259_v43 }
0x202d   : > { %v4273_v45 = vadd.f32 %v5171_v44, %v4266_v60  ;;  %v4669_v60 = vpop.permute.xlu1 %4668 }
0x202f   : > { %v4279_v21 = vmul.f32 %v4277_v46, %v4273_v45 }
0x2031   : > { %5516 = vmatmul.mubr.msk.f32.vlgmr.msra.gmra.mrb[32].mxu0 %vm1717_vm2, %v4279_v21 }
0x2032   : > { %5534 = vmatprep.mubr.msk.f32.mxu0 %vm6869_vm0, %v6870_v1  ;;  %5618 = vmatpush3.bf16.msra.mxu0 %v5617_v50 }
0x2033   : > { %5619 = vmatprep.subr.bf16.mxu0 %v6868_v0 }
0x2036   : > { %5621 = vmatpush3.bf16.msra.mxu0 %v5620_v52 }
0x2037   : > { %5622 = vmatprep.subr.bf16.mxu0 %v6868_v0 }
0x203a   : > { %5624 = vmatpush3.bf16.msra.mxu0 %v5623_v55 }
0x203b   : > { %5625 = vmatprep.subr.bf16.mxu0 %v6868_v0 }
0x203e   : > { %5627 = vmatpush3.bf16.msra.mxu0 %v5626_v58 }
0x2104   : > { %v4354_v59 = vpop.f32.mrb[32].mxu0 }
0x2105   : > { %4369 = vrot.lane.b32.xlu0 %v4354_v59, %s6875_s4  ;;  %v5517_v61 = vpop.f32.mrb[33].mxu0  ;;  %v4364_v2 = vadd.f32 %v5173_v62, %v4354_v59 }
0x2107   : > { %v4366_v3 = vmul.f32 0.01, %v4364_v2  ;;  %vm4365_vm6 = vcmp.ge.f32.partialorder %v4364_v2, 0.0 }
0x2109   : > { %v4367_v5 = vsel %vm4365_vm6, %v4364_v2, %v4366_v3 }
0x2177   : > { %v4370_v4 = vpop.permute.xlu0 %4369 }
0x2178   : > { %v4372_v6 = vadd.f32 %v4370_v4, %v4367_v5 }
0x217a   : > { %5535 = vmatmul.mubr.msk.f32.vlgmr.msra.gmra.mrb[34].mxu0 %vm2882_vm4, %v4372_v6 }
0x224d   : > { %v4451_v12 = vpop.f32.mrb[34].mxu0 }
0x224e   : > { %4466 = vrot.lane.b32.xlu0 %v4451_v12, %s6872_s3  ;;  %v5536_v13 = vpop.f32.mrb[35].mxu0  ;;  %v4461_v16 = vadd.f32 %v5175_v14, %v4451_v12 }
0x2250   : > { %v4463_v17 = vmul.f32 0.01, %v4461_v16  ;;  %vm4462_vm7 = vcmp.ge.f32.partialorder %v4461_v16, 0.0 }
0x2252   : > { %4644 = vperm.xlu0 %5966, %v7811_v15   ;;  %v4464_v19 = vsel %vm4462_vm7, %v4461_v16, %v4463_v17  ;;  %v4561_v15 = vld [vmem:[#allocation39 + $0x18] sm:$0xff] }
0x2253   : > { %v5638_v25 = vpack.c.bf16 %v4561_v15, %v4560_v63 }
0x22c0   : > { %v4467_v31 = vpop.permute.xlu0 %4466 }
0x22c1   : > { %v4469_v20 = vadd.f32 %v4467_v31, %v4464_v19 }
0x22c3   : > { %5546 = vmatmul.mubr.msk.f32.vlgmr.msra.gmra.mrb[30].mxu1 %vm1717_vm2, %v4469_v20 }
0x22c4   : > { %5556 = vmatprep.mubr.msk.f32.mxu1 %vm6869_vm0, %v6870_v1  ;;  %5636 = vmatpush3.bf16.msra.mxu1 %v5635_v24  ;;  %v5178_v1 = vld [vmem:[#allocation40] ss:$0 sm:$0xff] }
0x22c5   : > { %5637 = vmatprep.subr.bf16.mxu1 %v6868_v0 }
0x22c8   : > { %5639 = vmatpush3.bf16.msra.mxu1 %v5638_v25 }
0x22d1   : > { %v4645_v35 = vpop.permute.xlu0 %4644 }
0x2396   : > { %v4550_v27 = vpop.f32.mrb[30].mxu1 }
0x2397   : > { %v4551_v28 = vadd.f32 %v5176_v26, %v4550_v27  ;;  %v5547_v29 = vpop.f32.mrb[31].mxu1 }
0x2399   : > { %vm4554_vm8 = vcmp.ge.f32.partialorder %v4551_v28, 0.0  ;;  %v4555_v30 = vmul.f32 0.01, %v4551_v28 }
0x239b   : > { %v4556_v32 = vsel %vm4554_vm8, %v4551_v28, %v4555_v30 }
0x239c   : > { %v4557_v33 = vadd.f32 %v4556_v32, %v4469_v20 }
0x239e   : > { %5557 = vmatmul.mubr.msk.f32.vlgmr.msra.gmra.mrb[32].mxu1 %vm1717_vm2, %v4557_v33 }
0x2471   : > { %v4638_v34 = vpop.f32.mrb[32].mxu1 }
0x2472   : > { %v4639_v0 = vadd.f32 %v5178_v1, %v4638_v34  ;;  %v5558_v36 = vpop.f32.mrb[33].mxu1 }
0x2474   : > { %v4647_v37 = vmul.f32 %v4645_v35, %v4639_v0 }
0x2476   : > { %v4649_v38 = vsel %vm4648_vm9, %v4647_v37, 0.0 }
0x2477   : > { %v4650_v39 = vrot.slane %v4649_v38, 4 }
0x2479   : > { %v4651_v40 = vadd.f32 %v4650_v39, %v4649_v38 }
0x247b   : > { %v4652_v41 = vrot.slane %v4651_v40, 2 }
0x247d   : > { %v4653_v42 = vadd.f32 %v4652_v41, %v4651_v40 }
0x247f   : > { %v4654_v43 = vrot.slane %v4653_v42, 1 }
0x2481   : > { %v4655_v44 = vadd.f32 %v4654_v43, %v4653_v42 }
0x2483   : > { %v4671_v45 = vmul.f32 %v4669_v60, %v4655_v44 }
0x2485   : > { %4673 = vst.msk [vmem:[%s1592_s11] sm:$0x1] %vm4672_vm10, %v4671_v45 }
0x2486 PF: > { %s103_s22 = sadd.s32 1, %s6799_s22  }
0x2487   : > { %p100_p2 = scmp.ge.s32.totalorder %s103_s22, 4  }
0x2489   :  { %102 = sbr.rel (!%p100_p2) target bundleno = 82 (0x52), region = 362 }
0x2490   :  { %4691 = vsyncpa [#allocation3], 1 }
0x2491   :  { %4693 = vsyncpa [#allocation3 + $0x1], 1 }
0x2492   :  { %4694 = vsyncpa [#allocation5], 1 }
0x2493   :  { %4695 = vsyncpa [#allocation8], 1 }
0x2494   :  { %4696 = vsyncpa [#allocation11], 1 }
0x2495   :  { %4697 = vsyncpa [#allocation14], 1 }
0x2496   :  { %4698 = vsyncpa [#allocation17], 1 }
0x2497   :  { %4699 = vsyncpa [#allocation20], 1 }
0x2498   :  { %4700 = vsyncpa [#allocation23], 1 }
0x2499   :  { %4701 = vsyncpa [#allocation26], 1 }
0x249a   :  { %4702 = vsyncpa [#allocation29], 1 }
0x249b   :  { %4703 = vsyncpa [#allocation32], 1 }
0x249c   :  { %4704 = vsyncpa [#allocation35], 1 }
0x249d   :  { %4705 = vsyncpa [#allocation38], 1 }
0x249e   :  { %4706 = vsyncpa [#allocation41], 1 }

</bundles_post_ra>
